<compile_context>
chip_gen: v6e
topology: v6e:2x2x1
jax: 0.10.0
libtpu: 0.0.40
codegen_flags: <defaults>
</compile_context>

<pallas_src>
import jax
import jax.numpy as jnp
from jax.experimental import pallas as pl
from jax.experimental.pallas import tpu as pltpu


# ------------------------------ Pallas kernel ------------------------------ #

def _vgg_head_kernel(x_ref, w1_ref, b1_ref, w2_ref, b2_ref, wc_ref, bc_ref,
                     o_ref, xpad_ref, h1pad_ref):
    """Fused per-image head: conv1+ReLU -> conv2+ReLU -> avgpool -> linear.

    x_ref:   (1, 7, 7, Cin)   one NHWC image
    w1_ref:  (9*Cin, C1)      conv1 weight, HWIO reshaped for im2col
    b1_ref:  (1, C1)
    w2_ref:  (9*C1, C2)       conv2 weight, HWIO reshaped for im2col
    b2_ref:  (1, C2)
    wc_ref:  (C2, ncls)       classifier weight, pre-transposed (in, out)
    bc_ref:  (1, ncls)
    o_ref:   (1, 1, ncls)
    xpad_ref:  VMEM (9, 9, Cin)  zero-padded conv1 input (scratch)
    h1pad_ref: VMEM (9, 9, C1)   zero-padded conv1 output (scratch)
    """
    f32 = jnp.float32
    _, H, W, Cin = x_ref.shape
    C1 = b1_ref.shape[-1]
    HW = H * W

    # ---- conv1: 3x3 'same', Cin -> C1, bias + ReLU, one im2col matmul -------
    xpad_ref[...] = jnp.zeros_like(xpad_ref)
    xpad_ref[1:H + 1, 1:W + 1, :] = x_ref[0].astype(f32)
    xp = xpad_ref[...]
    cols = [xp[ky:ky + H, kx:kx + W, :].reshape(HW, Cin)
            for ky in range(3) for kx in range(3)]
    p1 = jnp.concatenate(cols, axis=1)                        # (49, 9*Cin)
    h1 = jnp.dot(p1, w1_ref[...], preferred_element_type=f32) + b1_ref[...]
    h1 = jnp.maximum(h1, 0.0)                                 # (49, C1)

    # ---- conv1 output into zero-padded VMEM scratch (never leaves VMEM) -----
    h1pad_ref[...] = jnp.zeros_like(h1pad_ref)
    for h in range(H):   # per-row stores avoid a (49,C1)->(7,7,C1) split reshape
        h1pad_ref[h + 1, 1:W + 1, :] = h1[h * W:(h + 1) * W, :]

    # ---- conv2: 3x3 'same', C1 -> C2, bias + ReLU, one im2col matmul --------
    hp = h1pad_ref[...]
    cols = [hp[ky:ky + H, kx:kx + W, :].reshape(HW, C1)
            for ky in range(3) for kx in range(3)]
    p2 = jnp.concatenate(cols, axis=1)                        # (49, 9*C1) = (49, 144)
    h2 = jnp.dot(p2, w2_ref[...], preferred_element_type=f32) + b2_ref[...]
    h2 = jnp.maximum(h2, 0.0)                                 # (49, C2)

    # ---- AvgPool2d(7) + flatten: mean over all 49 spatial positions ---------
    pooled = jnp.mean(h2, axis=0, keepdims=True)              # (1, C2)

    # ---- classifier: Linear(C2, ncls) ----------------------------------------
    logits = jnp.dot(pooled, wc_ref[...], preferred_element_type=f32) + bc_ref[...]
    o_ref[...] = logits.reshape(o_ref.shape).astype(o_ref.dtype)


# ------------------------------ JAX wrapper -------------------------------- #

def _const_spec(a):
    """Full-array block, same block index every grid step (stays VMEM-resident)."""
    zeros = (0,) * a.ndim
    return pl.BlockSpec(a.shape, lambda n: zeros)


def vgg_forward(x_nchw, params):
    """Mirrors Vgg.forward: features(x) -> avgpool(7) -> view -> classifier."""
    N = x_nchw.shape[0]
    x_nhwc = jnp.transpose(x_nchw, (0, 2, 3, 1))              # NCHW -> NHWC glue
    H, W, Cin = x_nhwc.shape[1:]
    C1 = params["b1"].shape[-1]
    num_classes = params["bc"].shape[-1]

    out = pl.pallas_call(
        _vgg_head_kernel,
        out_shape=jax.ShapeDtypeStruct((N, 1, num_classes), jnp.float32),
        grid=(N,),
        in_specs=[
            pl.BlockSpec((1, H, W, Cin), lambda n: (n, 0, 0, 0)),
            _const_spec(params["w1r"]), _const_spec(params["b1"]),
            _const_spec(params["w2r"]), _const_spec(params["b2"]),
            _const_spec(params["wc_t"]), _const_spec(params["bc"]),
        ],
        out_specs=pl.BlockSpec((1, 1, num_classes), lambda n: (n, 0, 0)),
        scratch_shapes=[
            pltpu.VMEM((H + 2, W + 2, Cin), jnp.float32),     # padded conv1 input
            pltpu.VMEM((H + 2, W + 2, C1), jnp.float32),      # padded conv1 output
        ],
        compiler_params=pltpu.CompilerParams(
            dimension_semantics=("parallel",),                # v7x: batch split over TCs
        ),
    )(x_nhwc, params["w1r"], params["b1"], params["w2r"], params["b2"],
      params["wc_t"], params["bc"])
    return out.reshape(N, num_classes).astype(x_nchw.dtype)


def init_params(key):
    k1, k2, k3 = jax.random.split(key, 3)
    # Conv2d: kaiming_normal_(mode='fan_out', relu) => std = sqrt(2/(Cout*kh*kw)); bias 0
    w1 = jax.random.normal(k1, (3, 3, 3, 16), jnp.float32) * (2.0 / (16 * 9)) ** 0.5
    w2 = jax.random.normal(k2, (3, 3, 16, 512), jnp.float32) * (2.0 / (512 * 9)) ** 0.5
    # Linear: weight ~ N(0, 0.01), bias 0; torch stores (out,in) -> keep transposed (in,out)
    wc = jax.random.normal(k3, (7, 512), jnp.float32) * 0.01
    return {
        "w1r": w1.reshape(9 * 3, 16),        # im2col weight (kh*kw*Cin, Cout)
        "b1": jnp.zeros((1, 16), jnp.float32),
        "w2r": w2.reshape(9 * 16, 512),
        "b2": jnp.zeros((1, 512), jnp.float32),
        "wc_t": wc.T,                        # (512, 7)
        "bc": jnp.zeros((1, 7), jnp.float32),
    }


def vgg_reference(x_nchw, params):
    """Pure-JAX reference (matches PyTorch semantics) for a correctness check."""
    x = jnp.transpose(x_nchw, (0, 2, 3, 1)).astype(jnp.float32)
    cin = x.shape[-1]
    c1 = params["b1"].shape[-1]
    c2 = params["b2"].shape[-1]
    w1 = params["w1r"].reshape(3, 3, cin, c1)
    w2 = params["w2r"].reshape(3, 3, c1, c2)

    def conv_relu(h, w, b):
        y = jax.lax.conv_general_dilated(
            h, w, window_strides=(1, 1), padding="SAME",
            dimension_numbers=("NHWC", "HWIO", "NHWC"),
            precision=jax.lax.Precision.HIGHEST)
        return jnp.maximum(y + b.reshape(1, 1, 1, -1), 0.0)

    h = conv_relu(conv_relu(x, w1, params["b1"]), w2, params["b2"])
    pooled = h.mean(axis=(1, 2))                              # avgpool(7) + flatten
    return jnp.dot(pooled, params["wc_t"],
                   precision=jax.lax.Precision.HIGHEST) + params["bc"]


if __name__ == "__main__":
    key = jax.random.PRNGKey(0)
    kx, kp = jax.random.split(key)
    # 7x7 RGB input: avgpool(7) + Linear(512, 7) imply a (N, 512, 7, 7) feature map.
    N, C, H, W = 2, 3, 7, 7
    x = jax.random.normal(kx, (N, C, H, W), jnp.float32)      # NCHW, like PyTorch
    params = init_params(kp)

    out = jax.block_until_ready(jax.jit(vgg_forward)(x, params))
    assert out.shape == (N, 7), out.shape
    assert out.dtype == jnp.float32

    ref = jax.block_until_ready(vgg_reference(x, params))
    assert jnp.allclose(out, ref, rtol=1e-2, atol=1e-2), (out, ref)

    print("KERNEL_OK")
</pallas_src>

<mosaic_0001>
module attributes {stable_mosaic.version = 11 : i64} {
  func.func @_vgg_head_kernel(%arg0: i32, %arg1: memref<1x7x7x3xf32, #tpu.memory_space<vmem>>, %arg2: memref<27x16xf32, #tpu.memory_space<vmem>>, %arg3: memref<1x16xf32, #tpu.memory_space<vmem>>, %arg4: memref<144x512xf32, #tpu.memory_space<vmem>>, %arg5: memref<1x512xf32, #tpu.memory_space<vmem>>, %arg6: memref<512x7xf32, #tpu.memory_space<vmem>>, %arg7: memref<1x7xf32, #tpu.memory_space<vmem>>, %arg8: memref<1x1x7xf32, #tpu.memory_space<vmem>>, %arg9: memref<9x9x3xf32, #tpu.memory_space<vmem>>, %arg10: memref<9x9x16xf32, #tpu.memory_space<vmem>>) attributes {dimension_semantics = [#tpu.dimension_semantics<parallel>], iteration_bounds = array<i64: 2>, scalar_prefetch = 0 : i64, scratch_operands = 2 : i64, tpu.core_type = #tpu.core_type<tc>, window_params = [{transform_indices = @transform_0, window_bounds = array<i64: 1, 7, 7, 3>}, {pipeline_mode = #tpu.pipeline_mode<synchronous>, transform_indices = @transform_1, window_bounds = array<i64: 27, 16>}, {pipeline_mode = #tpu.pipeline_mode<synchronous>, transform_indices = @transform_2, window_bounds = array<i64: 1, 16>}, {pipeline_mode = #tpu.pipeline_mode<synchronous>, transform_indices = @transform_3, window_bounds = array<i64: 144, 512>}, {pipeline_mode = #tpu.pipeline_mode<synchronous>, transform_indices = @transform_4, window_bounds = array<i64: 1, 512>}, {pipeline_mode = #tpu.pipeline_mode<synchronous>, transform_indices = @transform_5, window_bounds = array<i64: 512, 7>}, {pipeline_mode = #tpu.pipeline_mode<synchronous>, transform_indices = @transform_6, window_bounds = array<i64: 1, 7>}, {transform_indices = @transform_7, window_bounds = array<i64: 1, 1, 7>}]} {
    %cst = arith.constant 0.000000e+00 : f32
    %0 = vector.broadcast %cst : f32 to vector<9x9x3xf32>
    %c0 = arith.constant 0 : index
    %c0_0 = arith.constant 0 : index
    %c0_1 = arith.constant 0 : index
    %1 = vector.load %arg9[%c0, %c0_0, %c0_1] : memref<9x9x3xf32, #tpu.memory_space<vmem>>, vector<9x9x3xf32>
    tpu.vector_store %arg9[%c0, %c0_0, %c0_1], %0 {strides = array<i32>} : memref<9x9x3xf32, #tpu.memory_space<vmem>>, vector<9x9x3xf32>,
    %c0_2 = arith.constant 0 : index
    %c0_3 = arith.constant 0 : index
    %c0_4 = arith.constant 0 : index
    %c0_5 = arith.constant 0 : index
    %2 = vector.load %arg1[%c0_2, %c0_3, %c0_4, %c0_5] : memref<1x7x7x3xf32, #tpu.memory_space<vmem>>, vector<1x7x7x3xf32>
    %3 = vector.shape_cast %2 : vector<1x7x7x3xf32> to vector<7x7x3xf32>
    %c1 = arith.constant 1 : index
    %c1_6 = arith.constant 1 : index
    %c0_7 = arith.constant 0 : index
    %4 = vector.load %arg9[%c1, %c1_6, %c0_7] : memref<9x9x3xf32, #tpu.memory_space<vmem>>, vector<7x7x3xf32>
    tpu.vector_store %arg9[%c1, %c1_6, %c0_7], %3 {strides = array<i32>} : memref<9x9x3xf32, #tpu.memory_space<vmem>>, vector<7x7x3xf32>,
    %c0_8 = arith.constant 0 : index
    %c0_9 = arith.constant 0 : index
    %c0_10 = arith.constant 0 : index
    %5 = vector.load %arg9[%c0_8, %c0_9, %c0_10] : memref<9x9x3xf32, #tpu.memory_space<vmem>>, vector<9x9x3xf32>
    %6 = vector.extract_strided_slice %5 {offsets = [0, 0, 0], sizes = [7, 7, 3], strides = [1, 1, 1]} : vector<9x9x3xf32> to vector<7x7x3xf32>
    %7 = vector.shape_cast %6 : vector<7x7x3xf32> to vector<49x3xf32>
    %8 = vector.extract_strided_slice %5 {offsets = [0, 1, 0], sizes = [7, 7, 3], strides = [1, 1, 1]} : vector<9x9x3xf32> to vector<7x7x3xf32>
    %9 = vector.shape_cast %8 : vector<7x7x3xf32> to vector<49x3xf32>
    %10 = vector.extract_strided_slice %5 {offsets = [0, 2, 0], sizes = [7, 7, 3], strides = [1, 1, 1]} : vector<9x9x3xf32> to vector<7x7x3xf32>
    %11 = vector.shape_cast %10 : vector<7x7x3xf32> to vector<49x3xf32>
    %12 = vector.extract_strided_slice %5 {offsets = [1, 0, 0], sizes = [7, 7, 3], strides = [1, 1, 1]} : vector<9x9x3xf32> to vector<7x7x3xf32>
    %13 = vector.shape_cast %12 : vector<7x7x3xf32> to vector<49x3xf32>
    %14 = vector.extract_strided_slice %5 {offsets = [1, 1, 0], sizes = [7, 7, 3], strides = [1, 1, 1]} : vector<9x9x3xf32> to vector<7x7x3xf32>
    %15 = vector.shape_cast %14 : vector<7x7x3xf32> to vector<49x3xf32>
    %16 = vector.extract_strided_slice %5 {offsets = [1, 2, 0], sizes = [7, 7, 3], strides = [1, 1, 1]} : vector<9x9x3xf32> to vector<7x7x3xf32>
    %17 = vector.shape_cast %16 : vector<7x7x3xf32> to vector<49x3xf32>
    %18 = vector.extract_strided_slice %5 {offsets = [2, 0, 0], sizes = [7, 7, 3], strides = [1, 1, 1]} : vector<9x9x3xf32> to vector<7x7x3xf32>
    %19 = vector.shape_cast %18 : vector<7x7x3xf32> to vector<49x3xf32>
    %20 = vector.extract_strided_slice %5 {offsets = [2, 1, 0], sizes = [7, 7, 3], strides = [1, 1, 1]} : vector<9x9x3xf32> to vector<7x7x3xf32>
    %21 = vector.shape_cast %20 : vector<7x7x3xf32> to vector<49x3xf32>
    %22 = vector.extract_strided_slice %5 {offsets = [2, 2, 0], sizes = [7, 7, 3], strides = [1, 1, 1]} : vector<9x9x3xf32> to vector<7x7x3xf32>
    %23 = vector.shape_cast %22 : vector<7x7x3xf32> to vector<49x3xf32>
    %24 = tpu.concatenate %7, %9, %11, %13, %15, %17, %19, %21, %23 in 1 : vector<49x3xf32>, vector<49x3xf32>, vector<49x3xf32>, vector<49x3xf32>, vector<49x3xf32>, vector<49x3xf32>, vector<49x3xf32>, vector<49x3xf32>, vector<49x3xf32> -> vector<49x27xf32>
    %c0_11 = arith.constant 0 : index
    %c0_12 = arith.constant 0 : index
    %25 = vector.load %arg2[%c0_11, %c0_12] : memref<27x16xf32, #tpu.memory_space<vmem>>, vector<27x16xf32>
    %cst_13 = arith.constant dense<0.000000e+00> : vector<49x16xf32>
    %26 = tpu.matmul %24, %25, %cst_13 {dimension_numbers = #tpu.dot_dimension_numbers<[1], [0], [0], [1], [0, 0, 1, 1], [], []>} : vector<49x27xf32>, vector<27x16xf32>, vector<49x16xf32> -> vector<49x16xf32>
    %c0_14 = arith.constant 0 : index
    %c0_15 = arith.constant 0 : index
    %27 = vector.load %arg3[%c0_14, %c0_15] : memref<1x16xf32, #tpu.memory_space<vmem>>, vector<1x16xf32>
    %28 = vector.broadcast %27 : vector<1x16xf32> to vector<49x16xf32>
    %29 = arith.addf %26, %28 : vector<49x16xf32>
    %cst_16 = arith.constant 0.000000e+00 : f32
    %30 = vector.broadcast %cst_16 : f32 to vector<49x16xf32>
    %31 = arith.maximumf %29, %30 : vector<49x16xf32>
    %cst_17 = arith.constant 0.000000e+00 : f32
    %32 = vector.broadcast %cst_17 : f32 to vector<9x9x16xf32>
    %c0_18 = arith.constant 0 : index
    %c0_19 = arith.constant 0 : index
    %c0_20 = arith.constant 0 : index
    %33 = vector.load %arg10[%c0_18, %c0_19, %c0_20] : memref<9x9x16xf32, #tpu.memory_space<vmem>>, vector<9x9x16xf32>
    tpu.vector_store %arg10[%c0_18, %c0_19, %c0_20], %32 {strides = array<i32>} : memref<9x9x16xf32, #tpu.memory_space<vmem>>, vector<9x9x16xf32>,
    %34 = vector.extract_strided_slice %31 {offsets = [0, 0], sizes = [7, 16], strides = [1, 1]} : vector<49x16xf32> to vector<7x16xf32>
    %c1_21 = arith.constant 1 : index
    %c1_22 = arith.constant 1 : index
    %c0_23 = arith.constant 0 : index
    %35 = vector.load %arg10[%c1_21, %c1_22, %c0_23] : memref<9x9x16xf32, #tpu.memory_space<vmem>>, vector<1x7x16xf32>
    %36 = vector.shape_cast %35 : vector<1x7x16xf32> to vector<7x16xf32>
    %37 = vector.shape_cast %34 : vector<7x16xf32> to vector<1x7x16xf32>
    tpu.vector_store %arg10[%c1_21, %c1_22, %c0_23], %37 {strides = array<i32>} : memref<9x9x16xf32, #tpu.memory_space<vmem>>, vector<1x7x16xf32>,
    %38 = vector.extract_strided_slice %31 {offsets = [7, 0], sizes = [7, 16], strides = [1, 1]} : vector<49x16xf32> to vector<7x16xf32>
    %c2 = arith.constant 2 : index
    %c1_24 = arith.constant 1 : index
    %c0_25 = arith.constant 0 : index
    %39 = vector.load %arg10[%c2, %c1_24, %c0_25] : memref<9x9x16xf32, #tpu.memory_space<vmem>>, vector<1x7x16xf32>
    %40 = vector.shape_cast %39 : vector<1x7x16xf32> to vector<7x16xf32>
    %41 = vector.shape_cast %38 : vector<7x16xf32> to vector<1x7x16xf32>
    tpu.vector_store %arg10[%c2, %c1_24, %c0_25], %41 {strides = array<i32>} : memref<9x9x16xf32, #tpu.memory_space<vmem>>, vector<1x7x16xf32>,
    %42 = vector.extract_strided_slice %31 {offsets = [14, 0], sizes = [7, 16], strides = [1, 1]} : vector<49x16xf32> to vector<7x16xf32>
    %c3 = arith.constant 3 : index
    %c1_26 = arith.constant 1 : index
    %c0_27 = arith.constant 0 : index
    %43 = vector.load %arg10[%c3, %c1_26, %c0_27] : memref<9x9x16xf32, #tpu.memory_space<vmem>>, vector<1x7x16xf32>
    %44 = vector.shape_cast %43 : vector<1x7x16xf32> to vector<7x16xf32>
    %45 = vector.shape_cast %42 : vector<7x16xf32> to vector<1x7x16xf32>
    tpu.vector_store %arg10[%c3, %c1_26, %c0_27], %45 {strides = array<i32>} : memref<9x9x16xf32, #tpu.memory_space<vmem>>, vector<1x7x16xf32>,
    %46 = vector.extract_strided_slice %31 {offsets = [21, 0], sizes = [7, 16], strides = [1, 1]} : vector<49x16xf32> to vector<7x16xf32>
    %c4 = arith.constant 4 : index
    %c1_28 = arith.constant 1 : index
    %c0_29 = arith.constant 0 : index
    %47 = vector.load %arg10[%c4, %c1_28, %c0_29] : memref<9x9x16xf32, #tpu.memory_space<vmem>>, vector<1x7x16xf32>
    %48 = vector.shape_cast %47 : vector<1x7x16xf32> to vector<7x16xf32>
    %49 = vector.shape_cast %46 : vector<7x16xf32> to vector<1x7x16xf32>
    tpu.vector_store %arg10[%c4, %c1_28, %c0_29], %49 {strides = array<i32>} : memref<9x9x16xf32, #tpu.memory_space<vmem>>, vector<1x7x16xf32>,
    %50 = vector.extract_strided_slice %31 {offsets = [28, 0], sizes = [7, 16], strides = [1, 1]} : vector<49x16xf32> to vector<7x16xf32>
    %c5 = arith.constant 5 : index
    %c1_30 = arith.constant 1 : index
    %c0_31 = arith.constant 0 : index
    %51 = vector.load %arg10[%c5, %c1_30, %c0_31] : memref<9x9x16xf32, #tpu.memory_space<vmem>>, vector<1x7x16xf32>
    %52 = vector.shape_cast %51 : vector<1x7x16xf32> to vector<7x16xf32>
    %53 = vector.shape_cast %50 : vector<7x16xf32> to vector<1x7x16xf32>
    tpu.vector_store %arg10[%c5, %c1_30, %c0_31], %53 {strides = array<i32>} : memref<9x9x16xf32, #tpu.memory_space<vmem>>, vector<1x7x16xf32>,
    %54 = vector.extract_strided_slice %31 {offsets = [35, 0], sizes = [7, 16], strides = [1, 1]} : vector<49x16xf32> to vector<7x16xf32>
    %c6 = arith.constant 6 : index
    %c1_32 = arith.constant 1 : index
    %c0_33 = arith.constant 0 : index
    %55 = vector.load %arg10[%c6, %c1_32, %c0_33] : memref<9x9x16xf32, #tpu.memory_space<vmem>>, vector<1x7x16xf32>
    %56 = vector.shape_cast %55 : vector<1x7x16xf32> to vector<7x16xf32>
    %57 = vector.shape_cast %54 : vector<7x16xf32> to vector<1x7x16xf32>
    tpu.vector_store %arg10[%c6, %c1_32, %c0_33], %57 {strides = array<i32>} : memref<9x9x16xf32, #tpu.memory_space<vmem>>, vector<1x7x16xf32>,
    %58 = vector.extract_strided_slice %31 {offsets = [42, 0], sizes = [7, 16], strides = [1, 1]} : vector<49x16xf32> to vector<7x16xf32>
    %c7 = arith.constant 7 : index
    %c1_34 = arith.constant 1 : index
    %c0_35 = arith.constant 0 : index
    %59 = vector.load %arg10[%c7, %c1_34, %c0_35] : memref<9x9x16xf32, #tpu.memory_space<vmem>>, vector<1x7x16xf32>
    %60 = vector.shape_cast %59 : vector<1x7x16xf32> to vector<7x16xf32>
    %61 = vector.shape_cast %58 : vector<7x16xf32> to vector<1x7x16xf32>
    tpu.vector_store %arg10[%c7, %c1_34, %c0_35], %61 {strides = array<i32>} : memref<9x9x16xf32, #tpu.memory_space<vmem>>, vector<1x7x16xf32>,
    %c0_36 = arith.constant 0 : index
    %c0_37 = arith.constant 0 : index
    %c0_38 = arith.constant 0 : index
    %62 = vector.load %arg10[%c0_36, %c0_37, %c0_38] : memref<9x9x16xf32, #tpu.memory_space<vmem>>, vector<9x9x16xf32>
    %63 = vector.extract_strided_slice %62 {offsets = [0, 0, 0], sizes = [7, 7, 16], strides = [1, 1, 1]} : vector<9x9x16xf32> to vector<7x7x16xf32>
    %64 = vector.shape_cast %63 : vector<7x7x16xf32> to vector<49x16xf32>
    %65 = vector.extract_strided_slice %62 {offsets = [0, 1, 0], sizes = [7, 7, 16], strides = [1, 1, 1]} : vector<9x9x16xf32> to vector<7x7x16xf32>
    %66 = vector.shape_cast %65 : vector<7x7x16xf32> to vector<49x16xf32>
    %67 = vector.extract_strided_slice %62 {offsets = [0, 2, 0], sizes = [7, 7, 16], strides = [1, 1, 1]} : vector<9x9x16xf32> to vector<7x7x16xf32>
    %68 = vector.shape_cast %67 : vector<7x7x16xf32> to vector<49x16xf32>
    %69 = vector.extract_strided_slice %62 {offsets = [1, 0, 0], sizes = [7, 7, 16], strides = [1, 1, 1]} : vector<9x9x16xf32> to vector<7x7x16xf32>
    %70 = vector.shape_cast %69 : vector<7x7x16xf32> to vector<49x16xf32>
    %71 = vector.extract_strided_slice %62 {offsets = [1, 1, 0], sizes = [7, 7, 16], strides = [1, 1, 1]} : vector<9x9x16xf32> to vector<7x7x16xf32>
    %72 = vector.shape_cast %71 : vector<7x7x16xf32> to vector<49x16xf32>
    %73 = vector.extract_strided_slice %62 {offsets = [1, 2, 0], sizes = [7, 7, 16], strides = [1, 1, 1]} : vector<9x9x16xf32> to vector<7x7x16xf32>
    %74 = vector.shape_cast %73 : vector<7x7x16xf32> to vector<49x16xf32>
    %75 = vector.extract_strided_slice %62 {offsets = [2, 0, 0], sizes = [7, 7, 16], strides = [1, 1, 1]} : vector<9x9x16xf32> to vector<7x7x16xf32>
    %76 = vector.shape_cast %75 : vector<7x7x16xf32> to vector<49x16xf32>
    %77 = vector.extract_strided_slice %62 {offsets = [2, 1, 0], sizes = [7, 7, 16], strides = [1, 1, 1]} : vector<9x9x16xf32> to vector<7x7x16xf32>
    %78 = vector.shape_cast %77 : vector<7x7x16xf32> to vector<49x16xf32>
    %79 = vector.extract_strided_slice %62 {offsets = [2, 2, 0], sizes = [7, 7, 16], strides = [1, 1, 1]} : vector<9x9x16xf32> to vector<7x7x16xf32>
    %80 = vector.shape_cast %79 : vector<7x7x16xf32> to vector<49x16xf32>
    %81 = tpu.concatenate %64, %66, %68, %70, %72, %74, %76, %78, %80 in 1 : vector<49x16xf32>, vector<49x16xf32>, vector<49x16xf32>, vector<49x16xf32>, vector<49x16xf32>, vector<49x16xf32>, vector<49x16xf32>, vector<49x16xf32>, vector<49x16xf32> -> vector<49x144xf32>
    %c0_39 = arith.constant 0 : index
    %c0_40 = arith.constant 0 : index
    %82 = vector.load %arg4[%c0_39, %c0_40] : memref<144x512xf32, #tpu.memory_space<vmem>>, vector<144x512xf32>
    %cst_41 = arith.constant dense<0.000000e+00> : vector<49x512xf32>
    %83 = tpu.matmul %81, %82, %cst_41 {dimension_numbers = #tpu.dot_dimension_numbers<[1], [0], [0], [1], [0, 0, 1, 1], [], []>} : vector<49x144xf32>, vector<144x512xf32>, vector<49x512xf32> -> vector<49x512xf32>
    %c0_42 = arith.constant 0 : index
    %c0_43 = arith.constant 0 : index
    %84 = vector.load %arg5[%c0_42, %c0_43] : memref<1x512xf32, #tpu.memory_space<vmem>>, vector<1x512xf32>
    %85 = vector.broadcast %84 : vector<1x512xf32> to vector<49x512xf32>
    %86 = arith.addf %83, %85 : vector<49x512xf32>
    %cst_44 = arith.constant 0.000000e+00 : f32
    %87 = vector.broadcast %cst_44 : f32 to vector<49x512xf32>
    %88 = arith.maximumf %86, %87 : vector<49x512xf32>
    %cst_45 = arith.constant dense<0.000000e+00> : vector<512xf32>
    %89 = vector.multi_reduction <add>, %88, %cst_45 [0] : vector<49x512xf32> to vector<512xf32>
    %90 = vector.shape_cast %89 : vector<512xf32> to vector<1x512xf32>
    %cst_46 = arith.constant 4.900000e+01 : f32
    %91 = vector.broadcast %cst_46 : f32 to vector<1x512xf32>
    %92 = arith.divf %90, %91 : vector<1x512xf32>
    %c0_47 = arith.constant 0 : index
    %c0_48 = arith.constant 0 : index
    %93 = vector.load %arg6[%c0_47, %c0_48] : memref<512x7xf32, #tpu.memory_space<vmem>>, vector<512x7xf32>
    %cst_49 = arith.constant dense<0.000000e+00> : vector<1x7xf32>
    %94 = tpu.matmul %92, %93, %cst_49 {dimension_numbers = #tpu.dot_dimension_numbers<[1], [0], [0], [1], [0, 0, 1, 1], [], []>} : vector<1x512xf32>, vector<512x7xf32>, vector<1x7xf32> -> vector<1x7xf32>
    %c0_50 = arith.constant 0 : index
    %c0_51 = arith.constant 0 : index
    %95 = vector.load %arg7[%c0_50, %c0_51] : memref<1x7xf32, #tpu.memory_space<vmem>>, vector<1x7xf32>
    %96 = arith.addf %94, %95 : vector<1x7xf32>
    %97 = vector.shape_cast %96 : vector<1x7xf32> to vector<1x1x7xf32>
    %c0_52 = arith.constant 0 : index
    %c0_53 = arith.constant 0 : index
    %c0_54 = arith.constant 0 : index
    %98 = vector.load %arg8[%c0_52, %c0_53, %c0_54] : memref<1x1x7xf32, #tpu.memory_space<vmem>>, vector<1x1x7xf32>
    tpu.vector_store %arg8[%c0_52, %c0_53, %c0_54], %97 {strides = array<i32>} : memref<1x1x7xf32, #tpu.memory_space<vmem>>, vector<1x1x7xf32>,
    return
  }
  func.func @transform_0(%arg0: i32) -> (i32, i32, i32, i32) {
    %c0_i32 = arith.constant 0 : i32
    %c0_i32_0 = arith.constant 0 : i32
    %c0_i32_1 = arith.constant 0 : i32
    %c0_i32_2 = arith.constant 0 : i32
    return %arg0, %c0_i32, %c0_i32_0, %c0_i32_1 : i32, i32, i32, i32
  }
  func.func @transform_1(%arg0: i32) -> (i32, i32) {
    %c0_i32 = arith.constant 0 : i32
    %c0_i32_0 = arith.constant 0 : i32
    %c0_i32_1 = arith.constant 0 : i32
    return %c0_i32, %c0_i32_0 : i32, i32
  }
  func.func @transform_2(%arg0: i32) -> (i32, i32) {
    %c0_i32 = arith.constant 0 : i32
    %c0_i32_0 = arith.constant 0 : i32
    %c0_i32_1 = arith.constant 0 : i32
    return %c0_i32, %c0_i32_0 : i32, i32
  }
  func.func @transform_3(%arg0: i32) -> (i32, i32) {
    %c0_i32 = arith.constant 0 : i32
    %c0_i32_0 = arith.constant 0 : i32
    %c0_i32_1 = arith.constant 0 : i32
    return %c0_i32, %c0_i32_0 : i32, i32
  }
  func.func @transform_4(%arg0: i32) -> (i32, i32) {
    %c0_i32 = arith.constant 0 : i32
    %c0_i32_0 = arith.constant 0 : i32
    %c0_i32_1 = arith.constant 0 : i32
    return %c0_i32, %c0_i32_0 : i32, i32
  }
  func.func @transform_5(%arg0: i32) -> (i32, i32) {
    %c0_i32 = arith.constant 0 : i32
    %c0_i32_0 = arith.constant 0 : i32
    %c0_i32_1 = arith.constant 0 : i32
    return %c0_i32, %c0_i32_0 : i32, i32
  }
  func.func @transform_6(%arg0: i32) -> (i32, i32) {
    %c0_i32 = arith.constant 0 : i32
    %c0_i32_0 = arith.constant 0 : i32
    %c0_i32_1 = arith.constant 0 : i32
    return %c0_i32, %c0_i32_0 : i32, i32
  }
  func.func @transform_7(%arg0: i32) -> (i32, i32, i32) {
    %c0_i32 = arith.constant 0 : i32
    %c0_i32_0 = arith.constant 0 : i32
    %c0_i32_1 = arith.constant 0 : i32
    return %arg0, %c0_i32, %c0_i32_0 : i32, i32, i32
  }
}

</mosaic_0001>

<bundles_post_ra>
// kernel: vgg_forward.1
= control target key start
LH: loop header
LB: loop body
LE: loop exit
PB: predicated region body
PF: predicated region fallthrough
CT: control target
= control target key end

     0   :  { %12 = vsyncpa [#allocation5], 0  ;;  %s9050_s0 = inlined_call_operand.vmem [shape: f32[2,7,7,3], index: 0, kind: input, shape index: {}]   ;;  %s9051_s1 = inlined_call_operand.vmem [shape: f32[27,16], index: 1, kind: input, shape index: {}]   ;;  %s9052_s2 = inlined_call_operand.vmem [shape: f32[1,16], index: 2, kind: input, shape index: {}]   ;;  %s9053_s3 = inlined_call_operand.vmem [shape: f32[144,512], index: 3, kind: input, shape index: {}]   ;;  %s9054_s4 = inlined_call_operand.vmem [shape: f32[1,512], index: 4, kind: input, shape index: {}]   ;;  %s9055_s5 = inlined_call_operand.vmem [shape: f32[512,7], index: 5, kind: input, shape index: {}]   ;;  %s9056_s6 = inlined_call_operand.vmem [shape: f32[1,7], index: 6, kind: input, shape index: {}]   ;;  %s9057_s7 = inlined_call_operand.hbm [shape: f32[2,1,7], index: 7, kind: output, shape index: {}]  }
   0x1   :  { %14 = vsyncpa [#allocation5 + $0x1], 0  ;;  %s6530_s24 = smov 0   ;;  %s6532_s25 = smov 0  }
   0x2   :  { %s6534_s26 = smov 0   ;;  %s6536_s27 = smov 0  }
   0x3 LB: > { %s6551_s28 = sadd.s32 4294967295, %s6469_s27   ;;  %s6036_s29 = sadd.s32 4294967294, %s6469_s27   ;;  %s6469_s27 = sphi %s6536_s27, %s9105_s27   ;;  %s6465_s26 = sphi %s6534_s26, %s9104_s26   ;;  %s6461_s25 = sphi %s6532_s25, %s9103_s25   ;;  %s6457_s24 = sphi %s6530_s24, %s9102_s24  }
   0x4   : > { %s6555_s30 = sadd.s32 1, %s6469_s27   ;;  %s179_s8 = sadd.s32 1, %s6465_s26 }
   0x5   : > { %s176_s9 = ssub.s32 %s6469_s27, %s6555_s30  ;;  %p189_p0 = scmp.ne.s32.totalorder %s6465_s26, %s6461_s25 }
   0x6   : > { %p177_p1 = scmp.eq.s32.totalorder %s176_s9, 0  ;;  %p190_p2 = scmp.eq.s32.totalorder %s6551_s28, 1 }
   0x7   : > { %p195_p3 = scmp.ne.s32.totalorder %s6461_s25, %s6457_s24  ;;  %p196_p4 = scmp.eq.s32.totalorder %s6036_s29, 1 }
   0x8   : > { %s6566_s10 = scalar_select %p177_p1, %s6465_s26, %s179_s8  }
   0x9   : > { %p6568_p5 = por %p190_p2, %p189_p0  ;;  %p6572_p6 = por %p196_p4, %p195_p3 }
   0xa   : > { %p6039_p7 = scmp.ge.s32.totalorder %s6469_s27, 1  ;;  %p240_p8 = scmp.lt.s32.totalorder %s6469_s27, 3 }
   0xc   : > { %p241_p9 = pnand %p6039_p7, %p240_p8 }
   0xe   : > { %244 = sbr.rel (%p241_p9) target bundleno = 1105 (0x451), region = 48 }
  0x13   : > { %p271_p10 = scmp.lt.s32.totalorder %s6551_s28, 1  ;;  %vm276_vm0 = vcmask 23552   ;;  %v6471_v0 = vmov 0.0   ;;  %v6472_v1 = vmov 1966171168   ;;  %v341_v3 = vlaneseq  ;;  %s6473_s18 = smov 3  }
  0x14   : > { %277 = vst.msk [vmem:[#allocation2] sm:$0xff] %vm276_vm0, %v6471_v0  ;;  %280 = vst.msk [vmem:[#allocation2 + $0x10] sm:$0xff] %vm276_vm0, %v6471_v0  ;;  %v339_v2 = vunpack.c.l.s4 %v6472_v1  ;;  %vm278_vm1 = vcmask 16384   ;;  %6202 = vmatprep.subr.mxu0 %v6471_v0  ;;  %vm304_vm2 = vcmask 22528   ;;  %s6474_s19 = smov 9   ;;  %s6475_s20 = smov 6  }
  0x15   : > { %282 = vst.msk [vmem:[#allocation2 + $0x20] sm:$0xff] %vm276_vm0, %v6471_v0  ;;  %284 = vst.msk [vmem:[#allocation2 + $0x30] sm:$0xff] %vm276_vm0, %v6471_v0  ;;  %s272_s13 = scalar_select %p271_p10, %s6551_s28, 1  ;;  %v6610_v5 = vshrl.u32 %v341_v3, 7  ;;  %vm2782_vm3 = vcmask 1042432   ;;  %vm6481_vm4 = vmmov 0  }
  0x16   : > { %286 = vst.msk [vmem:[#allocation2 + $0x40] sm:$0xff] %vm276_vm0, %v6471_v0  ;;  %288 = vst.msk [vmem:[#allocation2 + $0x50] sm:$0xff] %vm276_vm0, %v6471_v0  ;;  %v340_v4 = vunpack.c.0.s8 %v339_v2  ;;  %s6476_s21 = smov 15   ;;  %s6477_s22 = smov 18   ;;  %6210 = vmatprep.mubr.msk.f32.mxu0 %vm6481_vm4, %v6471_v0  ;;  %vm2693_vm5 = vcmask 48128   ;;  %vm2701_vm6 = vcmask 72704  }
  0x17   : > { %290 = vst.msk [vmem:[#allocation2 + $0x60] sm:$0xff] %vm276_vm0, %v6471_v0  ;;  %292 = vst.msk [vmem:[#allocation2 + $0x70] sm:$0xff] %vm276_vm0, %v6471_v0  ;;  %s6231_s14 = smul.u32 56, %s272_s13  ;;  %s6478_s23 = smov 24   ;;  %vm2709_vm7 = vcmask 97280   ;;  %vm2717_vm8 = vcmask 121856  }
  0x18   : > { %294 = vst.msk [vmem:[#allocation2 + $0x80] sm:$0xff] %vm276_vm0, %v6471_v0  ;;  %9070 = vst [vmem:[#allocation7_spill] sm:$0xff] %v6610_v5  ;;  %v6613_v6 = vsub.s32 %v340_v4, %v6610_v5  ;;  %s6479_s29 = smov 12   ;;  %s6480_s8 = smov 21   ;;  %vm2725_vm9 = vcmask 146432   ;;  %vm2733_vm10 = vcmask 171008  }
  0x19   : > { %279 = vst.msk [vmem:[#allocation2 + $0x8] sm:$0x1] %vm278_vm1, %v6471_v0  ;;  %281 = vst.msk [vmem:[#allocation2 + $0x18] sm:$0x1] %vm278_vm1, %v6471_v0  ;;  %s275_s17 = scalar_lea.vmem %s9050_s0, %s6231_s14  ;;  %vm2741_vm11 = vcmask 195584   ;;  %vm2760_vm12 = vcmask 220160  }
  0x1a   : > { %283 = vst.msk [vmem:[#allocation2 + $0x28] sm:$0x1] %vm278_vm1, %v6471_v0  ;;  %285 = vst.msk [vmem:[#allocation2 + $0x38] sm:$0x1] %vm278_vm1, %v6471_v0  ;;  %v296_v7 = vld [vmem:[%s275_s17] sm:$0x7f] }
  0x1b   : > { %287 = vst.msk [vmem:[#allocation2 + $0x48] sm:$0x1] %vm278_vm1, %v6471_v0  ;;  %289 = vst.msk [vmem:[#allocation2 + $0x58] sm:$0x1] %vm278_vm1, %v6471_v0  ;;  %v297_v8 = vld [vmem:[%s275_s17 + $0x8] sm:$0x7f] }
  0x1c   : > { %291 = vst.msk [vmem:[#allocation2 + $0x68] sm:$0x1] %vm278_vm1, %v6471_v0  ;;  %293 = vst.msk [vmem:[#allocation2 + $0x78] sm:$0x1] %vm278_vm1, %v6471_v0  ;;  %v298_v9 = vld [vmem:[%s275_s17 + $0x10] sm:$0x7f] }
  0x1d   : > { %295 = vst.msk [vmem:[#allocation2 + $0x88] sm:$0x1] %vm278_vm1, %v6471_v0  ;;  %v312_v10 = vld [vmem:[#allocation2] sm:$0xff]  ;;  %v299_v11 = vld [vmem:[%s275_s17 + $0x18] sm:$0x7f]  ;;  %vm2893_vm13 = vcmask 130048  }
  0x1e   : > { %305 = vst.msk [vmem:[#allocation2 + $0x11] sm:$0x7f] %vm304_vm2, %v296_v7  ;;  %306 = vst.msk [vmem:[#allocation2 + $0x21] sm:$0x7f] %vm304_vm2, %v297_v8  ;;  %v300_v12 = vld [vmem:[%s275_s17 + $0x20] sm:$0x7f]  ;;  %v337_v13 = vcombine.high %v312_v10, %v312_v10  ;;  %v344_v14 = vrot.slane %v312_v10, %v6613_v6 }
  0x1f   : > { %307 = vst.msk [vmem:[#allocation2 + $0x31] sm:$0x7f] %vm304_vm2, %v298_v9  ;;  %308 = vst.msk [vmem:[#allocation2 + $0x41] sm:$0x7f] %vm304_vm2, %v299_v11  ;;  %v301_v16 = vld [vmem:[%s275_s17 + $0x28] sm:$0x7f] }
  0x20   : > { %v6622_v15 = vld.sshfl [vmem:[#allocation2 + $0x8] sm:$0x1 pattern:$0x75316420]  ;;  %309 = vst.msk [vmem:[#allocation2 + $0x51] sm:$0x7f] %vm304_vm2, %v300_v12  ;;  %v351_v19 = vrot.slane %v337_v13, %v6613_v6  ;;  %v352_v20 = vcombine.high %v344_v14, %v344_v14  ;;  %v6629_v21 = vrot.slane %v344_v14, %v6613_v6 }
  0x21   : > { %v6042_v17 = vld.sshfl [vmem:[#allocation2 + $0x18] sm:$0x1 pattern:$0x75316420]  ;;  %310 = vst.msk [vmem:[#allocation2 + $0x61] sm:$0x7f] %vm304_vm2, %v301_v16  ;;  %v700_v24 = vrot.slane %v6622_v15, %v6613_v6 }
  0x22   : > { %v302_v18 = vld [vmem:[%s275_s17 + $0x30] sm:$0x7f]  ;;  %v6043_v22 = vld.sshfl [vmem:[#allocation2 + $0x28] sm:$0x1 pattern:$0x75316420]  ;;  %v6637_v25 = vrot.slane %v6042_v17, %v6613_v6  ;;  %v353_v28 = vcombine.high %v351_v19, %v351_v19  ;;  %v367_v29 = vrot.slane %v351_v19, %v6613_v6  ;;  %v6644_v30 = vrot.slane %v352_v20, %v6613_v6 }
  0x23   : > { %311 = vst.msk [vmem:[#allocation2 + $0x71] sm:$0x7f] %vm304_vm2, %v302_v18  ;;  %v6632_v23 = vld [vmem:[#allocation2 + $0x80] sm:$0xff]  ;;  %v6640_v26 = vrot.slane %v6043_v22, %v6613_v6  ;;  %v382_v31 = vcombine.high %v6629_v21, %v6629_v21  ;;  %vm2895_vm14 = vcmask 122880   ;;  %vm2914_vm15 = vcmask 129024   ;;  %s6483_s9 = smov 16  }
  0x24   : > { %v6044_v27 = vld.sshfl [vmem:[#allocation2 + $0x38] sm:$0x1 pattern:$0x75316420]  ;;  %v851_v35 = vcombine.high %v6632_v23, %v6632_v23  ;;  %v6658_v36 = vrot.slane %v6632_v23, %v6613_v6  ;;  %v381_v38 = vrot.slane %v353_v28, %v6613_v6  ;;  %v6661_v39 = vcombine.high %v367_v29, %v367_v29  ;;  %2897 = vst.msk [vmem:[#allocation3 + $0x10] sm:$0xff] %vm2893_vm13, %v6471_v0  ;;  %s6485_s17 = smov 64  }
  0x25   : > { %v6045_v32 = vld.sshfl [vmem:[#allocation2 + $0x48] sm:$0x1 pattern:$0x75316420]  ;;  %v6649_v33 = vrot.slane %v6044_v27, %v6613_v6  ;;  %v314_v37 = vld [vmem:[#allocation2 + $0x10] sm:$0xff]  ;;  %v384_v40 = vcombine.high %v6644_v30, %v6644_v30  ;;  %v1230_v41 = vcombine.low %v6644_v30, %v382_v31  ;;  %v316_v42 = vld [vmem:[#allocation2 + $0x20] sm:$0xff]  ;;  %v6050_v3 = vcombine.high %v6629_v21, %v6644_v30 }
  0x26   : > { %v6652_v34 = vrot.slane %v6045_v32, %v6613_v6  ;;  %v392_v43 = vrot.slane %v314_v37, %v6613_v6  ;;  %v385_v44 = vcombine.high %v314_v37, %v314_v37  ;;  %v433_v45 = vcombine.high %v316_v42, %v316_v42  ;;  %2899 = vst.msk [vmem:[#allocation3 + $0x20] sm:$0xff] %vm2893_vm13, %v6471_v0  ;;  %s6488_s16 = smov 96   ;;  %s6118_s15 = sshll.u32 %s6551_s28, 4 }
  0x27   : > { %v440_v46 = vrot.slane %v316_v42, %v6613_v6  ;;  %v673_v47 = vcombine.high %v381_v38, %v381_v38  ;;  %v1231_v48 = vcombine.low %v384_v40, %v367_v29  ;;  %v1232_v49 = vcombine.low %v381_v38, %v6661_v39  ;;  %2894 = vst.msk [vmem:[#allocation3] sm:$0xff] %vm2893_vm13, %v6471_v0 }
  0x28   : > { %v1240_v50 = vrot.slane %v1230_v41, %v6613_v6  ;;  %v400_v51 = vcombine.high %v392_v43, %v392_v43  ;;  %v6671_v52 = vrot.slane %v392_v43, %v6613_v6  ;;  %v399_v53 = vrot.slane %v385_v44, %v6613_v6  ;;  %2901 = vst.msk [vmem:[#allocation3 + $0x30] sm:$0xff] %vm2893_vm13, %v6471_v0 }
  0x29   : > { %v6675_v54 = vrot.slane %v433_v45, %v6613_v6  ;;  %v1247_v55 = vrot.slane %v1231_v48, %v6613_v6  ;;  %v1254_v56 = vrot.slane %v1232_v49, %v6613_v6  ;;  %v448_v57 = vcombine.high %v440_v46, %v440_v46  ;;  %2903 = vst.msk [vmem:[#allocation3 + $0x40] sm:$0xff] %vm2893_vm13, %v6471_v0 }
  0x2a   : > { %v6680_v58 = vrot.slane %v440_v46, %v6613_v6  ;;  %v6683_v59 = vrot.slane %v400_v51, %v6613_v6  ;;  %v918_v60 = vcombine.low %v6661_v39, %v6671_v52  ;;  %v401_v61 = vcombine.high %v399_v53, %v399_v53  ;;  %2905 = vst.msk [vmem:[#allocation3 + $0x50] sm:$0xff] %vm2893_vm13, %v6471_v0 }
  0x2b   : > { %v6688_v62 = vrot.slane %v399_v53, %v6613_v6  ;;  %v1262_v63 = vcombine.low %v1240_v50, %v1247_v55  ;;  %v6691_v1 = vrot.slane %v448_v57, %v6613_v6  ;;  %v6695_v2 = vcombine.high %v6671_v52, %v6671_v52  ;;  %v318_v53 = vld [vmem:[#allocation2 + $0x30] sm:$0xff]  ;;  %2907 = vst.msk [vmem:[#allocation3 + $0x60] sm:$0xff] %vm2893_vm13, %v6471_v0 }
  0x2c   : > { %v1233_v4 = vcombine.low %v673_v47, %v6683_v59  ;;  %v6701_v7 = vrot.slane %v401_v61, %v6613_v6  ;;  %v6054_v9 = vcombine.high %v6671_v52, %v6683_v59  ;;  %v1776_v11 = vcombine.low %v6671_v52, %v6683_v59  ;;  %2909 = vst.msk [vmem:[#allocation3 + $0x70] sm:$0xff] %vm2893_vm13, %v6471_v0 }
  0x2d   : > { %v6705_v8 = vcombine.high %v6688_v62, %v6688_v62  ;;  %v1270_v10 = vrot.slane %v1262_v63, %v6613_v6  ;;  %v917_v12 = vcombine.low %v367_v29, %v381_v38  ;;  %v6713_v13 = vrot.slane %v6050_v3, %v6613_v6  ;;  %2911 = vst.msk [vmem:[#allocation3 + $0x80] sm:$0xff] %vm2893_vm13, %v6471_v0 }
  0x2e   : > { %v1261_v14 = vrot.slane %v1233_v4, %v6613_v6  ;;  %v1280_v15 = vcombine.low %v6688_v62, %v6701_v7  ;;  %v1289_v16 = vrot.slane %v6054_v9, %v6613_v6  ;;  %v1784_v18 = vrot.slane %v1776_v11, %v6613_v6  ;;  %2908 = vst.msk [vmem:[#allocation3 + $0x68] sm:$0x1] %vm2895_vm14, %v6471_v0 }
  0x2f   : > { %v1777_v17 = vcombine.low %v6705_v8, %v6680_v58  ;;  %v966_v19 = vcombine.low %v6701_v7, %v6705_v8  ;;  %v6725_v20 = vrot.slane %v917_v12, %v6613_v6  ;;  %v6060_v22 = vcombine.high %v367_v29, %v381_v38  ;;  %2896 = vst.msk [vmem:[#allocation3 + $0x8] sm:$0x1] %vm2895_vm14, %v6471_v0 }
  0x30   : > { %v1263_v27 = vcombine.low %v1254_v56, %v1261_v14  ;;  %v1296_v28 = vrot.slane %v1280_v15, %v6613_v6  ;;  %v1560_v32 = vcombine.low %v700_v24, %v6695_v2  ;;  %v1792_v37 = vcombine.low %v1784_v18, %v1289_v16  ;;  %2898 = vst.msk [vmem:[#allocation3 + $0x18] sm:$0x1] %vm2895_vm14, %v6471_v0 }
  0x31   : > { %v1791_v31 = vrot.slane %v1777_v17, %v6613_v6  ;;  %v1567_v40 = vrot.slane %v6060_v22, %v6613_v6  ;;  %v1575_v41 = vcombine.low %v6713_v13, %v6725_v20  ;;  %v478_v42 = vcombine.high %v6680_v58, %v6680_v58  ;;  %2900 = vst.msk [vmem:[#allocation3 + $0x28] sm:$0x1] %vm2895_vm14, %v6471_v0 }
  0x32   : > { %v1277_v43 = vrot.slane %v1263_v27, %v6613_v6  ;;  %v1574_v29 = vrot.slane %v1560_v32, %v6613_v6  ;;  %v6055_v38 = vcombine.high %v6688_v62, %v6701_v7  ;;  %v1800_v45 = vrot.slane %v1792_v37, %v6613_v6  ;;  %2902 = vst.msk [vmem:[#allocation3 + $0x38] sm:$0x1] %vm2895_vm14, %v6471_v0 }
  0x33   : > { %v1793_v44 = vcombine.low %v1296_v28, %v1791_v31  ;;  %v1583_v24 = vrot.slane %v1575_v41, %v6613_v6  ;;  %v1311_v46 = vcombine.low %v1289_v16, %v1296_v28  ;;  %v2130_v47 = vcombine.low %v6637_v25, %v478_v42  ;;  %2904 = vst.msk [vmem:[#allocation3 + $0x48] sm:$0x1] %vm2895_vm14, %v6471_v0 }
  0x34   : > { %v1278_v48 = vcombine.low %v1270_v10, %v1277_v43  ;;  %v1576_v50 = vcombine.low %v1567_v40, %v1574_v29  ;;  %v1303_v51 = vrot.slane %v6055_v38, %v6613_v6  ;;  %v1282_v57 = vcombine.low %v6691_v1, %v478_v42  ;;  %2906 = vst.msk [vmem:[#allocation3 + $0x58] sm:$0x1] %vm2895_vm14, %v6471_v0 }
  0x35   : > { %v1807_v49 = vrot.slane %v1793_v44, %v6613_v6  ;;  %v1319_v55 = vrot.slane %v1311_v46, %v6613_v6  ;;  %v2137_v56 = vrot.slane %v2130_v47, %v6613_v6  ;;  %v449_v61 = vcombine.high %v6675_v54, %v6675_v54  ;;  %2910 = vst.msk [vmem:[#allocation3 + $0x78] sm:$0x1] %vm2895_vm14, %v6471_v0 }
  0x36   : > { %1538 = vrot.lane.b32.xlu0 %v1278_v48, %s6473_s18  ;;  %v1590_v3 = vrot.slane %v1576_v50, %v6613_v6  ;;  %v463_v4 = vrot.slane %v6675_v54, %v6613_v6  ;;  %v481_v9 = vcombine.high %v318_v53, %v318_v53  ;;  %v1310_v11 = vrot.slane %v1282_v57, %v6613_v6 }
  0x37   : > { %v1808_v63 = vcombine.low %v1800_v45, %v1807_v49  ;;  %v2138_v10 = vcombine.low %v1303_v51, %v2137_v56  ;;  %v6755_v12 = vrot.slane %v449_v61, %v6613_v6  ;;  %v488_v14 = vrot.slane %v318_v53, %v6613_v6  ;;  %2912 = vst.msk [vmem:[#allocation3 + $0x88] sm:$0x1] %vm2895_vm14, %v6471_v0 }
  0x38   : > { %v1591_v15 = vcombine.low %v1583_v24, %v1590_v3  ;;  %v479_v16 = vcombine.high %v463_v4, %v463_v4  ;;  %v967_v17 = vcombine.low %v6680_v58, %v6691_v1  ;;  %v6051_v54 = vcombine.high %v6680_v58, %v6691_v1 }
  0x39   : > { %1964 = vrot.lane.b32.xlu1 %v1808_v63, %s6474_s19  ;;  %v2145_v18 = vrot.slane %v2138_v10, %v6613_v6  ;;  %v1312_v22 = vcombine.low %v1303_v51, %v1310_v11  ;;  %v496_v27 = vcombine.high %v488_v14, %v488_v14  ;;  %v6765_v28 = vrot.slane %v488_v14, %v6613_v6 }
  0x3a   : > { %1755 = vrot.lane.b32.xlu0 %v1591_v15, %s6475_s20  ;;  %v6769_v31 = vrot.slane %v967_v17, %v6613_v6  ;;  %v1014_v32 = vcombine.low %v463_v4, %v6755_v12  ;;  %v6773_v37 = vrot.slane %v6051_v54, %v6613_v6  ;;  %v480_v58 = vcombine.high %v6691_v1, %v6691_v1 }
  0x3b   : > { %v2146_v40 = vcombine.low %v1319_v55, %v2145_v18  ;;  %v1326_v41 = vrot.slane %v1312_v22, %v6613_v6  ;;  %v1015_v42 = vcombine.low %v479_v16, %v6765_v28  ;;  %v6780_v43 = vrot.slane %v496_v27, %v6613_v6  ;;  %v6823_v18 = vld [vmem:[#allocation2 + $0x40] sm:$0xff] }
  0x3c   : > { %v1030_v44 = vrot.slane %v1014_v32, %v6613_v6  ;;  %v2283_v29 = vcombine.low %v6769_v31, %v6773_v37  ;;  %v1328_v38 = vcombine.low %v480_v58, %v463_v4  ;;  %v1329_v45 = vcombine.low %v6755_v12, %v479_v16 }
  0x3d   : > { %2262 = vrot.lane.b32.xlu1 %v2146_v40, %s6476_s21  ;;  %v1327_v24 = vcombine.low %v1319_v55, %v1326_v41  ;;  %v6788_v46 = vrot.slane %v1015_v42, %v6613_v6  ;;  %v1809_v47 = vcombine.low %v6765_v28, %v6780_v43  ;;  %v526_v48 = vcombine.high %v6765_v28, %v6765_v28 }
  0x3e   : > { %v2291_v49 = vrot.slane %v2283_v29, %v6613_v6  ;;  %v6796_v50 = vrot.slane %v1328_v38, %v6613_v6  ;;  %v6799_v51 = vrot.slane %v1329_v45, %v6613_v6  ;;  %v1045_v53 = vcombine.low %v6773_v37, %v1030_v44 }
  0x3f   : > { %1540 = vrot.lane.b32.xlu0 %v1327_v24, %s6473_s18  ;;  %v2284_v55 = vcombine.low %v1030_v44, %v6788_v46  ;;  %v1816_v56 = vrot.slane %v1809_v47, %v6613_v6  ;;  %v6061_v57 = vcombine.high %v463_v4, %v6755_v12  ;;  %v1618_v61 = vcombine.low %v6640_v26, %v526_v48 }
  0x40   : > { %v1817_v63 = vcombine.low %v1310_v11, %v6796_v50  ;;  %v6809_v3 = vrot.slane %v1045_v53, %v6613_v6  ;;  %v1016_v10 = vcombine.low %v6780_v43, %v526_v48  ;;  %v495_v14 = vrot.slane %v481_v9, %v6613_v6 }
  0x41   : > { %v2298_v15 = vrot.slane %v2284_v55, %v6613_v6  ;;  %v1818_v16 = vcombine.low %v6799_v51, %v1816_v56  ;;  %v1625_v17 = vrot.slane %v6061_v57, %v6613_v6  ;;  %v1632_v54 = vrot.slane %v1618_v61, %v6613_v6 }
  0x42   : > { %v6818_v4 = vrot.slane %v1817_v63, %v6613_v6  ;;  %v6821_v11 = vrot.slane %v1016_v10, %v6613_v6  ;;  %v497_v22 = vcombine.high %v495_v14, %v495_v14  ;;  %v511_v27 = vrot.slane %v495_v14, %v6613_v6 }
  0x43   : > { %v2299_v9 = vcombine.low %v2291_v49, %v2298_v15  ;;  %v1832_v32 = vrot.slane %v1818_v16, %v6613_v6  ;;  %v2565_v58 = vcombine.low %v1625_v17, %v1632_v54  ;;  %v528_v40 = vcombine.high %v6780_v43, %v6780_v43 }
  0x44   : > { %v2002_v41 = vcombine.low %v1625_v17, %v6821_v11  ;;  %v6831_v42 = vrot.slane %v497_v22, %v6613_v6  ;;  %v527_v29 = vcombine.high %v511_v27, %v511_v27  ;;  %v529_v38 = vcombine.high %v6823_v18, %v6823_v18 }
  0x45   : > { %2415 = vrot.lane.b32.xlu1 %v2299_v9, %s6477_s22  ;;  %v1833_v45 = vcombine.low %v6818_v4, %v1832_v32  ;;  %v2572_v24 = vrot.slane %v2565_v58, %v6613_v6  ;;  %v536_v47 = vrot.slane %v6823_v18, %v6613_v6  ;;  %v1062_v48 = vcombine.low %v528_v40, %v511_v27 }
  0x46   : > { %v2009_v49 = vrot.slane %v2002_v41, %v6613_v6  ;;  %v1063_v53 = vcombine.low %v6831_v42, %v527_v29  ;;  %v1633_v55 = vcombine.low %v1030_v44, %v1625_v17  ;;  %v6056_v56 = vcombine.high %v6765_v28, %v6780_v43 }
  0x47   : > { %1966 = vrot.lane.b32.xlu0 %v1833_v45, %s6474_s19  ;;  %v2573_v57 = vcombine.low %v6809_v3, %v2572_v24  ;;  %v544_v61 = vcombine.high %v536_v47, %v536_v47  ;;  %v6847_v63 = vrot.slane %v536_v47, %v6613_v6  ;;  %v6850_v10 = vrot.slane %v1062_v48, %v6613_v6 }
  0x48   : > { %v2010_v14 = vcombine.low %v6809_v3, %v2009_v49  ;;  %v6854_v15 = vrot.slane %v1063_v53, %v6613_v6  ;;  %v1641_v44 = vrot.slane %v1633_v55, %v6613_v6  ;;  %v6858_v28 = vrot.slane %v6056_v56, %v6613_v6 }
  0x49   : > { %2665 = vrot.lane.b32.xlu1 %v2573_v57, %s6478_s23  ;;  %v6862_v16 = vrot.slane %v544_v61, %v6613_v6  ;;  %v2300_v17 = vcombine.low %v6821_v11, %v6850_v10  ;;  %v1634_v22 = vcombine.low %v1632_v54, %v6850_v10  ;;  %v6869_v9 = vcombine.high %v6847_v63, %v6847_v63 }
  0x4a   : > { %v1377_v32 = vcombine.low %v511_v27, %v6831_v42  ;;  %v6057_v58 = vcombine.high %v511_v27, %v6831_v42  ;;  %v1834_v40 = vcombine.low %v527_v29, %v6847_v63  ;;  %v432_v41 = vcombine.high %v6683_v59, %v6683_v59 }
  0x4b   : > { %2111 = vrot.lane.b32.xlu0 %v2010_v14, %s6479_s29  ;;  %v1064_v45 = vcombine.low %v6847_v63, %v6862_v16  ;;  %v2308_v54 = vrot.slane %v2300_v17, %v6613_v6  ;;  %v1648_v24 = vrot.slane %v1634_v22, %v6613_v6  ;;  %v1379_v47 = vcombine.low %v6862_v16, %v6869_v9 }
  0x4c   : > { %v6884_v27 = vrot.slane %v1377_v32, %v6613_v6  ;;  %v6887_v29 = vrot.slane %v6057_v58, %v6613_v6  ;;  %v1841_v48 = vrot.slane %v1834_v40, %v6613_v6  ;;  %v674_v49 = vcombine.high %v6701_v7, %v6701_v7 }
  0x4d   : > { %v6893_v53 = vrot.slane %v1064_v45, %v6613_v6  ;;  %v1649_v55 = vcombine.low %v1641_v44, %v1648_v24  ;;  %v6896_v56 = vrot.slane %v1379_v47, %v6613_v6  ;;  %v964_v57 = vcombine.low %v6683_v59, %v6695_v2 }
  0x4e   : > { %v1842_v61 = vcombine.low %v6858_v28, %v6884_v27  ;;  %v965_v14 = vcombine.low %v432_v41, %v6688_v62  ;;  %v6907_v17 = vrot.slane %v966_v19, %v6613_v6  ;;  %v1985_v22 = vcombine.low %v674_v49, %v6691_v1 }
  0x4f   : > { %v2301_v44 = vcombine.low %v6854_v15, %v6893_v53  ;;  %1759 = vrot.lane.b32.xlu0 %v1649_v55, %s6475_s20  ;;  %v2445_v59 = vcombine.low %v6887_v29, %v6896_v56  ;;  %v1843_v2 = vcombine.low %v1841_v48, %v6896_v56  ;;  %v974_v62 = vrot.slane %v964_v57, %v6613_v6 }
  0x50   : > { %v1850_v32 = vrot.slane %v1842_v61, %v6613_v6  ;;  %v981_v7 = vrot.slane %v965_v14, %v6613_v6  ;;  %v1992_v8 = vrot.slane %v1985_v22, %v6613_v6  ;;  %v1592_v1 = vcombine.low %v674_v49, %v6637_v25 }
  0x51   : > { %v2315_v19 = vrot.slane %v2301_v44, %v6613_v6  ;;  %v2452_v58 = vrot.slane %v2445_v59, %v6613_v6  ;;  %v1857_v40 = vrot.slane %v1843_v2, %v6613_v6  ;;  %v675_v41 = vcombine.high %v6755_v12, %v6755_v12 }
  0x52   : > { %v996_v45 = vcombine.low %v974_v62, %v981_v7  ;;  %v1993_v24 = vcombine.low %v6907_v17, %v1992_v8  ;;  %v1599_v47 = vrot.slane %v1592_v1, %v6613_v6  ;;  %v1600_v48 = vcombine.low %v981_v7, %v6907_v17 }
  0x53   : > { %v2316_v55 = vcombine.low %v2308_v54, %v2315_v19  ;;  %v2453_v57 = vcombine.low %v1850_v32, %v2452_v58  ;;  %v1858_v61 = vcombine.low %v1850_v32, %v1857_v40  ;;  %v1330_v25 = vcombine.low %v675_v41, %v6780_v43 }
  0x54   : > { %v6931_v49 = vrot.slane %v996_v45, %v6613_v6  ;;  %v2000_v14 = vrot.slane %v1993_v24, %v6613_v6  ;;  %v1601_v22 = vcombine.low %v1599_v47, %v6773_v37  ;;  %v1608_v12 = vrot.slane %v1600_v48, %v6613_v6 }
  0x55   : > { %2417 = vrot.lane.b32.xlu1 %v2316_v55, %s6477_s22  ;;  %1968 = vrot.lane.b32.xlu0 %v1858_v61, %s6474_s19  ;;  %v1352_v44 = vrot.slane %v1330_v25, %v6613_v6  ;;  %v1360_v54 = vcombine.low %v6796_v50, %v6799_v51  ;;  %v2147_v43 = vcombine.low %v675_v41, %v6640_v26  ;;  %vm2919_vm1 = vcmask 128000  }
  0x56   : > { %v2001_v59 = vcombine.low %v6931_v49, %v2000_v14  ;;  %v1615_v2 = vrot.slane %v1601_v22, %v6613_v6  ;;  %v676_v37 = vcombine.high %v6831_v42, %v6831_v42  ;;  %v6052_v62 = vcombine.high %v6847_v63, %v6862_v16  ;;  %v322_v22 = vld [vmem:[#allocation2 + $0x50] sm:$0xff] }
  0x57   : > { %v2436_v32 = vcombine.low %v6799_v51, %v1352_v44  ;;  %v1361_v7 = vcombine.low %v1352_v44, %v6858_v28  ;;  %v1368_v8 = vrot.slane %v1360_v54, %v6613_v6  ;;  %v2154_v50 = vrot.slane %v2147_v43, %v6613_v6 }
  0x58   : > { %v1616_v1 = vcombine.low %v1608_v12, %v1615_v2  ;;  %v6953_v26 = vrot.slane %v6052_v62, %v6613_v6  ;;  %v1094_v19 = vcombine.low %v6850_v10, %v6854_v15  ;;  %v2011_v42 = vcombine.low %v676_v37, %v6862_v16 }
  0x59   : > { %2546 = vrot.lane.b32.xlu1 %v2453_v57, %s6480_s8  ;;  %v2443_v51 = vrot.slane %v2436_v32, %v6613_v6  ;;  %v1375_v63 = vrot.slane %v1361_v7, %v6613_v6  ;;  %v2155_v58 = vcombine.low %v2154_v50, %v6858_v28  ;;  %v1650_v40 = vcombine.low %v676_v37, %v6649_v33 }
  0x5a   : > { %1757 = vrot.lane.b32.xlu0 %v1616_v1, %s6475_s20  ;;  %v6965_v41 = vrot.slane %v1094_v19, %v6613_v6  ;;  %v2018_v10 = vrot.slane %v2011_v42, %v6613_v6  ;;  %v543_v45 = vrot.slane %v529_v38, %v6613_v6  ;;  %v576_v24 = vcombine.high %v6862_v16, %v6862_v16 }
  0x5b   : > { %v2444_v47 = vcombine.low %v6818_v4, %v2443_v51  ;;  %v1376_v28 = vcombine.low %v1368_v8, %v1375_v63  ;;  %v2162_v48 = vrot.slane %v2155_v58, %v6613_v6  ;;  %v1657_v55 = vrot.slane %v1650_v40, %v6613_v6 }
  0x5c   : > { %v2019_v57 = vcombine.low %v2018_v10, %v6953_v26  ;;  %v559_v61 = vrot.slane %v543_v45, %v6613_v6  ;;  %v1409_v25 = vcombine.low %v6884_v27, %v6887_v29  ;;  %v2164_v18 = vcombine.low %v6649_v33, %v6869_v9 }
  0x5d   : > { %2109 = vrot.lane.b32.xlu1 %v2001_v59, %s6479_s29  ;;  %v2163_v38 = vcombine.low %v1368_v8, %v2162_v48  ;;  %v2574_v4 = vcombine.low %v1657_v55, %v6953_v26  ;;  %v545_v16 = vcombine.high %v543_v45, %v543_v45  ;;  %v1658_v14 = vcombine.low %v6854_v15, %v1657_v55 }
  0x5e   : > { %1542 = vrot.lane.b32.xlu0 %v1376_v28, %s6473_s18  ;;  %v2026_v12 = vrot.slane %v2019_v57, %v6613_v6  ;;  %v1380_v44 = vcombine.low %v576_v24, %v559_v61  ;;  %v6989_v54 = vrot.slane %v1409_v25, %v6613_v6  ;;  %v2171_v27 = vrot.slane %v2164_v18, %v6613_v6 }
  0x5f   : > { %v2581_v33 = vrot.slane %v2574_v4, %v6613_v6  ;;  %v573_v9 = vrot.slane %v545_v16, %v6613_v6  ;;  %v1666_v29 = vrot.slane %v1658_v14, %v6613_v6  ;;  %v575_v43 = vcombine.high %v559_v61, %v559_v61 }
  0x60   : > { %v2027_v15 = vcombine.low %v6965_v41, %v2026_v12  ;;  %v1408_v59 = vrot.slane %v1380_v44, %v6613_v6  ;;  %v577_v2 = vcombine.high %v322_v22, %v322_v22  ;;  %v584_v37 = vrot.slane %v322_v22, %v6613_v6 }
  0x61   : > { %2544 = vrot.lane.b32.xlu1 %v2444_v47, %s6480_s8  ;;  %v2582_v62 = vcombine.low %v6965_v41, %v2581_v33  ;;  %v1111_v32 = vcombine.low %v559_v61, %v573_v9  ;;  %v1426_v7 = vcombine.low %v573_v9, %v575_v43  ;;  %v677_v8 = vcombine.high %v573_v9, %v573_v9 }
  0x62   : > { %2113 = vrot.lane.b32.xlu0 %v2027_v15, %s6479_s29  ;;  %v1410_v50 = vcombine.low %v6896_v56, %v1408_v59  ;;  %v2172_v1 = vcombine.low %v2171_v27, %v1408_v59  ;;  %v592_v19 = vcombine.high %v584_v37, %v584_v37  ;;  %v600_v42 = vrot.slane %v584_v37, %v6613_v6 }
  0x63   : > { %v7004_v51 = vrot.slane %v1111_v32, %v6613_v6  ;;  %v7007_v63 = vrot.slane %v1426_v7, %v6613_v6  ;;  %v591_v58 = vrot.slane %v577_v2, %v6613_v6  ;;  %v6062_v40 = vcombine.high %v559_v61, %v573_v9 }
  0x64   : > { %v1424_v10 = vrot.slane %v1410_v50, %v6613_v6  ;;  %v2179_v45 = vrot.slane %v2172_v1, %v6613_v6  ;;  %v614_v24 = vrot.slane %v592_v19, %v6613_v6  ;;  %v622_v56 = vcombine.high %v600_v42, %v600_v42 }
  0x65   : > { %2264 = vrot.lane.b32.xlu1 %v2163_v38, %s6476_s21  ;;  %v1659_v47 = vcombine.low %v6953_v26, %v7004_v51  ;;  %v1112_v28 = vcombine.low %v575_v43, %v600_v42  ;;  %v1867_v48 = vcombine.low %v1408_v59, %v7007_v63  ;;  %v7018_v55 = vrot.slane %v591_v58, %v6613_v6 }
  0x66   : > { %v1425_v57 = vcombine.low %v6989_v54, %v1424_v10  ;;  %v2180_v61 = vcombine.low %v6989_v54, %v2179_v45  ;;  %v1113_v25 = vcombine.low %v614_v24, %v622_v56  ;;  %v6058_v18 = vcombine.high %v600_v42, %v614_v24 }
  0x67   : > { %v1673_v4 = vrot.slane %v1659_v47, %v6613_v6  ;;  %v7024_v16 = vrot.slane %v1112_v28, %v6613_v6  ;;  %v1859_v38 = vcombine.low %v600_v42, %v614_v24  ;;  %v7027_v14 = vrot.slane %v1867_v48, %v6613_v6 }
  0x68   : > { %1544 = vrot.lane.b32.xlu0 %v1425_v57, %s6473_s18  ;;  %v1135_v22 = vrot.slane %v1113_v25, %v6613_v6  ;;  %v7032_v12 = vrot.slane %v6058_v18, %v6613_v6  ;;  %v1427_v44 = vcombine.low %v677_v8, %v614_v24  ;;  %v624_v54 = vcombine.high %v614_v24, %v614_v24  ;;  %v2752_v25 = vld [vmem:[%s9051_s1 + $0x18] sm:$0x7] }
  0x69   : > { %2667 = vrot.lane.b32.xlu1 %v2582_v62, %s6478_s23  ;;  %v1674_v27 = vcombine.low %v1666_v29, %v1673_v4  ;;  %v1866_v33 = vrot.slane %v1859_v38, %v6613_v6  ;;  %v1683_v9 = vrot.slane %v6062_v40, %v6613_v6  ;;  %v1676_v43 = vcombine.low %v6652_v34, %v622_v56 }
  0x6a   : > { %v2317_v15 = vcombine.low %v7024_v16, %v1135_v22  ;;  %v1443_v59 = vrot.slane %v1427_v44, %v6613_v6  ;;  %v1114_v2 = vcombine.low %v624_v54, %v7018_v55  ;;  %v593_v37 = vcombine.high %v591_v58, %v591_v58  ;;  %6203 = vmatpush3.msk.msra.mxu0 %vm2782_vm3, %v2752_v25 }
  0x6b   : > { %v1868_v32 = vcombine.low %v1866_v33, %v7032_v12  ;;  %v2028_v7 = vcombine.low %v7004_v51, %v1683_v9  ;;  %v1690_v62 = vrot.slane %v1676_v43, %v6613_v6  ;;  %v2181_v29 = vcombine.low %v677_v8, %v6652_v34  ;;  %6204 = vmatprep.subr.mxu0 %v6471_v0 }
  0x6c   : > { %1761 = vrot.lane.b32.xlu0 %v1674_v27, %s6475_s20  ;;  %v2324_v50 = vrot.slane %v2317_v15, %v6613_v6  ;;  %v2454_v1 = vcombine.low %v1443_v59, %v7032_v12  ;;  %v1142_v19 = vrot.slane %v1114_v2, %v6613_v6  ;;  %v621_v42 = vrot.slane %v593_v37, %v6613_v6 }
  0x6d   : > { %2266 = vrot.lane.b32.xlu1 %v2180_v61, %s6476_s21  ;;  %v1882_v58 = vrot.slane %v1868_v32, %v6613_v6  ;;  %v2035_v40 = vrot.slane %v2028_v7, %v6613_v6  ;;  %v1458_v10 = vcombine.low %v7007_v63, %v1443_v59  ;;  %v2188_v34 = vrot.slane %v2181_v29, %v6613_v6  ;;  %v324_v61 = vld [vmem:[#allocation2 + $0x60] sm:$0xff] }
  0x6e   : > { %v2325_v8 = vcombine.low %v1673_v4, %v2324_v50  ;;  %v2461_v45 = vrot.slane %v2454_v1, %v6613_v6  ;;  %v1144_v24 = vcombine.low %v1135_v22, %v1142_v19  ;;  %v2583_v56 = vcombine.low %v1690_v62, %v1142_v19  ;;  %v2750_v50 = vld [vmem:[%s9051_s1 + $0x8] sm:$0xff] }
  0x6f   : > { %v1883_v47 = vcombine.low %v7027_v14, %v1882_v58  ;;  %v1429_v28 = vcombine.low %v7018_v55, %v621_v42  ;;  %v1466_v48 = vrot.slane %v1458_v10, %v6613_v6  ;;  %v2189_v57 = vcombine.low %v7007_v63, %v2188_v34 }
  0x70   : > { %v2462_v18 = vcombine.low %v7027_v14, %v2461_v45  ;;  %v7065_v4 = vrot.slane %v1144_v24, %v6613_v6  ;;  %v2590_v38 = vrot.slane %v2583_v56, %v6613_v6  ;;  %v623_v22 = vcombine.high %v7018_v55, %v7018_v55  ;;  %v2751_v14 = vld [vmem:[%s9051_s1 + $0x10] sm:$0xff]  ;;  %v2749_v56 = vld [vmem:[%s9051_s1] sm:$0xff] }
  0x71   : > { %2419 = vrot.lane.b32.xlu1 %v2325_v8, %s6477_s22  ;;  %1970 = vrot.lane.b32.xlu0 %v1883_v47, %s6474_s19  ;;  %v7073_v63 = vrot.slane %v1429_v28, %v6613_v6  ;;  %v2196_v44 = vrot.slane %v2189_v57, %v6613_v6  ;;  %v1691_v54 = vcombine.low %v1683_v9, %v1690_v62  ;;  %vm2922_vm2 = vcmask 130054  }
  0x72   : > { %v2036_v27 = vcombine.low %v2035_v40, %v7065_v4  ;;  %v2591_v33 = vcombine.low %v2035_v40, %v2590_v38  ;;  %v1160_v43 = vcombine.low %v621_v42, %v623_v22  ;;  %v632_v15 = vrot.slane %v324_v61, %v6613_v6  ;;  %6205 = vmatpush3.msra.mxu0 %v2751_v14 }
  0x73   : > { %v1459_v59 = vcombine.low %v7032_v12, %v7073_v63  ;;  %v1699_v2 = vrot.slane %v1691_v54, %v6613_v6  ;;  %v625_v37 = vcombine.high %v324_v61, %v324_v61  ;;  %v6059_v9 = vcombine.high %v7018_v55, %v621_v42  ;;  %6206 = vmatprep.subr.mxu0 %v6471_v0 }
  0x74   : > { %v7087_v32 = vrot.slane %v1160_v43, %v6613_v6  ;;  %v640_v7 = vcombine.high %v632_v15, %v632_v15  ;;  %v648_v62 = vrot.slane %v632_v15, %v6613_v6  ;;  %v678_v29 = vcombine.high %v621_v42, %v621_v42  ;;  %6207 = vmatpush3.msra.mxu0 %v2750_v50 }
  0x75   : > { %2548 = vrot.lane.b32.xlu1 %v2462_v18, %s6480_s8  ;;  %2115 = vrot.lane.b32.xlu0 %v2036_v27, %s6479_s29  ;;  %v1473_v55 = vrot.slane %v1459_v59, %v6613_v6  ;;  %v639_v12 = vrot.slane %v625_v37, %v6613_v6  ;;  %v7098_v1 = vrot.slane %v6059_v9, %v6613_v6  ;;  %v6046_v18 = vld.sshfl [vmem:[#allocation2 + $0x58] sm:$0x1 pattern:$0x75316420]  ;;  %vm2924_vm3 = vcmask 126976  }
  0x76   : > { %v1692_v58 = vcombine.low %v1142_v19, %v7087_v32  ;;  %v662_v42 = vrot.slane %v640_v7, %v6613_v6  ;;  %v670_v40 = vcombine.high %v648_v62, %v648_v62  ;;  %v1884_v10 = vcombine.low %v623_v22, %v648_v62  ;;  %6208 = vmatprep.subr.mxu0 %v6471_v0 }
  0x77   : > { %v1474_v34 = vcombine.low %v1466_v48, %v1473_v55  ;;  %v2197_v8 = vcombine.low %v2196_v44, %v1473_v55  ;;  %v641_v45 = vcombine.high %v639_v12, %v639_v12  ;;  %v7104_v24 = vrot.slane %v639_v12, %v6613_v6  ;;  %6209 = vmatpush3.msra.mxu0 %v2749_v56 }
  0x78   : > { %v1706_v47 = vrot.slane %v1692_v58, %v6613_v6  ;;  %v1161_v19 = vcombine.low %v648_v62, %v662_v42  ;;  %v6053_v28 = vcombine.high %v648_v62, %v662_v42  ;;  %v672_v57 = vcombine.high %v662_v42, %v662_v42 }
  0x79   : > { %2669 = vrot.lane.b32.xlu1 %v2591_v33, %s6478_s23  ;;  %1546 = vrot.lane.b32.xlu0 %v1474_v34, %s6473_s18  ;;  %v1476_v48 = vcombine.low %v662_v42, %v670_v40  ;;  %v1891_v61 = vrot.slane %v1884_v10, %v6613_v6  ;;  %v2463_v25 = vcombine.low %v7073_v63, %v7098_v1 }
  0x7a   : > { %v1707_v38 = vcombine.low %v1699_v2, %v1706_v47  ;;  %v7117_v22 = vrot.slane %v1161_v19, %v6613_v6  ;;  %v1184_v44 = vrot.slane %v6053_v28, %v6613_v6  ;;  %v1477_v54 = vcombine.low %v672_v57, %v7104_v24 }
  0x7b   : > { %v1492_v14 = vrot.slane %v1476_v48, %v6613_v6  ;;  %v1892_v27 = vcombine.low %v7073_v63, %v1891_v61  ;;  %v2470_v33 = vrot.slane %v2463_v25, %v6613_v6  ;;  %v669_v43 = vrot.slane %v641_v45, %v6613_v6  ;;  %v326_v61 = vld [vmem:[#allocation2 + $0x70] sm:$0xff] }
  0x7c   : > { %v2326_v15 = vcombine.low %v7117_v22, %v1184_v44  ;;  %v1499_v59 = vrot.slane %v1477_v54, %v6613_v6  ;;  %v2037_v2 = vcombine.low %v678_v29, %v662_v42  ;;  %v770_v37 = vrot.slane %v6046_v18, %v6613_v6 }
  0x7d   : > { %2268 = vrot.lane.b32.xlu1 %v2197_v8, %s6476_s21  ;;  %1763 = vrot.lane.b32.xlu0 %v1707_v38, %s6475_s20  ;;  %v1900_v9 = vrot.slane %v1892_v27, %v6613_v6  ;;  %v1163_v7 = vcombine.low %v7104_v24, %v669_v43  ;;  %v7134_v63 = vcombine.high %v7104_v24, %v7104_v24 }
  0x7e   : > { %v2333_v62 = vrot.slane %v2326_v15, %v6613_v6  ;;  %v1893_v50 = vcombine.low %v1492_v14, %v1499_v59  ;;  %v2044_v55 = vrot.slane %v2037_v2, %v6613_v6  ;;  %v1708_v12 = vcombine.low %v678_v29, %v770_v37 }
  0x7f   : > { %v7139_v58 = vrot.slane %v1163_v7, %v6613_v6  ;;  %v1478_v42 = vcombine.low %v669_v43, %v7134_v63  ;;  %v1507_v10 = vcombine.low %v7098_v1, %v1492_v14  ;;  %v2198_v34 = vcombine.low %v770_v37, %v670_v40 }
  0x80   : > { %v2334_v8 = vcombine.low %v1706_v47, %v2333_v62  ;;  %v1907_v45 = vrot.slane %v1893_v50, %v6613_v6  ;;  %v2045_v56 = vcombine.low %v7087_v32, %v2044_v55  ;;  %v1716_v19 = vrot.slane %v1708_v12, %v6613_v6  ;;  %v6047_v55 = vld.sshfl [vmem:[#allocation2 + $0x68] sm:$0x1 pattern:$0x75316420] }
  0x81   : > { %v1193_v28 = vcombine.low %v1184_v44, %v7139_v58  ;;  %v7148_v57 = vrot.slane %v1478_v42, %v6613_v6  ;;  %v1515_v29 = vrot.slane %v1507_v10, %v6613_v6  ;;  %v2205_v48 = vrot.slane %v2198_v34, %v6613_v6 }
  0x82   : > { %2421 = vrot.lane.b32.xlu1 %v2334_v8, %s6477_s22  ;;  %v1908_v40 = vcombine.low %v1900_v9, %v1907_v45  ;;  %v2471_v47 = vcombine.low %v2470_v33, %v1907_v45  ;;  %v2052_v25 = vrot.slane %v2045_v56, %v6613_v6  ;;  %v2592_v18 = vcombine.low %v7087_v32, %v1716_v19 }
  0x83   : > { %v7156_v38 = vrot.slane %v1193_v28, %v6613_v6  ;;  %v1508_v54 = vcombine.low %v1499_v59, %v7148_v57  ;;  %v2206_v14 = vcombine.low %v7098_v1, %v2205_v48  ;;  %v6063_v27 = vcombine.high %v7104_v24, %v669_v43 }
  0x84   : > { %1972 = vrot.lane.b32.xlu0 %v1908_v40, %s6474_s19  ;;  %v2599_v15 = vrot.slane %v2592_v18, %v6613_v6  ;;  %v1724_v2 = vcombine.low %v1716_v19, %v1184_v44  ;;  %v786_v37 = vcombine.high %v326_v61, %v326_v61  ;;  %v793_v33 = vrot.slane %v326_v61, %v6613_v6 }
  0x85   : > { %v2053_v9 = vcombine.low %v2052_v25, %v7156_v38  ;;  %v1522_v7 = vrot.slane %v1508_v54, %v6613_v6  ;;  %v2213_v62 = vrot.slane %v2206_v14, %v6613_v6  ;;  %v7168_v59 = vrot.slane %v6063_v27, %v6613_v6 }
  0x86   : > { %2550 = vrot.lane.b32.xlu1 %v2471_v47, %s6480_s8  ;;  %v2600_v1 = vcombine.low %v2599_v15, %v7156_v38  ;;  %v1732_v24 = vrot.slane %v1724_v2, %v6613_v6  ;;  %v800_v44 = vrot.slane %v786_v37, %v6613_v6  ;;  %v801_v50 = vcombine.high %v793_v33, %v793_v33 }
  0x87   : > { %v1523_v12 = vcombine.low %v1515_v29, %v1522_v7  ;;  %v2214_v42 = vcombine.low %v2213_v62, %v1522_v7  ;;  %v1725_v10 = vcombine.low %v7139_v58, %v7168_v59  ;;  %v809_v34 = vrot.slane %v793_v33, %v6613_v6 }
  0x88   : > { %2117 = vrot.lane.b32.xlu0 %v2053_v9, %s6479_s29  ;;  %v816_v8 = vrot.slane %v800_v44, %v6613_v6  ;;  %v823_v45 = vrot.slane %v801_v50, %v6613_v6  ;;  %v802_v56 = vcombine.high %v800_v44, %v800_v44  ;;  %v7180_v19 = vcombine.high %v669_v43, %v669_v43 }
  0x89   : > { %v1739_v28 = vrot.slane %v1725_v10, %v6613_v6  ;;  %v831_v48 = vcombine.high %v809_v34, %v809_v34  ;;  %v2335_v29 = vcombine.low %v7134_v63, %v809_v34  ;;  %v7185_v61 = vrot.slane %v6047_v55, %v6613_v6 }
  0x8a   : > { %2671 = vrot.lane.b32.xlu1 %v2600_v1, %s6478_s23  ;;  %v833_v40 = vcombine.high %v823_v45, %v823_v45  ;;  %v7189_v47 = vrot.slane %v802_v56, %v6613_v6  ;;  %v1909_v25 = vcombine.low %v809_v34, %v823_v45  ;;  %v6064_v18 = vcombine.high %v809_v34, %v823_v45 }
  0x8b   : > { %v1740_v54 = vcombine.low %v1732_v24, %v1739_v28  ;;  %v2054_v14 = vcombine.low %v823_v45, %v831_v48  ;;  %v2342_v43 = vrot.slane %v2335_v29, %v6613_v6  ;;  %v2472_v27 = vcombine.low %v7180_v19, %v823_v45 }
  0x8c   : > { %1548 = vrot.lane.b32.xlu0 %v1523_v12, %s6473_s18  ;;  %v2055_v15 = vcombine.low %v833_v40, %v816_v8  ;;  %v1911_v2 = vcombine.low %v816_v8, %v7189_v47  ;;  %v1918_v37 = vrot.slane %v1909_v25, %v6613_v6  ;;  %v1925_v33 = vrot.slane %v6064_v18, %v6613_v6 }
  0x8d   : > { %v2063_v9 = vrot.slane %v2054_v14, %v6613_v6  ;;  %v2343_v7 = vcombine.low %v7139_v58, %v2342_v43  ;;  %v2479_v62 = vrot.slane %v2472_v27, %v6613_v6  ;;  %v7200_v1 = vcombine.high %v816_v8, %v816_v8 }
  0x8e   : > { %2270 = vrot.lane.b32.xlu1 %v2214_v42, %s6476_s21  ;;  %v2070_v24 = vrot.slane %v2055_v15, %v6613_v6  ;;  %v1932_v44 = vrot.slane %v1911_v2, %v6613_v6  ;;  %v1933_v50 = vcombine.low %v7148_v57, %v1918_v37  ;;  %v2601_v55 = vcombine.low %v7185_v61, %v831_v48 }
  0x8f   : > { %v2351_v12 = vrot.slane %v2343_v7, %v6613_v6  ;;  %v2480_v10 = vcombine.low %v7148_v57, %v2479_v62  ;;  %v2056_v58 = vcombine.low %v7189_v47, %v7200_v1  ;;  %v2078_v34 = vcombine.low %v7168_v59, %v2063_v9 }
  0x90   : > { %1765 = vrot.lane.b32.xlu0 %v1740_v54, %s6475_s20  ;;  %v2344_v42 = vcombine.low %v2063_v9, %v2070_v24  ;;  %v1934_v45 = vcombine.low %v1925_v33, %v1932_v44  ;;  %v1941_v56 = vrot.slane %v1933_v50, %v6613_v6  ;;  %v2608_v28 = vrot.slane %v2601_v55, %v6613_v6 }
  0x91   : > { %v2487_v29 = vrot.slane %v2480_v10, %v6613_v6  ;;  %v7217_v48 = vrot.slane %v2056_v58, %v6613_v6  ;;  %v865_v57 = vrot.slane %v851_v35, %v6613_v6  ;;  %v866_v40 = vcombine.high %v6658_v36, %v6658_v36 }
  0x92   : > { %v2358_v25 = vrot.slane %v2344_v42, %v6613_v6  ;;  %v1948_v18 = vrot.slane %v1934_v45, %v6613_v6  ;;  %v2609_v54 = vcombine.low %v7168_v59, %v2608_v28  ;;  %v2215_v14 = vcombine.low %v7180_v19, %v7185_v61 }
  0x93   : > { %v2079_v43 = vcombine.low %v2070_v24, %v7217_v48  ;;  %v2086_v27 = vrot.slane %v2078_v34, %v6613_v6  ;;  %v1530_v23 = vrot.slane %v7180_v19, %v6613_v6  ;;  %v6065_v35 = vcombine.high %v816_v8, %v7189_v47 }
  0x94   : > { %v2359_v15 = vcombine.low %v2351_v12, %v2358_v25  ;;  %v1949_v2 = vcombine.low %v1941_v56, %v1948_v18  ;;  %v2488_v37 = vcombine.low %v2487_v29, %v1948_v18  ;;  %v1747_v9 = vrot.slane %v7185_v61, %v6613_v6 }
  0x95   : > { %v2093_v59 = vrot.slane %v2079_v43, %v6613_v6  ;;  %v2616_v7 = vrot.slane %v2609_v54, %v6613_v6  ;;  %v2223_v62 = vrot.slane %v2215_v14, %v6613_v6  ;;  %v2230_v24 = vrot.slane %v6065_v35, %v6613_v6 }
  0x96   : > { %2423 = vrot.lane.b32.xlu1 %v2359_v15, %s6477_s22  ;;  %1974 = vrot.lane.b32.xlu0 %v1949_v2, %s6474_s19  ;;  %v867_v19 = vcombine.high %v865_v57, %v865_v57  ;;  %v874_v8 = vrot.slane %v6658_v36, %v6613_v6  ;;  %v881_v50 = vrot.slane %v865_v57, %v6613_v6 }
  0x97   : > { %v2094_v55 = vcombine.low %v2086_v27, %v2093_v59  ;;  %v1537_v61 = vrot.slane %v1530_v23, %v6613_v6  ;;  %v2231_v12 = vcombine.low %v2223_v62, %v1925_v33  ;;  %v2232_v10 = vcombine.low %v1932_v44, %v2230_v24 }
  0x98   : > { %v1754_v58 = vrot.slane %v1747_v9, %v6613_v6  ;;  %v888_v34 = vrot.slane %v866_v40, %v6613_v6  ;;  %v7250_v42 = vrot.slane %v867_v19, %v6613_v6  ;;  %v896_v45 = vcombine.high %v874_v8, %v874_v8  ;;  %v6048_v40 = vld.sshfl [vmem:[#allocation2 + $0x78] sm:$0x1 pattern:$0x75316420] }
  0x99   : > { %v2617_v56 = vcombine.low %v2616_v7, %v2093_v59  ;;  %v2239_v28 = vrot.slane %v2231_v12, %v6613_v6  ;;  %v2246_v36 = vrot.slane %v2232_v10, %v6613_v6  ;;  %v7254_v29 = vcombine.high %v881_v50, %v881_v50 }
  0x9a   : > { %2552 = vrot.lane.b32.xlu1 %v2488_v37, %s6480_s8  ;;  %2119 = vrot.lane.b32.xlu0 %v2094_v55, %s6479_s29  ;;  %v2360_v33 = vcombine.low %v874_v8, %v888_v34  ;;  %v6066_v44 = vcombine.high %v874_v8, %v888_v34  ;;  %v2362_v57 = vcombine.low %v881_v50, %v7250_v42 }
  0x9b   : > { %v1956_v25 = vrot.slane %v7200_v1, %v6613_v6  ;;  %v898_v18 = vcombine.high %v888_v34, %v888_v34  ;;  %v2489_v54 = vcombine.low %v888_v34, %v896_v45  ;;  %v834_v14 = vcombine.high %v7189_v47, %v7189_v47 }
  0x9c   : > { %v2369_v43 = vrot.slane %v2360_v33, %v6613_v6  ;;  %v2376_v27 = vrot.slane %v6066_v44, %v6613_v6  ;;  %v2383_v23 = vrot.slane %v2362_v57, %v6613_v6  ;;  %v2491_v35 = vcombine.low %v7250_v42, %v7254_v29 }
  0x9d   : > { %v2247_v15 = vcombine.low %v2239_v28, %v2246_v36  ;;  %v2490_v2 = vcombine.low %v898_v18, %v881_v50  ;;  %v2498_v37 = vrot.slane %v2489_v54, %v6613_v6  ;;  %v849_v1 = vrot.slane %v6048_v40, %v6613_v6  ;;  %v6049_v18 = vld.sshfl [vmem:[#allocation2 + $0x88] sm:$0x1 pattern:$0x75316420] }
  0x9e   : > { %2673 = vrot.lane.b32.xlu1 %v2617_v56, %s6478_s23  ;;  %1550 = vrot.lane.b32.xlu0 %v1537_v61, %s6473_s18  ;;  %v2384_v47 = vcombine.low %v7217_v48, %v2369_v43  ;;  %v2385_v9 = vcombine.low %v2376_v27, %v2383_v23  ;;  %v2512_v59 = vrot.slane %v2491_v35, %v6613_v6  ;;  %s6482_s18 = smov 32  }
  0x9f   : > { %v2505_v7 = vrot.slane %v2490_v2, %v6613_v6  ;;  %v2513_v62 = vcombine.low %v2230_v24, %v2498_v37  ;;  %v2618_v19 = vcombine.low %v834_v14, %v849_v1  ;;  %v6067_v12 = vcombine.high %v881_v50, %v7250_v42 }
  0xa0   : > { %v2392_v8 = vrot.slane %v2384_v47, %v6613_v6  ;;  %v2399_v55 = vrot.slane %v2385_v9, %v6613_v6  ;;  %v1963_v61 = vrot.slane %v1956_v25, %v6613_v6  ;;  %v2101_v10 = vrot.slane %v834_v14, %v6613_v6 }
  0xa1   : > { %v2514_v48 = vcombine.low %v2505_v7, %v2512_v59  ;;  %v2626_v34 = vrot.slane %v2618_v19, %v6613_v6  ;;  %v2521_v45 = vrot.slane %v2513_v62, %v6613_v6  ;;  %v2633_v56 = vrot.slane %v6067_v12, %v6613_v6 }
  0xa2   : > { %2272 = vrot.lane.b32.xlu1 %v2247_v15, %s6476_s21  ;;  %1767 = vrot.lane.b32.xlu0 %v1754_v58, %s6475_s20  ;;  %v2400_v24 = vcombine.low %v2392_v8, %v2399_v55  ;;  %v2108_v33 = vrot.slane %v2101_v10, %v6613_v6  ;;  %v2254_v44 = vrot.slane %v849_v1, %v6613_v6  ;;  %s6486_s20 = smov 80  }
  0xa3   : > { %v2528_v28 = vrot.slane %v2514_v48, %v6613_v6  ;;  %v2634_v36 = vcombine.low %v2626_v34, %v2376_v27  ;;  %v2635_v50 = vcombine.low %v2383_v23, %v2633_v56  ;;  %v899_v57 = vcombine.high %v7250_v42, %v7250_v42 }
  0xa4   : > { %v2261_v14 = vrot.slane %v2254_v44, %v6613_v6  ;;  %v2407_v43 = vrot.slane %v7254_v29, %v6613_v6  ;;  %v914_v27 = vrot.slane %v6049_v18, %v6613_v6  ;;  %v1143_v42 = vcombine.low %v7004_v51, %v7024_v16 }
  0xa5   : > { %v2529_v58 = vcombine.low %v2521_v45, %v2528_v28  ;;  %v2642_v40 = vrot.slane %v2634_v36, %v6613_v6  ;;  %v2649_v25 = vrot.slane %v2635_v50, %v6613_v6  ;;  %v2536_v35 = vrot.slane %v899_v57, %v6613_v6 }
  0xa6   : > { %2425 = vrot.lane.b32.xlu1 %v2400_v24, %s6477_s22  ;;  %1976 = vrot.lane.b32.xlu0 %v1963_v61, %s6474_s19  ;;  %v1192_v15 = vcombine.low %v7087_v32, %v7117_v22  ;;  %v7308_v2 = vrot.slane %v1143_v42, %v6613_v6  ;;  %v2414_v37 = vrot.slane %v2407_v43, %v6613_v6 }
  0xa7   : > { %v2650_v23 = vcombine.low %v2642_v40, %v2649_v25  ;;  %v2543_v16 = vrot.slane %v2536_v35, %v6613_v6  ;;  %v2657_v32 = vrot.slane %v914_v27, %v6613_v6  ;;  %v915_v62 = vcombine.low %v6629_v21, %v6644_v30 }
  0xa8   : > { %v1539_v54 = vpop.permute.xlu0 %1538  ;;  %v7311_v29 = vrot.slane %v1192_v15, %v6613_v6  ;;  %v1159_v51 = vcombine.low %v7308_v2, %v7065_v4  ;;  %v946_v55 = vrot.slane %v918_v60, %v6613_v6  ;;  %v997_v30 = vcombine.low %v6907_v17, %v6769_v31 }
  0xa9   : > { %v2664_v9 = vrot.slane %v2657_v32, %v6613_v6  ;;  %v925_v8 = vrot.slane %v915_v62, %v6613_v6  ;;  %v1046_v18 = vcombine.low %v6788_v46, %v6821_v11 }
  0xaa   : > { %2554 = vrot.lane.b32.xlu1 %v2529_v58, %s6480_s8  ;;  %2121 = vrot.lane.b32.xlu0 %v2108_v33, %s6479_s29  ;;  %v1208_v22 = vcombine.low %v7311_v29, %v7156_v38  ;;  %v948_v10 = vcombine.low %v6725_v20, %v946_v55  ;;  %v1011_v39 = vrot.slane %v997_v30, %v6613_v6  ;;  %s6484_s29 = smov 48  }
  0xab   : > { %v1965_v47 = vpop.permute.xlu1 %1964  ;;  %v947_v48 = vcombine.low %v925_v8, %v6713_v13  ;;  %v1060_v42 = vrot.slane %v1046_v18, %v6613_v6 }
  0xac   : > { %v1756_v1 = vpop.permute.xlu0 %1755  ;;  %v962_v21 = vrot.slane %v948_v10, %v6613_v6  ;;  %v1012_v20 = vcombine.low %v6931_v49, %v1011_v39 }
  0xad   : > { %v955_v45 = vrot.slane %v947_v48, %v6613_v6  ;;  %v1095_v48 = vcombine.low %v6893_v53, %v6953_v26 }
  0xae   : > { %2675 = vrot.lane.b32.xlu1 %v2650_v23, %s6478_s23  ;;  %2274 = vrot.lane.b32.xlu0 %v2261_v14, %s6476_s21 }
  0xaf   : > { %v2263_v7 = vpop.permute.xlu1 %2262  ;;  %v963_v56 = vcombine.low %v955_v45, %v962_v21  ;;  %v1109_v30 = vrot.slane %v1095_v48, %v6613_v6 }
  0xb1   : > { %v1541_v59 = vpop.permute.xlu0 %1540  ;;  %v2686_v52 = vsel %vm276_vm0, %v963_v56, %v1539_v54 }
  0xb2   : > { %2427 = vrot.lane.b32.xlu1 %v2414_v37, %s6477_s22  ;;  %2556 = vrot.lane.b32.xlu0 %v2543_v16, %s6480_s8  ;;  %v2694_v13 = vsel %vm2693_vm5, %v2686_v52, %v1756_v1  ;;  %v2687_v17 = vsel %vm276_vm0, %v1012_v20, %v1541_v59  ;;  %v1061_v1 = vcombine.low %v6809_v3, %v1060_v42  ;;  %s6487_s8 = smov 112  }
  0xb3   : > { %v2702_v33 = vsel %vm2701_vm6, %v2694_v13, %v1965_v47 }
  0xb6   : > { %2677 = vrot.lane.b32.xlu1 %v2664_v9, %s6478_s23  ;;  %s5979_s23 = scalar_lea.hbm %s9057_s7, %s6118_s15 }
  0xb7   : > { %v2416_v12 = vpop.permute.xlu1 %2415 }
  0xb9   : > { %v1967_v19 = vpop.permute.xlu0 %1966 }
  0xbb   : > { %v2666_v34 = vpop.permute.xlu1 %2665 }
  0xbd   : > { %v2112_v61 = vpop.permute.xlu0 %2111 }
  0xc1   : > { %v1760_v24 = vpop.permute.xlu0 %1759 }
  0xc7   : > { %v2418_v28 = vpop.permute.xlu1 %2417  ;;  %v1969_v36 = vpop.permute.xlu0 %1968 }
  0xcb   : > { %v2547_v60 = vpop.permute.xlu1 %2546 }
  0xcc   : > { %v1758_v50 = vpop.permute.xlu0 %1757 }
  0xcd   : > { %v2695_v40 = vsel %vm2693_vm5, %v2687_v17, %v1758_v50 }
  0xce   : > { %v2703_v54 = vsel %vm2701_vm6, %v2695_v40, %v1967_v19 }
  0xcf   : > { %v2110_v31 = vpop.permute.xlu1 %2109  ;;  %v2711_v35 = vsel %vm2709_vm7, %v2703_v54, %v2112_v61 }
  0xd0   : > { %v2710_v44 = vsel %vm2709_vm7, %v2702_v33, %v2110_v31  ;;  %v1543_v57 = vpop.permute.xlu0 %1542 }
  0xd1   : > { %v2718_v58 = vsel %vm2717_vm8, %v2710_v44, %v2263_v7  ;;  %v2688_v9 = vsel %vm276_vm0, %v1061_v1, %v1543_v57 }
  0xd2   : > { %v2726_v49 = vsel %vm2725_vm9, %v2718_v58, %v2416_v12  ;;  %v2696_v7 = vsel %vm2693_vm5, %v2688_v9, %v1760_v24 }
  0xd3   : > { %v2545_v25 = vpop.permute.xlu1 %2544  ;;  %v2704_v8 = vsel %vm2701_vm6, %v2696_v7, %v1969_v36  ;;  %v1110_v36 = vcombine.low %v6965_v41, %v1109_v30 }
  0xd4   : > { %v2734_v14 = vsel %vm2733_vm10, %v2726_v49, %v2545_v25  ;;  %v2114_v43 = vpop.permute.xlu0 %2113 }
  0xd5   : > { %v2742_v27 = vsel %vm2741_vm11, %v2734_v14, %v2666_v34  ;;  %v2712_v12 = vsel %vm2709_vm7, %v2704_v8, %v2114_v43 }
  0xd6   : > { %6211 = vmatmul.mubr.msk.f32.vlgmr.msra.gmra.mxu0 %vm2760_vm12, %v2742_v27 }
  0xd7   : > { %v2265_v23 = vpop.permute.xlu1 %2264  ;;  %6213 = vmatprep.mubr.msk.f32.mxu0 %vm6481_vm4, %v6471_v0 }
  0xd8   : > { %v2719_v46 = vsel %vm2717_vm8, %v2711_v35, %v2265_v23 }
  0xd9   : > { %v2727_v11 = vsel %vm2725_vm9, %v2719_v46, %v2418_v28 }
  0xda   : > { %v2735_v15 = vsel %vm2733_vm10, %v2727_v11, %v2547_v60  ;;  %v1545_v37 = vpop.permute.xlu0 %1544 }
  0xdb   : > { %v2668_v16 = vpop.permute.xlu1 %2667  ;;  %v2689_v26 = vsel %vm276_vm0, %v1110_v36, %v1545_v37  ;;  %v1215_v37 = vrot.slane %v7134_v63, %v6613_v6 }
  0xdc   : > { %v2743_v32 = vsel %vm2741_vm11, %v2735_v15, %v2668_v16 }
  0xdd   : > { %6214 = vmatmul.mubr.msk.f32.gmra.mxu0 %vm2760_vm12, %v2743_v32 }
  0xde   : > { %v1762_v47 = vpop.permute.xlu0 %1761  ;;  %6216 = vmatprep.mubr.msk.f32.mxu0 %vm6481_vm4, %v6471_v0 }
  0xdf   : > { %v2267_v59 = vpop.permute.xlu1 %2266  ;;  %v2697_v52 = vsel %vm2693_vm5, %v2689_v26, %v1762_v47  ;;  %v1222_v47 = vrot.slane %v1215_v37, %v6613_v6 }
  0xe0   : > { %v2720_v61 = vsel %vm2717_vm8, %v2712_v12, %v2267_v59 }
  0xe3   : > { %v2420_v62 = vpop.permute.xlu1 %2419  ;;  %v1971_v19 = vpop.permute.xlu0 %1970 }
  0xe4   : > { %v2728_v10 = vsel %vm2725_vm9, %v2720_v61, %v2420_v62  ;;  %v2705_v60 = vsel %vm2701_vm6, %v2697_v52, %v1971_v19 }
  0xe7   : > { %v2549_v55 = vpop.permute.xlu1 %2548  ;;  %v2116_v3 = vpop.permute.xlu0 %2115 }
  0xe8   : > { %v2736_v34 = vsel %vm2733_vm10, %v2728_v10, %v2549_v55  ;;  %v2713_v20 = vsel %vm2709_vm7, %v2705_v60, %v2116_v3 }
  0xeb   : > { %v2670_v45 = vpop.permute.xlu1 %2669  ;;  %v1547_v21 = vpop.permute.xlu0 %1546 }
  0xec   : > { %v2744_v24 = vsel %vm2741_vm11, %v2736_v34, %v2670_v45  ;;  %v2690_v18 = vsel %vm276_vm0, %v1159_v51, %v1547_v21 }
  0xed   : > { %6217 = vmatmul.mubr.msk.f32.gmra.mxu0 %vm2760_vm12, %v2744_v24  ;;  %v2945_v24 = vld [vmem:[#allocation3] sm:$0xff] }
  0xee   : > { %6219 = vmatprep.mubr.msk.f32.mxu0 %vm6481_vm4, %v6471_v0 }
  0xef   : > { %v2269_v56 = vpop.permute.xlu1 %2268  ;;  %v1764_v28 = vpop.permute.xlu0 %1763 }
  0xf0   : > { %v2721_v50 = vsel %vm2717_vm8, %v2713_v20, %v2269_v56  ;;  %v2698_v54 = vsel %vm2693_vm5, %v2690_v18, %v1764_v28  ;;  %v2977_v56 = vrot.slane %v2945_v24, %v6613_v6 }
  0xf2   : > { %v2985_v36 = vcombine.high %v2977_v56, %v2977_v56  ;;  %v2993_v26 = vrot.slane %v2977_v56, %v6613_v6  ;;  %v6079_v56 = vld.sshfl [vmem:[#allocation3 + $0x28] sm:$0x1 pattern:$0x75316420] }
  0xf4   : > { %v2422_v53 = vpop.permute.xlu1 %2421 }
  0xf5   : > { %v2729_v31 = vsel %vm2725_vm9, %v2721_v50, %v2422_v53  ;;  %v6083_v50 = vld.sshfl [vmem:[#allocation3 + $0x68] sm:$0x1 pattern:$0x75316420] }
  0xf6   : > { %v1973_v39 = vpop.permute.xlu0 %1972 }
  0xf7   : > { %v2706_v14 = vsel %vm2701_vm6, %v2698_v54, %v1973_v39  ;;  %v3007_v39 = vrot.slane %v2985_v36, %v6613_v6 }
  0xf8   : > { %v2551_v13 = vpop.permute.xlu1 %2550 }
  0xf9   : > { %v2737_v17 = vsel %vm2733_vm10, %v2729_v31, %v2551_v13  ;;  %v3548_v52 = vcombine.low %v2993_v26, %v3007_v39  ;;  %v6086_v60 = vcombine.high %v2993_v26, %v3007_v39 }
  0xfa   : > { %v2118_v33 = vpop.permute.xlu0 %2117 }
  0xfb   : > { %v2714_v42 = vsel %vm2709_vm7, %v2706_v14, %v2118_v33  ;;  %v7476_v13 = vrot.slane %v6086_v60, %v6613_v6  ;;  %v7481_v33 = vrot.slane %v6083_v50, %v6613_v6 }
  0xfc   : > { %v2672_v44 = vpop.permute.xlu1 %2671 }
  0xfd   : > { %v2745_v41 = vsel %vm2741_vm11, %v2737_v17, %v2672_v44  ;;  %v4380_v31 = vrot.slane %v7481_v33, %v6613_v6  ;;  %v2970_v44 = vcombine.high %v2945_v24, %v2945_v24 }
  0xfe   : > { %6220 = vmatmul.mubr.msk.f32.gmra.mxu0 %vm2760_vm12, %v2745_v41  ;;  %v1549_v57 = vpop.permute.xlu0 %1548 }
  0xff   : > { %6222 = vmatprep.mubr.msk.f32.mxu0 %vm6481_vm4, %v6471_v0  ;;  %v2691_v32 = vsel %vm276_vm0, %v1208_v22, %v1549_v57  ;;  %v4387_v17 = vrot.slane %v4380_v31, %v6613_v6  ;;  %v2984_v41 = vrot.slane %v2970_v44, %v6613_v6 }
 0x100   : > { %v2271_v58 = vpop.permute.xlu1 %2270 }
 0x101   : > { %v2722_v23 = vsel %vm2717_vm8, %v2714_v42, %v2271_v58  ;;  %4400 = vrot.lane.b32.xlu0 %v4387_v17, %s6482_s18  ;;  %v2986_v57 = vcombine.high %v2984_v41, %v2984_v41  ;;  %v3015_v58 = vcombine.high %v2993_v26, %v2993_v26  ;;  %v3000_v18 = vrot.slane %v2984_v41, %v6613_v6  ;;  %v6081_v41 = vld.sshfl [vmem:[#allocation3 + $0x48] sm:$0x1 pattern:$0x75316420] }
 0x102   : > { %v1766_v40 = vpop.permute.xlu0 %1765 }
 0x103   : > { %v2699_v63 = vsel %vm2693_vm5, %v2691_v32, %v1766_v40  ;;  %v3017_v40 = vcombine.high %v3007_v39, %v3007_v39  ;;  %v3863_v42 = vcombine.low %v3007_v39, %v3015_v58  ;;  %v6080_v39 = vld.sshfl [vmem:[#allocation3 + $0x38] sm:$0x1 pattern:$0x75316420] }
 0x104   : > { %v6082_v58 = vld.sshfl [vmem:[#allocation3 + $0x58] sm:$0x1 pattern:$0x75316420] }
 0x105   : > { %v3873_v32 = vrot.slane %v3863_v42, %v6613_v6  ;;  %v6084_v42 = vld.sshfl [vmem:[#allocation3 + $0x78] sm:$0x1 pattern:$0x75316420] }
 0x108   : > { %v2424_v49 = vpop.permute.xlu1 %2423  ;;  %v1975_v25 = vpop.permute.xlu0 %1974 }
 0x109   : > { %v2730_v35 = vsel %vm2725_vm9, %v2722_v23, %v2424_v49  ;;  %v2707_v38 = vsel %vm2701_vm6, %v2699_v63, %v1975_v25  ;;  %v7491_v49 = vld [vmem:[%s9052_s2] ss:$0 sm:$0xff]  ;;  %v2961_v25 = vld [vmem:[#allocation3 + $0x80] sm:$0xff] }
 0x10a   : > { %v3484_v54 = vcombine.high %v2961_v25, %v2961_v25  ;;  %v3491_v14 = vrot.slane %v2961_v25, %v6613_v6 }
 0x10c   : > { %v2553_v43 = vpop.permute.xlu1 %2552  ;;  %v2120_v27 = vpop.permute.xlu0 %2119 }
 0x10d   : > { %v2738_v46 = vsel %vm2733_vm10, %v2730_v35, %v2553_v43  ;;  %v2715_v9 = vsel %vm2709_vm7, %v2707_v38, %v2120_v27  ;;  %v7496_v27 = vrot.slane %v2986_v57, %v6613_v6  ;;  %v3864_v35 = vcombine.low %v3017_v40, %v3000_v18 }
 0x10e   : > { %v3507_v38 = vrot.slane %v3491_v14, %v6613_v6 }
 0x10f   : > { %v3306_v24 = vcombine.high %v7496_v27, %v7496_v27 }
 0x110   : > { %v2674_v11 = vpop.permute.xlu1 %2673  ;;  %v1551_v15 = vpop.permute.xlu0 %1550 }
 0x111   : > { %v2746_v4 = vsel %vm2741_vm11, %v2738_v46, %v2674_v11  ;;  %v2692_v59 = vsel %vm276_vm0, %v1222_v47, %v1551_v15  ;;  %v3498_v46 = vrot.slane %v3484_v54, %v6613_v6  ;;  %v3499_v11 = vcombine.high %v3491_v14, %v3491_v14 }
 0x112   : > { %6223 = vmatmul.mubr.msk.f32.gmra.mxu0 %vm2760_vm12, %v2746_v4  ;;  %vm2917_vm0 = vcmask 130055   ;;  %v3880_v47 = vrot.slane %v3864_v35, %v6613_v6  ;;  %v7577_v35 = vrot.slane %v6080_v39, %v6613_v6 }
 0x113   : > { %6225 = vmatprep.mubr.msk.f32.mxu0 %vm6481_vm4, %v6471_v0  ;;  %v7504_v37 = vrot.slane %v3499_v11, %v6613_v6 }
 0x114   : > { %v2273_v2 = vpop.permute.xlu1 %2272  ;;  %v1768_v51 = vpop.permute.xlu0 %1767 }
 0x115   : > { %v2723_v7 = vsel %vm2717_vm8, %v2715_v9, %v2273_v2  ;;  %v2700_v62 = vsel %vm2693_vm5, %v2692_v59, %v1768_v51  ;;  %v3500_v2 = vcombine.high %v3498_v46, %v3498_v46  ;;  %v7501_v51 = vrot.slane %v3498_v46, %v6613_v6 }
 0x116   : > { %v4993_v40 = vcombine.low %v3507_v38, %v7504_v37  ;;  %v7580_v46 = vrot.slane %v6081_v41, %v6613_v6  ;;  %vm2929_vm5 = vcmask 125952  }
 0x117   : > { %9071 = vst [vmem:[#allocation8_spill] sm:$0xff] %v7501_v51  ;;  %v7512_v63 = vrot.slane %v3500_v2, %v6613_v6  ;;  %v7521_v59 = vcombine.high %v7501_v51, %v7501_v51 }
 0x118   : > { %v2426_v1 = vpop.permute.xlu1 %2425  ;;  %v1977_v16 = vpop.permute.xlu0 %1976 }
 0x119   : > { %v2731_v19 = vsel %vm2725_vm9, %v2723_v7, %v2426_v1  ;;  %v2708_v8 = vsel %vm2701_vm6, %v2700_v62, %v1977_v16  ;;  %v3550_v1 = vcombine.low %v3000_v18, %v7496_v27  ;;  %v7507_v16 = vcombine.high %v3000_v18, %v3000_v18  ;;  %v7524_v62 = vld.sshfl [vmem:[#allocation3 + $0x8] sm:$0x1 pattern:$0x75316420] }
 0x11a   : > { %vm2932_vm6 = vcmask 130052  }
 0x11b   : > { %v3865_v9 = vcombine.low %v7496_v27, %v7507_v16 }
 0x11c   : > { %v2555_v29 = vpop.permute.xlu1 %2554  ;;  %v2122_v22 = vpop.permute.xlu0 %2121 }
 0x11d   : > { %v2739_v55 = vsel %vm2733_vm10, %v2731_v19, %v2555_v29  ;;  %v2716_v61 = vsel %vm2709_vm7, %v2708_v8, %v2122_v22  ;;  %v3531_v29 = vcombine.high %v7504_v37, %v7504_v37  ;;  %v7527_v19 = vrot.slane %v3550_v1, %v6613_v6 }
 0x11e   : > { %v6102_v8 = vcombine.high %v3507_v38, %v7504_v37  ;;  %v7593_v1 = vrot.slane %v6082_v58, %v6613_v6  ;;  %vm2934_vm7 = vcmask 124928  }
 0x120   : > { %v2676_v3 = vpop.permute.xlu1 %2675  ;;  %v2275_v12 = vpop.permute.xlu0 %2274 }
 0x121   : > { %v2747_v48 = vsel %vm2741_vm11, %v2739_v55, %v2676_v3  ;;  %v2724_v10 = vsel %vm2717_vm8, %v2716_v61, %v2275_v12  ;;  %v4995_v55 = vcombine.low %v7501_v51, %v7512_v63  ;;  %v7532_v12 = vcombine.low %v3873_v32, %v3880_v47  ;;  %v6078_v61 = vld.sshfl [vmem:[#allocation3 + $0x18] sm:$0x1 pattern:$0x75316420] }
 0x122   : > { %6226 = vmatmul.mubr.msk.f32.gmra.mxu0 %vm2760_vm12, %v2747_v48  ;;  %v6096_v48 = vcombine.high %v3000_v18, %v7496_v27  ;;  %v7546_v26 = vrot.slane %v6078_v61, %v6613_v6  ;;  %v7596_v32 = vrot.slane %v4993_v40, %v6613_v6  ;;  %vm2937_vm8 = vcmask 130051  }
 0x123   : > { %6228 = vmatprep.mubr.msk.f32.mxu0 %vm6481_vm4, %v6471_v0  ;;  %v7473_v0 = vrot.slane %v3548_v52, %v6613_v6  ;;  %v7549_v52 = vrot.slane %v6102_v8, %v6613_v6  ;;  %v7552_v60 = vrot.slane %v4995_v55, %v6613_v6  ;;  %v3903_v17 = vrot.slane %v7532_v12, %v6613_v6 }
 0x124   : > { %v2428_v34 = vpop.permute.xlu1 %2427  ;;  %v2557_v45 = vpop.permute.xlu0 %2556  ;;  %v7558_v44 = vrot.slane %v6096_v48, %v6613_v6  ;;  %vm2927_vm4 = vcmask 130053  }
 0x125   : > { %v2732_v21 = vsel %vm2725_vm9, %v2724_v10, %v2428_v34  ;;  %v4208_v34 = vcombine.low %v7476_v13, %v7527_v19  ;;  %9072 = vst [vmem:[#allocation9_spill] sm:$0xff] %v7549_v52  ;;  %9073 = vst [vmem:[#allocation10_spill] sm:$0xff] %v7552_v60  ;;  %v5018_v11 = vcombine.low %v7549_v52, %v7552_v60  ;;  %vm2939_vm9 = vcmask 123904  }
 0x126   : > { %v2740_v30 = vsel %vm2733_vm10, %v2732_v21, %v2557_v45  ;;  %v3529_v45 = vcombine.high %v3507_v38, %v3507_v38  ;;  %v5123_v21 = vcombine.low %v3531_v29, %v7501_v51  ;;  %v7601_v38 = vrot.slane %v6084_v42, %v6613_v6 }
 0x127   : > { %v7561_v57 = vrot.slane %v4208_v34, %v6613_v6  ;;  %v7615_v12 = vrot.slane %v5018_v11, %v6613_v6  ;;  %vm2942_vm10 = vcmask 130050  }
 0x128   : > { %v2678_v28 = vpop.permute.xlu1 %2677  ;;  %v7565_v25 = vcombine.low %v7504_v37, %v3529_v45  ;;  %v5138_v18 = vrot.slane %v5123_v21, %v6613_v6 }
 0x129   : > { %v2748_v53 = vsel %vm2741_vm11, %v2740_v30, %v2678_v28  ;;  %v3333_v30 = vrot.slane %v7524_v62, %v6613_v6  ;;  %v5124_v28 = vcombine.low %v7512_v63, %v7521_v59  ;;  %vm5305_vm11 = vcmask 261120  }
 0x12a   : > { %6229 = vmatmul.mubr.msk.f32.gmra.mxu0 %vm2760_vm12, %v2748_v53  ;;  %v3887_v53 = vrot.slane %v3865_v9, %v6613_v6  ;;  %vm5313_vm12 = vcmask 392192  }
 0x12b   : > { %v5145_v27 = vrot.slane %v5124_v28, %v6613_v6 }
 0x12d   : > { %v7607_v62 = vcombine.low %v5138_v18, %v5145_v27 }
 0x196   : > { %v2852_v43 = vpop.f32.mrf.mxu0 }
 0x197   : > { %v2853_v23 = vadd.f32 %v7491_v49, %v2852_v43 }
 0x198   : > { %v6212_v15 = vpop.f32.mrf.mxu0 }
 0x199   : > { %v2886_v4 = vmax.f32 %v2853_v23, 0.0  ;;  %v7574_v23 = vrot.slane %v6079_v56, %v6613_v6 }
 0x19b   : > { %2915 = vst.msk [vmem:[#allocation3 + $0x11] sm:$0x7f] %vm2914_vm15, %v2886_v4  ;;  %vm5329_vm15 = vcmask 654336  }
 0x19c   : > { %2918 = vst.msk [vmem:[#allocation3 + $0x1a] sm:$0x80] %vm2917_vm0, %v2886_v4  ;;  %vm5337_vm0 = vcmask 785408  }
 0x19d   : > { %v2857_v22 = vpop.f32.mrf.mxu0 }
 0x19e   : > { %v2858_v7 = vadd.f32 %v7491_v49, %v2857_v22 }
 0x19f   : > { %v6215_v3 = vpop.f32.mrf.mxu0 }
 0x1a0   : > { %v2887_v10 = vmax.f32 %v2858_v7, 0.0 }
 0x1a2   : > { %2920 = vst.msk [vmem:[#allocation3 + $0x22] sm:$0x3f] %vm2919_vm1, %v2887_v10  ;;  %v2947_v36 = vld [vmem:[#allocation3 + $0x10] sm:$0xff]  ;;  %vm5345_vm1 = vcmask 916480  }
 0x1a3   : > { %2923 = vst.msk [vmem:[#allocation3 + $0x2b] sm:$0xc0] %vm2922_vm2, %v2887_v10  ;;  %v3018_v50 = vcombine.high %v2947_v36, %v2947_v36  ;;  %v3025_v31 = vrot.slane %v2947_v36, %v6613_v6  ;;  %vm5966_vm2 = vcmask 49152  }
 0x1a5   : > { %v3032_v54 = vrot.slane %v3018_v50, %v6613_v6  ;;  %v3033_v14 = vcombine.high %v3025_v31, %v3025_v31  ;;  %v7570_v43 = vrot.slane %v3025_v31, %v6613_v6 }
 0x1a7   : > { %v3034_v15 = vcombine.high %v3032_v54, %v3032_v54  ;;  %v3048_v4 = vrot.slane %v3032_v54, %v6613_v6  ;;  %v7586_v2 = vrot.slane %v3033_v14, %v6613_v6  ;;  %v7590_v37 = vcombine.high %v7570_v43, %v7570_v43 }
 0x1a9   : > { %v2949_v29 = vld [vmem:[#allocation3 + $0x20] sm:$0xff]  ;;  %v3062_v22 = vrot.slane %v3034_v15, %v6613_v6  ;;  %v3866_v9 = vcombine.low %v3306_v24, %v7586_v2  ;;  %v6090_v7 = vcombine.high %v7570_v43, %v7586_v2  ;;  %v7610_v55 = vcombine.high %v3048_v4, %v3048_v4 }
 0x1aa   : > { %v3073_v8 = vrot.slane %v2949_v29, %v6613_v6  ;;  %v3065_v3 = vcombine.high %v7586_v2, %v7586_v2  ;;  %v4193_v34 = vcombine.low %v3333_v30, %v7590_v37 }
 0x1ab   : > { %v3894_v61 = vrot.slane %v3866_v9, %v6613_v6  ;;  %v3913_v48 = vcombine.low %v3048_v4, %v3062_v22  ;;  %v6091_v24 = vcombine.high %v3048_v4, %v3062_v22  ;;  %v7625_v56 = vrot.slane %v6090_v7, %v6613_v6 }
 0x1ac   : > { %v3081_v45 = vcombine.high %v3073_v8, %v3073_v8  ;;  %v7622_v21 = vrot.slane %v3073_v8, %v6613_v6  ;;  %v7630_v50 = vcombine.high %v3062_v22, %v3062_v22  ;;  %v3598_v31 = vcombine.low %v3065_v3, %v3048_v4  ;;  %v5414_v3 = vld [vmem:[%s9053_s3 + $0x1e8] sm:$0xff] }
 0x1ad   : > { %v2862_v28 = vpop.f32.mrf.mxu0  ;;  %v3896_v36 = vcombine.low %v3887_v53, %v3894_v61  ;;  %v7628_v39 = vrot.slane %v3913_v48, %v6613_v6  ;;  %v3599_v40 = vcombine.low %v3062_v22, %v7610_v55  ;;  %v4207_v27 = vrot.slane %v4193_v34, %v6613_v6  ;;  %v5416_v61 = vld [vmem:[%s9053_s3 + $0x1f8] sm:$0xff]  ;;  %5461 = vmatprep.subr.mxu1 %v5414_v3 }
 0x1ae   : > { %v2863_v41 = vadd.f32 %v7491_v49, %v2862_v28  ;;  %v7634_v30 = vrot.slane %v3081_v45, %v6613_v6  ;;  %v7638_v58 = vcombine.high %v7622_v21, %v7622_v21  ;;  %v7645_v14 = vrot.slane %v3598_v31, %v6613_v6  ;;  %5568 = vmatprep.subr.mxu0 %v5416_v61 }
 0x1af   : > { %v6218_v18 = vpop.f32.mrf.mxu0  ;;  %v3910_v53 = vrot.slane %v3896_v36, %v6613_v6  ;;  %v3944_v54 = vcombine.low %v7625_v56, %v7628_v39  ;;  %v7651_v15 = vrot.slane %v3599_v40, %v6613_v6  ;;  %v7656_v9 = vrot.slane %v6091_v24, %v6613_v6  ;;  %v5415_v24 = vld [vmem:[%s9053_s3 + $0x1f0] sm:$0xff] }
 0x1b0   : > { %v2888_v42 = vmax.f32 %v2863_v41, 0.0  ;;  %v3915_v11 = vcombine.low %v7634_v30, %v7638_v58  ;;  %v6087_v4 = vcombine.high %v7622_v21, %v7634_v30  ;;  %v4209_v7 = vcombine.low %v7558_v44, %v4207_v27  ;;  %v5412_v27 = vld [vmem:[%s9053_s3 + $0x1d8] sm:$0xff]  ;;  %5569 = vmatpush1.msra.mxu0 %v5415_v24 }
 0x1b1   : > { %v3911_v22 = vcombine.low %v3903_v17, %v3910_v53  ;;  %v4225_v8 = vcombine.low %v7630_v50, %v7546_v26  ;;  %v5413_v17 = vld [vmem:[%s9053_s3 + $0x1e0] sm:$0xff]  ;;  %v4233_v34 = vcombine.low %v7645_v14, %v7651_v15  ;;  %v3066_v45 = vcombine.high %v2949_v29, %v2949_v29  ;;  %v5410_v29 = vld [vmem:[%s9053_s3 + $0x1c8] sm:$0xff]  ;;  %5570 = vmatprep.subr.mxu0 %v5412_v27 }
 0x1b2   : > { %2925 = vst.msk [vmem:[#allocation3 + $0x33] sm:$0x1f] %vm2924_vm3, %v2888_v42  ;;  %v7673_v44 = vrot.slane %v3915_v11, %v6613_v6  ;;  %v7676_v48 = vrot.slane %v6087_v4, %v6613_v6  ;;  %v7684_v28 = vrot.slane %v3944_v54, %v6613_v6  ;;  %v4223_v36 = vrot.slane %v4209_v7, %v6613_v6 }
 0x1b3   : > { %2928 = vst.msk [vmem:[#allocation3 + $0x3c] sm:$0xe0] %vm2927_vm4, %v2888_v42  ;;  %v4232_v31 = vrot.slane %v4225_v8, %v6613_v6  ;;  %v4409_v41 = vcombine.low %v7570_v43, %v7586_v2  ;;  %v3080_v18 = vrot.slane %v3066_v45, %v6613_v6  ;;  %v3113_v53 = vcombine.high %v7634_v30, %v7634_v30  ;;  %v5409_v8 = vld [vmem:[%s9053_s3 + $0x1c0] sm:$0xff] }
 0x1b4   : > { %v3945_v40 = vcombine.low %v7656_v9, %v7673_v44  ;;  %v4410_v54 = vcombine.low %v7610_v55, %v7622_v21  ;;  %5462 = vmatpush1.msra.mxu1 %v5413_v17  ;;  %v4241_v11 = vrot.slane %v4233_v34, %v6613_v6  ;;  %v3597_v7 = vcombine.low %v7586_v2, %v7590_v37  ;;  %v5411_v34 = vld [vmem:[%s9053_s3 + $0x1d0] sm:$0xff] }
 0x1b5   : > { %v4234_v42 = vcombine.low %v4232_v31, %v7676_v48  ;;  %v4417_v4 = vrot.slane %v4409_v41, %v6613_v6  ;;  %v3082_v3 = vcombine.high %v3080_v18, %v3080_v18  ;;  %v3096_v61 = vrot.slane %v3080_v18, %v6613_v6  ;;  %5463 = vmatprep.subr.mxu1 %v5410_v29  ;;  %v5406_v31 = vld [vmem:[%s9053_s3 + $0x1a8] sm:$0xff] }
 0x1b6   : > { %v3959_v55 = vrot.slane %v3945_v40, %v6613_v6  ;;  %v4424_v17 = vrot.slane %v4410_v54, %v6613_v6  ;;  %v4224_v45 = vcombine.low %v7561_v57, %v4223_v36  ;;  %v3600_v24 = vcombine.low %v7622_v21, %v7634_v30  ;;  %5464 = vmatpush1.msra.mxu1 %v5409_v8  ;;  %v5408_v21 = vld [vmem:[%s9053_s3 + $0x1b8] sm:$0xff] }
 0x1b7   : > { %v4248_v2 = vrot.slane %v4234_v42, %v6613_v6  ;;  %v4425_v37 = vcombine.low %v4417_v4, %v7625_v56  ;;  %v3110_v29 = vrot.slane %v3082_v3, %v6613_v6  ;;  %v3112_v40 = vcombine.high %v3096_v61, %v3096_v61  ;;  %5571 = vmatpush1.msra.mxu0 %v5411_v34 }
 0x1b8   : > { %v3960_v41 = vcombine.low %v7684_v28, %v3959_v55  ;;  %v7728_v57 = vrot.slane %v3597_v7, %v6613_v6  ;;  %v3961_v18 = vcombine.low %v3113_v53, %v3096_v61  ;;  %v4426_v54 = vcombine.low %v7628_v39, %v4424_v17  ;;  %5465 = vmatprep.subr.mxu1 %v5406_v31  ;;  %v5405_v39 = vld [vmem:[%s9053_s3 + $0x1a0] sm:$0xff] }
 0x1b9   : > { %v4249_v56 = vcombine.low %v4241_v11, %v4248_v2  ;;  %v2951_v36 = vld [vmem:[#allocation3 + $0x30] sm:$0xff]  ;;  %v7735_v27 = vrot.slane %v4425_v37, %v6613_v6  ;;  %v7738_v7 = vcombine.high %v3110_v29, %v3110_v29  ;;  %v3647_v3 = vcombine.low %v3096_v61, %v3110_v29  ;;  %5572 = vmatprep.subr.mxu0 %v5408_v21 }
 0x1ba   : > { %v6289_v42 = vpack.i.bf16 %v3960_v41, %v3911_v22  ;;  %v3114_v4 = vcombine.high %v2951_v36, %v2951_v36  ;;  %v3121_v55 = vrot.slane %v2951_v36, %v6613_v6  ;;  %v6097_v20 = vcombine.high %v3096_v61, %v3110_v29  ;;  %v5407_v61 = vld [vmem:[%s9053_s3 + $0x1b0] sm:$0xff]  ;;  %5466 = vmatpush1.msra.mxu1 %v5405_v39  ;;  %v5401_v36 = vld [vmem:[%s9053_s3 + $0x180] sm:$0xff] }
 0x1bb   : > { %v6294_v8 = vpack.i.bf16 %v4249_v56, %v4224_v45  ;;  %v3962_v47 = vcombine.low %v3110_v29, %v3112_v40  ;;  %v7751_v17 = vrot.slane %v3600_v24, %v6613_v6  ;;  %v7758_v34 = vrot.slane %v3647_v3, %v6613_v6  ;;  %v5402_v24 = vld [vmem:[%s9053_s3 + $0x188] sm:$0xff]  ;;  %v5404_v56 = vld [vmem:[%s9053_s3 + $0x198] sm:$0xff]  ;;  %5573 = vmatpush1.msra.mxu0 %v5407_v61 }
 0x1bc   : > { %6290 = vrot.lane.b32.xlu0 %v6289_v42, %s6483_s9  ;;  %v7745_v22 = vrot.slane %v3114_v4, %v6613_v6  ;;  %v3129_v53 = vcombine.high %v3121_v55, %v3121_v55  ;;  %v7748_v11 = vrot.slane %v3121_v55, %v6613_v6  ;;  %v7761_v45 = vrot.slane %v6097_v20, %v6613_v6  ;;  %v5403_v4 = vld [vmem:[%s9053_s3 + $0x190] sm:$0xff] }
 0x1bd   : > { %6295 = vrot.lane.b32.xlu1 %v6294_v8, %s6482_s18  ;;  %v7766_v37 = vrot.slane %v3961_v18, %v6613_v6  ;;  %v7778_v21 = vrot.slane %v3962_v47, %v6613_v6  ;;  %v7794_v47 = vrot.slane %v4426_v54, %v6613_v6  ;;  %5467 = vmatprep.subr.mxu1 %v5402_v24  ;;  %v5398_v54 = vld [vmem:[%s9053_s3 + $0x168] sm:$0xff] }
 0x1be   : > { %v2867_v31 = vpop.f32.mrf.mxu0  ;;  %v7772_v41 = vrot.slane %v3129_v53, %v6613_v6  ;;  %v3159_v29 = vcombine.high %v7748_v11, %v7748_v11  ;;  %v3648_v20 = vcombine.low %v3112_v40, %v7748_v11  ;;  %v7789_v42 = vrot.slane %v7745_v22, %v6613_v6  ;;  %5574 = vmatprep.subr.mxu0 %v5404_v56  ;;  %v5397_v56 = vld [vmem:[%s9053_s3 + $0x160] sm:$0xff] }
 0x1bf   : > { %v2868_v18 = vadd.f32 %v7491_v49, %v2867_v31  ;;  %v3678_v40 = vcombine.low %v7676_v48, %v7758_v34  ;;  %v4450_v53 = vcombine.low %v7673_v44, %v7766_v37  ;;  %5468 = vmatpush1.msra.mxu1 %v5401_v36  ;;  %v5400_v44 = vld [vmem:[%s9053_s3 + $0x178] sm:$0xff]  ;;  %5575 = vmatpush1.msra.mxu0 %v5403_v4 }
 0x1c0   : > { %v6221_v55 = vpop.f32.mrf.mxu0  ;;  %v3161_v8 = vcombine.high %v7772_v41, %v7772_v41  ;;  %v3649_v3 = vcombine.low %v7772_v41, %v3159_v29  ;;  %v4251_v39 = vcombine.low %v7574_v23, %v3159_v29  ;;  %v7809_v31 = vrot.slane %v3648_v20, %v6613_v6  ;;  %5469 = vmatprep.subr.mxu1 %v5398_v54 }
 0x1c1   : > { %v2889_v61 = vmax.f32 %v2868_v18, 0.0  ;;  %v7812_v55 = vrot.slane %v3678_v40, %v6613_v6  ;;  %v4442_v10 = vcombine.low %v7748_v11, %v7772_v41  ;;  %v4441_v18 = vcombine.low %v7735_v27, %v7794_v47  ;;  %v5399_v47 = vld [vmem:[%s9053_s3 + $0x170] sm:$0xff]  ;;  %5576 = vmatprep.subr.mxu0 %v5400_v44  ;;  %5470 = vmatpush1.msra.mxu1 %v5397_v56 }
 0x1c2   : > { %v7820_v24 = vrot.slane %v3649_v3, %v6613_v6  ;;  %v3695_v29 = vcombine.low %v3161_v8, %v7789_v42  ;;  %v7824_v20 = vrot.slane %v4251_v39, %v6613_v6  ;;  %v3629_v40 = vcombine.low %v7728_v57, %v7645_v14  ;;  %5577 = vmatpush1.msra.mxu0 %v5399_v47 }
 0x1c3   : > { %9074 = vst [vmem:[#allocation11_spill] sm:$0xff] %v7812_v55  ;;  %2930 = vst.msk [vmem:[#allocation3 + $0x44] sm:$0xf] %vm2929_vm5, %v2889_v61  ;;  %v4449_v36 = vrot.slane %v4442_v10, %v6613_v6  ;;  %v3630_v8 = vcombine.low %v7651_v15, %v7751_v17  ;;  %v4618_v27 = vcombine.low %v7630_v50, %v7634_v30  ;;  %v5394_v50 = vld [vmem:[%s9053_s3 + $0x148] sm:$0xff] }
 0x1c4   : > { %2933 = vst.msk [vmem:[#allocation3 + $0x4d] sm:$0xf0] %vm2932_vm6, %v2889_v61  ;;  %v3679_v4 = vcombine.low %v7809_v31, %v7820_v24  ;;  %v5198_v10 = vcombine.low %v7761_v45, %v7824_v20  ;;  %v7848_v3 = vrot.slane %v4450_v53, %v6613_v6  ;;  %v4635_v14 = vcombine.low %v7761_v45, %v7820_v24  ;;  %v5396_v53 = vld [vmem:[%s9053_s3 + $0x158] sm:$0xff] }
 0x1c5   : > { %v4451_v30 = vcombine.low %v7778_v21, %v4449_v36  ;;  %v7857_v57 = vrot.slane %v3629_v40, %v6613_v6  ;;  %v7860_v39 = vrot.slane %v3630_v8, %v6613_v6  ;;  %v4625_v54 = vrot.slane %v4618_v27, %v6613_v6  ;;  %v5393_v8 = vld [vmem:[%s9053_s3 + $0x140] sm:$0xff]  ;;  %5471 = vmatprep.subr.mxu1 %v5394_v50 }
 0x1c6   : > { %v7867_v61 = vrot.slane %v3679_v4, %v6613_v6  ;;  %v7870_v44 = vrot.slane %v3695_v29, %v6613_v6  ;;  %v5205_v36 = vrot.slane %v5198_v10, %v6613_v6  ;;  %v4642_v40 = vrot.slane %v4635_v14, %v6613_v6  ;;  %5578 = vmatprep.subr.mxu0 %v5396_v53 }
 0x1c7   : > { %9075 = vst [vmem:[#allocation12_spill] sm:$0xff] %v7860_v39  ;;  %v4465_v56 = vrot.slane %v4451_v30, %v6613_v6  ;;  %v4626_v4 = vcombine.low %v7651_v15, %v4625_v54  ;;  %v6092_v29 = vcombine.high %v7748_v11, %v7772_v41  ;;  %v3993_v2 = vcombine.low %v7766_v37, %v7778_v21  ;;  %v5395_v30 = vld [vmem:[%s9053_s3 + $0x150] sm:$0xff]  ;;  %v5390_v37 = vld [vmem:[%s9053_s3 + $0x128] sm:$0xff] }
 0x1c8   : > { %9076 = vst [vmem:[#allocation13_spill] sm:$0xff] %v7867_v61  ;;  %v5206_v47 = vcombine.low %v7812_v55, %v5205_v36  ;;  %v4643_v14 = vcombine.low %v7812_v55, %v4642_v40  ;;  %v4763_v54 = vcombine.low %v7546_v26, %v7638_v58  ;;  %5472 = vmatpush1.msra.mxu1 %v5393_v8 }
 0x1c9   : > { %v4466_v15 = vcombine.low %v7848_v3, %v4465_v56  ;;  %v4633_v11 = vrot.slane %v4626_v4, %v6613_v6  ;;  %v7895_v50 = vrot.slane %v6092_v29, %v6613_v6  ;;  %v7905_v53 = vrot.slane %v3993_v2, %v6613_v6  ;;  %5579 = vmatpush1.msra.mxu0 %v5395_v30  ;;  %v5392_v2 = vld [vmem:[%s9053_s3 + $0x138] sm:$0xff] }
 0x1ca   : > { %6104 = vmatprep.mubr.msk.f32.mxu1 %vm2893_vm13, %v5206_v47  ;;  %6111 = vmatprep.mubr.msk.f32.mxu0 %vm2893_vm13, %v5206_v47  ;;  %v9077_v36 = vcombine.low %v7738_v7, %v7574_v23  ;;  %v7911_v56 = vld [vmem:[#allocation3 + $0x40] sm:$0xff]  ;;  %v3130_v26 = vcombine.high %v7745_v22, %v7745_v22  ;;  %v4770_v4 = vrot.slane %v4763_v54, %v6613_v6 }
 0x1cb   : > { %v6299_v58 = vpack.i.bf16 %v4466_v15, %v4441_v18  ;;  %v4634_v8 = vcombine.low %v7857_v57, %v4633_v11  ;;  %v3169_v29 = vrot.slane %v7911_v56, %v6613_v6  ;;  %v3963_v22 = vcombine.low %v7738_v7, %v7772_v41  ;;  %5473 = vmatprep.subr.mxu1 %v5390_v37 }
 0x1cc   : > { %v4787_v40 = vrot.slane %v9077_v36, %v6613_v6  ;;  %v7924_v47 = vrot.slane %v3130_v26, %v6613_v6  ;;  %v7930_v18 = vcombine.high %v7789_v42, %v7789_v42  ;;  %v4771_v15 = vcombine.low %v7656_v9, %v4770_v4  ;;  %v5389_v36 = vld [vmem:[%s9053_s3 + $0x120] sm:$0xff]  ;;  %5580 = vmatprep.subr.mxu0 %v5392_v2  ;;  %v5391_v9 = vld [vmem:[%s9053_s3 + $0x130] sm:$0xff] }
 0x1cd   : > { %6300 = vrot.lane.b32.xlu0 %v6299_v58, %s6484_s29  ;;  %v6304_v30 = vpack.i.bf16 %v4643_v14, %v4634_v8  ;;  %v3177_v11 = vcombine.high %v3169_v29, %v3169_v29  ;;  %v7935_v54 = vrot.slane %v3169_v29, %v6613_v6  ;;  %v7942_v41 = vrot.slane %v3963_v22, %v6613_v6  ;;  %v5388_v22 = vld [vmem:[%s9053_s3 + $0x118] sm:$0xff] }
 0x1ce   : > { %v4788_v23 = vcombine.low %v4787_v40, %v7895_v50  ;;  %v4010_v37 = vcombine.low %v7789_v42, %v7924_v47  ;;  %v6093_v14 = vcombine.high %v7789_v42, %v7924_v47  ;;  %v4778_v26 = vrot.slane %v4771_v15, %v6613_v6  ;;  %v5386_v42 = vld [vmem:[%s9053_s3 + $0x108] sm:$0xff]  ;;  %5474 = vmatpush1.msra.mxu1 %v5389_v36 }
 0x1cf   : > { %6305 = vrot.lane.b32.xlu1 %v6304_v30, %s6485_s17  ;;  %v7956_v58 = vrot.slane %v3177_v11, %v6613_v6  ;;  %v7960_v8 = vcombine.high %v7935_v54, %v7935_v54  ;;  %v5069_v2 = vcombine.low %v7778_v21, %v7942_v41  ;;  %5581 = vmatpush1.msra.mxu0 %v5391_v9  ;;  %v5385_v21 = vld [vmem:[%s9053_s3 + $0x100] sm:$0xff]  ;;  %v5387_v9 = vld [vmem:[%s9053_s3 + $0x110] sm:$0xff] }
 0x1d0   : > { %v4795_v7 = vrot.slane %v4788_v23, %v6613_v6  ;;  %v7967_v29 = vrot.slane %v4010_v37, %v6613_v6  ;;  %v3696_v23 = vcombine.low %v7924_v47, %v7930_v18  ;;  %v4779_v30 = vcombine.low %v7684_v28, %v4778_v26  ;;  %5475 = vmatprep.subr.mxu1 %v5386_v42 }
 0x1d1   : > { %v4012_v15 = vcombine.low %v7956_v58, %v7960_v8  ;;  %v3697_v11 = vcombine.low %v7935_v54, %v7956_v58  ;;  %v4027_v37 = vrot.slane %v6093_v14, %v6613_v6  ;;  %v5076_v26 = vrot.slane %v5069_v2, %v6613_v6  ;;  %5582 = vmatprep.subr.mxu0 %v5388_v22  ;;  %v5382_v2 = vld [vmem:[%s9053_s3 + $0xe8] sm:$0xff]  ;;  %v5384_v22 = vld [vmem:[%s9053_s3 + $0xf8] sm:$0xff] }
 0x1d2   : > { %v4796_v4 = vcombine.low %v7905_v53, %v4795_v7  ;;  %v6088_v7 = vcombine.high %v7935_v54, %v7956_v58  ;;  %v2872_v36 = vpop.f32.mrf.mxu0  ;;  %v4475_v28 = vcombine.low %v7895_v50, %v7967_v29  ;;  %v4916_v10 = vcombine.low %v7751_v17, %v7676_v48  ;;  %5476 = vmatpush1.msra.mxu1 %v5385_v21 }
 0x1d3   : > { %v2873_v27 = vadd.f32 %v7491_v49, %v2872_v36  ;;  %v7997_v5 = vrot.slane %v4012_v15, %v6613_v6  ;;  %v8000_v14 = vrot.slane %v3697_v11, %v6613_v6  ;;  %v5077_v42 = vcombine.low %v7848_v3, %v5076_v26  ;;  %5583 = vmatpush1.msra.mxu0 %v5387_v9 }
 0x1d4   : > { %v6309_v40 = vpack.i.bf16 %v4796_v4, %v4779_v30  ;;  %v6224_v48 = vpop.f32.mrf.mxu0  ;;  %v8006_v17 = vrot.slane %v4475_v28, %v6613_v6  ;;  %v8010_v36 = vrot.slane %v3696_v23, %v6613_v6  ;;  %v4917_v4 = vcombine.low %v7758_v34, %v7809_v31  ;;  %v5381_v31 = vld [vmem:[%s9053_s3 + $0xe0] sm:$0xff]  ;;  %5477 = vmatprep.subr.mxu1 %v5382_v2 }
 0x1d5   : > { %v2890_v30 = vmax.f32 %v2873_v27, 0.0  ;;  %v5078_v15 = vcombine.low %v4027_v37, %v7997_v5  ;;  %v8020_v11 = vrot.slane %v6088_v7, %v6613_v6  ;;  %v4933_v3 = vcombine.low %v7820_v24, %v7870_v44  ;;  %v5383_v24 = vld [vmem:[%s9053_s3 + $0xf0] sm:$0xff]  ;;  %5584 = vmatprep.subr.mxu0 %v5384_v22  ;;  %5478 = vmatpush1.msra.mxu1 %v5381_v31 }
 0x1d6   : > { %6310 = vrot.lane.b32.xlu0 %v6309_v40, %s6486_s20  ;;  %v4924_v23 = vrot.slane %v4916_v10, %v6613_v6  ;;  %v4931_v27 = vrot.slane %v4917_v4, %v6613_v6  ;;  %v4934_v40 = vcombine.low %v8010_v36, %v8000_v14  ;;  %v3162_v21 = vcombine.high %v7911_v56, %v7911_v56  ;;  %v5378_v56 = vld [vmem:[%s9053_s3 + $0xc8] sm:$0xff] }
 0x1d7   : > { %2935 = vst.msk [vmem:[#allocation3 + $0x55] sm:$0x7] %vm2934_vm7, %v2890_v30  ;;  %v5085_v7 = vrot.slane %v5078_v15, %v6613_v6  ;;  %v4941_v10 = vrot.slane %v4933_v3, %v6613_v6  ;;  %v3209_v28 = vcombine.high %v7956_v58, %v7956_v58  ;;  %v3994_v26 = vcombine.low %v7942_v41, %v7895_v50 }
 0x1d8   : > { %2938 = vst.msk [vmem:[#allocation3 + $0x5e] sm:$0xf8] %vm2937_vm8, %v2890_v30  ;;  %v4932_v9 = vcombine.low %v4924_v23, %v4931_v27  ;;  %v4948_v2 = vrot.slane %v4934_v40, %v6613_v6  ;;  %v3176_v48 = vrot.slane %v3162_v21, %v6613_v6  ;;  %v4042_v4 = vcombine.low %v7967_v29, %v4027_v37  ;;  %v5380_v30 = vld [vmem:[%s9053_s3 + $0xd8] sm:$0xff]  ;;  %v5377_v29 = vld [vmem:[%s9053_s3 + $0xc0] sm:$0xff] }
 0x1d9   : > { %v5086_v15 = vcombine.low %v8006_v17, %v5085_v7  ;;  %v8055_v50 = vrot.slane %v3994_v26, %v6613_v6  ;;  %v8059_v41 = vcombine.high %v7924_v47, %v7924_v47  ;;  %v4266_v22 = vcombine.low %v7758_v34, %v7761_v45  ;;  %5585 = vmatpush1.msra.mxu0 %v5383_v24 }
 0x1da   : > { %v4949_v37 = vcombine.low %v4941_v10, %v4948_v2  ;;  %v8067_v3 = vrot.slane %v3176_v48, %v6613_v6  ;;  %v8070_v31 = vrot.slane %v4042_v4, %v6613_v6  ;;  %v3178_v23 = vcombine.high %v3176_v48, %v3176_v48  ;;  %5479 = vmatprep.subr.mxu1 %v5378_v56  ;;  %v5379_v10 = vld [vmem:[%s9053_s3 + $0xd0] sm:$0xff] }
 0x1db   : > { %v6319_v27 = vpack.i.bf16 %v5086_v15, %v5077_v42  ;;  %v8075_v34 = vrot.slane %v4266_v22, %v6613_v6  ;;  %v9078_v45 = vcombine.low %v7824_v20, %v7870_v44  ;;  %5586 = vmatprep.subr.mxu0 %v5380_v30  ;;  %v4283_v7 = vcombine.low %v8059_v41, %v7577_v35 }
 0x1dc   : > { %v6314_v21 = vpack.i.bf16 %v4949_v37, %v4932_v9  ;;  %v4013_v24 = vcombine.low %v3209_v28, %v8067_v3  ;;  %v8085_v42 = vrot.slane %v3178_v23, %v6613_v6  ;;  %5480 = vmatpush1.msra.mxu1 %v5377_v29  ;;  %v8097_v28 = vcombine.high %v8067_v3, %v8067_v3  ;;  %v5374_v9 = vld [vmem:[%s9053_s3 + $0xa8] sm:$0xff]  ;;  %v5373_v37 = vld [vmem:[%s9053_s3 + $0xa0] sm:$0xff] }
 0x1dd   : > { %v8081_v40 = vrot.slane %v9078_v45, %v6613_v6  ;;  %6320 = vrot.lane.b32.xlu0 %v6319_v27, %s6487_s8  ;;  %v4467_v26 = vcombine.low %v7930_v18, %v7935_v54  ;;  %v3727_v56 = vcombine.low %v7870_v44, %v8010_v36  ;;  %v8113_v4 = vrot.slane %v4283_v7, %v6613_v6  ;;  %v5376_v54 = vld [vmem:[%s9053_s3 + $0xb8] sm:$0xff] }
 0x1de   : > { %6315 = vrot.lane.b32.xlu1 %v6314_v21, %s6488_s16  ;;  %v8108_v2 = vrot.slane %v4013_v24, %v6613_v6  ;;  %v3744_v48 = vcombine.low %v8067_v3, %v8085_v42  ;;  %v2955_v18 = vld [vmem:[#allocation3 + $0x50] sm:$0xff]  ;;  %v4059_v15 = vcombine.low %v8085_v42, %v8097_v28  ;;  %5587 = vmatpush1.msra.mxu0 %v5379_v10  ;;  %v5375_v24 = vld [vmem:[%s9053_s3 + $0xb0] sm:$0xff] }
 0x1df   : > { %v3217_v30 = vrot.slane %v2955_v18, %v6613_v6  ;;  %v4474_v22 = vrot.slane %v4467_v26, %v6613_v6  ;;  %v3210_v29 = vcombine.high %v2955_v18, %v2955_v18  ;;  %v4291_v45 = vcombine.low %v8010_v36, %v8113_v4  ;;  %5481 = vmatprep.subr.mxu1 %v5374_v9  ;;  %v5370_v36 = vld [vmem:[%s9053_s3 + $0x88] sm:$0xff] }
 0x1e0   : > { %v4043_v23 = vcombine.low %v7997_v5, %v8108_v2  ;;  %v8130_v27 = vrot.slane %v3744_v48, %v6613_v6  ;;  %v8135_v21 = vrot.slane %v3727_v56, %v6613_v6  ;;  %v8142_v26 = vrot.slane %v4059_v15, %v6613_v6  ;;  %5588 = vmatprep.subr.mxu0 %v5376_v54  ;;  %v5369_v54 = vld [vmem:[%s9053_s3 + $0x80] sm:$0xff] }
 0x1e1   : > { %v3225_v7 = vcombine.high %v3217_v30, %v3217_v30  ;;  %v3233_v10 = vrot.slane %v3217_v30, %v6613_v6  ;;  %v4476_v48 = vcombine.low %v4474_v22, %v7997_v5  ;;  %v4299_v44 = vrot.slane %v4291_v45, %v6613_v6  ;;  %5482 = vmatpush1.msra.mxu1 %v5373_v37  ;;  %v5372_v5 = vld [vmem:[%s9053_s3 + $0x98] sm:$0xff]  ;;  %v5371_v37 = vld [vmem:[%s9053_s3 + $0x90] sm:$0xff] }
 0x1e2   : > { %v2877_v56 = vpop.f32.mrf.mxu0  ;;  %v4057_v9 = vrot.slane %v4043_v23, %v6613_v6  ;;  %v4292_v18 = vcombine.low %v8020_v11, %v8130_v27  ;;  %v3224_v30 = vrot.slane %v3210_v29, %v6613_v6  ;;  %v4500_v29 = vcombine.low %v8108_v2, %v8142_v26  ;;  %5589 = vmatpush1.msra.mxu0 %v5375_v24  ;;  %v5366_v24 = vld [vmem:[%s9053_s3 + $0x68] sm:$0xff] }
 0x1e3   : > { %v2878_v15 = vadd.f32 %v7491_v49, %v2877_v56  ;;  %v8161_v22 = vrot.slane %v3225_v7, %v6613_v6  ;;  %v8164_v23 = vrot.slane %v4476_v48, %v6613_v6  ;;  %v8178_v56 = vcombine.high %v3233_v10, %v3233_v10  ;;  %5483 = vmatprep.subr.mxu1 %v5370_v36 }
 0x1e4   : > { %v6227_v45 = vpop.f32.mrf.mxu0  ;;  %v4058_v20 = vcombine.low %v8070_v31, %v4057_v9  ;;  %v8173_v47 = vrot.slane %v4292_v18, %v6613_v6  ;;  %v8176_v7 = vrot.slane %v3224_v30, %v6613_v6  ;;  %5590 = vmatprep.subr.mxu0 %v5372_v5  ;;  %5484 = vmatpush1.msra.mxu1 %v5369_v54 }
 0x1e5   : > { %v2891_v48 = vmax.f32 %v2878_v15, 0.0  ;;  %v6094_v60 = vcombine.high %v3233_v10, %v8161_v22  ;;  %v4492_v9 = vcombine.low %v3233_v10, %v8161_v22  ;;  %v9079_v18 = vcombine.low %v7905_v53, %v8055_v50  ;;  %5591 = vmatpush1.msra.mxu0 %v5371_v37  ;;  %v5368_v45 = vld [vmem:[%s9053_s3 + $0x78] sm:$0xff]  ;;  %5485 = vmatprep.subr.mxu1 %v5366_v24 }
 0x1e6   : > { %v4307_v36 = vcombine.low %v4299_v44, %v8173_v47  ;;  %v8192_v51 = vrot.slane %v4500_v29, %v6613_v6  ;;  %v3257_v15 = vcombine.high %v8161_v22, %v8161_v22  ;;  %v3746_v44 = vcombine.low %v8161_v22, %v8178_v56  ;;  %5592 = vmatprep.subr.mxu0 %v5368_v45  ;;  %v5364_v45 = vld [vmem:[%s9053_s3 + $0x58] sm:$0xff] }
 0x1e7   : > { %v6324_v52 = vpack.i.bf16 %v4058_v20, %v9079_v18  ;;  %2940 = vst.msk [vmem:[#allocation3 + $0x66] sm:$0x3] %vm2939_vm9, %v2891_v48  ;;  %v8202_v53 = vrot.slane %v6094_v60, %v6613_v6  ;;  %v4499_v50 = vrot.slane %v4492_v9, %v6613_v6  ;;  %v3745_v20 = vcombine.low %v8097_v28, %v3233_v10  ;;  %v5365_v10 = vld [vmem:[%s9053_s3 + $0x60] sm:$0xff] }
 0x1e8   : > { %2943 = vst.msk [vmem:[#allocation3 + $0x6f] sm:$0xfc] %vm2942_vm10, %v2891_v48  ;;  %v9080_v5 = vcombine.low %v8075_v34, %v8081_v40  ;;  %v3747_v29 = vcombine.low %v3257_v15, %v8176_v7  ;;  %v9081_v60 = vcombine.high %v8067_v3, %v8085_v42  ;;  %v4644_v28 = vcombine.low %v8059_v41, %v7956_v58  ;;  %v5367_v3 = vld [vmem:[%s9053_s3 + $0x70] sm:$0xff] }
 0x1e9   : > { %6325 = vrot.lane.b32.xlu1 %v6324_v52, %s6483_s9  ;;  %v4501_v52 = vcombine.low %v4499_v50, %v8202_v53  ;;  %v8226_v34 = vrot.slane %v3745_v20, %v6613_v6  ;;  %v8229_v40 = vrot.slane %v3746_v44, %v6613_v6  ;;  %v3226_v24 = vcombine.high %v3224_v30, %v3224_v30  ;;  %v5362_v30 = vld [vmem:[%s9053_s3 + $0x48] sm:$0xff] }
 0x1ea   : > { %v6329_v54 = vpack.i.bf16 %v4307_v36, %v9080_v5  ;;  %v8217_v37 = vrot.slane %v9081_v60, %v6613_v6  ;;  %v2882_v58 = vpop.f32.mrf.mxu0  ;;  %v8236_v41 = vrot.slane %v3747_v29, %v6613_v6  ;;  %v4651_v48 = vrot.slane %v4644_v28, %v6613_v6  ;;  %5486 = vmatpush1.msra.mxu1 %v5365_v10  ;;  %v5363_v29 = vld [vmem:[%s9053_s3 + $0x50] sm:$0xff] }
 0x1eb   : > { %v8243_v18 = vcombine.high %v8085_v42, %v8085_v42  ;;  %v2883_v36 = vadd.f32 %v7491_v49, %v2882_v58  ;;  %v4515_v15 = vrot.slane %v4501_v52, %v6613_v6  ;;  %v3776_v50 = vcombine.low %v8130_v27, %v8226_v34  ;;  %v5361_v42 = vld [vmem:[%s9053_s3 + $0x40] sm:$0xff]  ;;  %5593 = vmatpush1.msra.mxu0 %v5367_v3 }
 0x1ec   : > { %6330 = vrot.lane.b32.xlu0 %v6329_v54, %s6482_s18  ;;  %v4661_v9 = vcombine.low %v8130_v27, %v8217_v37  ;;  %v8256_v20 = vrot.slane %v3226_v24, %v6613_v6  ;;  %v6230_v44 = vpop.f32.mrf.mxu0  ;;  %v3777_v5 = vcombine.low %v8229_v40, %v8236_v41  ;;  %v4652_v54 = vcombine.low %v4651_v48, %v8020_v11 }
 0x1ed   : > { %v4797_v27 = vcombine.low %v7577_v35, %v7960_v8  ;;  %v2892_v60 = vmax.f32 %v2883_v36, 0.0  ;;  %v4516_v28 = vcombine.low %v8192_v51, %v4515_v15  ;;  %v8274_v10 = vrot.slane %v3776_v50, %v6613_v6  ;;  %5487 = vmatprep.subr.mxu1 %v5362_v30  ;;  %5594 = vmatprep.subr.mxu0 %v5364_v45  ;;  %v5358_v35 = vld [vmem:[%s9053_s3 + $0x28] sm:$0xff]  ;;  %v5360_v50 = vld [vmem:[%s9053_s3 + $0x38] sm:$0xff] }
 0x1ee   : > { %v8265_v49 = vrot.slane %v4661_v9, %v6613_v6  ;;  %v4062_v52 = vcombine.low %v8176_v7, %v8256_v20  ;;  %v8282_v8 = vrot.slane %v3777_v5, %v6613_v6  ;;  %v4659_v24 = vrot.slane %v4652_v54, %v6613_v6  ;;  %v2957_v48 = vld [vmem:[#allocation3 + $0x60] sm:$0xff]  ;;  %5488 = vmatpush1.msra.mxu1 %v5361_v42  ;;  %v5357_v5 = vld [vmem:[%s9053_s3 + $0x20] sm:$0xff] }
 0x1ef   : > { %9082 = vst [vmem:[#allocation14_spill] sm:$0xff] %v8274_v10  ;;  %v4804_v3 = vrot.slane %v4797_v27, %v6613_v6  ;;  %v4814_v58 = vcombine.low %v8243_v18, %v7580_v46  ;;  %2944 = vst.msk [vmem:[#allocation3 + $0x77] sm:$0x1] %vm2895_vm14, %v2892_v60  ;;  %v9084_v9 = vcombine.low %v8006_v17, %v8164_v23  ;;  %5595 = vmatpush1.msra.mxu0 %v5363_v29  ;;  %vm5321_vm14 = vcmask 523264  }
 0x1f0   : > { %9083 = vst [vmem:[#allocation15_spill] sm:$0xff] %v8282_v8  ;;  %v8293_v45 = vrot.slane %v4062_v52, %v6613_v6  ;;  %v3258_v36 = vcombine.high %v2957_v48, %v2957_v48  ;;  %v8297_v15 = vcombine.high %v8176_v7, %v8176_v7  ;;  %v4660_v42 = vcombine.low %v8135_v21, %v4659_v24  ;;  %v5359_v24 = vld [vmem:[%s9053_s3 + $0x30] sm:$0xff] }
 0x1f1   : > { %v6334_v30 = vpack.i.bf16 %v4516_v28, %v9084_v9  ;;  %v4669_v44 = vcombine.low %v8265_v49, %v8282_v8  ;;  %v4805_v23 = vcombine.low %v4804_v3, %v8108_v2  ;;  %5489 = vmatprep.subr.mxu1 %v5358_v35  ;;  %v4821_v27 = vrot.slane %v4814_v58, %v6613_v6 }
 0x1f2   : > { %v4092_v54 = vcombine.low %v8202_v53, %v8293_v45  ;;  %v3272_v29 = vrot.slane %v3258_v36, %v6613_v6  ;;  %v3265_v60 = vrot.slane %v2957_v48, %v6613_v6  ;;  %v3793_v2 = vcombine.low %v8256_v20, %v8297_v15  ;;  %5596 = vmatprep.subr.mxu0 %v5360_v50 }
 0x1f3   : > { %6335 = vrot.lane.b32.xlu1 %v6334_v30, %s6484_s29  ;;  %v6339_v28 = vpack.i.bf16 %v4669_v44, %v4660_v42  ;;  %v4812_v52 = vrot.slane %v4805_v23, %v6613_v6  ;;  %v4950_v35 = vcombine.low %v8226_v34, %v8229_v40  ;;  %v4822_v58 = vcombine.low %v8142_v26, %v4821_v27  ;;  %v5354_v30 = vld [vmem:[%s9053_s3 + $0x8] sm:$0xff]  ;;  %v5356_v42 = vld [vmem:[%s9053_s3 + $0x18] sm:$0xff] }
 0x1f4   : > { %v8326_v3 = vrot.slane %v4092_v54, %v6613_v6  ;;  %v3274_v48 = vcombine.high %v3272_v29, %v3272_v29  ;;  %v3273_v9 = vcombine.high %v3265_v60, %v3265_v60  ;;  %5490 = vmatpush1.msra.mxu1 %v5357_v5  ;;  %v8335_v40 = vrot.slane %v3265_v60, %v6613_v6  ;;  %v5353_v54 = vld [vmem:[%s9053_s3] sm:$0xff] }
 0x1f5   : > { %6340 = vrot.lane.b32.xlu0 %v6339_v28, %s6485_s17  ;;  %v4813_v34 = vcombine.low %v8070_v31, %v4812_v52  ;;  %v8338_v36 = vrot.slane %v3793_v2, %v6613_v6  ;;  %v8341_v50 = vrot.slane %v4950_v35, %v6613_v6  ;;  %v4829_v44 = vrot.slane %v4822_v58, %v6613_v6 }
 0x1f6   : > { %v8348_v23 = vrot.slane %v3274_v48, %v6613_v6  ;;  %v8351_v31 = vrot.slane %v3273_v9, %v6613_v6  ;;  %v8354_v5 = vrot.slane %v3272_v29, %v6613_v6  ;;  %5597 = vmatpush1.msra.mxu0 %v5359_v24  ;;  %v8365_v28 = vcombine.high %v8335_v40, %v8335_v40  ;;  %v5355_v29 = vld [vmem:[%s9053_s3 + $0x10] sm:$0xff] }
 0x1f7   : > { %v4325_v27 = vcombine.low %v8236_v41, %v8338_v36  ;;  %v4060_v52 = vcombine.low %v8243_v18, %v8161_v22  ;;  %5491 = vmatprep.subr.mxu1 %v5354_v30  ;;  %v4830_v2 = vcombine.low %v4829_v44, %v8326_v3  ;;  %5598 = vmatprep.subr.mxu0 %v5356_v42  ;;  %v5422_v22 = vld [vmem:[%s9053_s3 + $0x228] sm:$0xff] }
 0x1f8   : > { %v8375_v35 = vcombine.high %v8348_v23, %v8348_v23  ;;  %v3794_v24 = vcombine.low %v8335_v40, %v8351_v31  ;;  %v6089_v58 = vcombine.high %v8335_v40, %v8351_v31  ;;  %v3305_v48 = vcombine.high %v8351_v31, %v8351_v31  ;;  %5492 = vmatpush1.msra.mxu1 %v5353_v54 }
 0x1f9   : > { %v8385_v18 = vrot.slane %v4325_v27, %v6613_v6  ;;  %v4076_v9 = vrot.slane %v4060_v52, %v6613_v6  ;;  %v6095_v30 = vcombine.high %v8176_v7, %v8256_v20  ;;  %v6344_v44 = vpack.i.bf16 %v4830_v2, %v4813_v34  ;;  %5599 = vmatpush1.msra.mxu0 %v5355_v29  ;;  %v5424_v27 = vld [vmem:[%s9053_s3 + $0x238] sm:$0xff]  ;;  %v5421_v2 = vld [vmem:[%s9053_s3 + $0x220] sm:$0xff] }
 0x1fa   : > { %v4163_v42 = vrot.slane %v8375_v35, %v6613_v6  ;;  %v8395_v17 = vrot.slane %v3794_v24, %v6613_v6  ;;  %v8398_v60 = vrot.slane %v6089_v58, %v6613_v6  ;;  %v4109_v52 = vcombine.low %v8351_v31, %v8365_v28  ;;  %5521 = vmatprep.subr.mxu1 %v5422_v22 }
 0x1fb   : > { %v4110_v7 = vcombine.low %v3305_v48, %v8354_v5  ;;  %v8407_v34 = vrot.slane %v6095_v30, %v6613_v6  ;;  %v5087_v54 = vcombine.low %v4076_v9, %v8202_v53  ;;  %6345 = vrot.lane.b32.xlu1 %v6344_v44, %s6486_s20  ;;  %v8421_v48 = vcombine.high %v8354_v5, %v8354_v5  ;;  %v5423_v53 = vld [vmem:[%s9053_s3 + $0x230] sm:$0xff] }
 0x1fc   : > { %v4170_v29 = vrot.slane %v4163_v42, %v6613_v6  ;;  %v4959_v24 = vcombine.low %v8395_v17, %v8398_v60  ;;  %v4125_v22 = vrot.slane %v4109_v52, %v6613_v6  ;;  %5628 = vmatprep.subr.mxu0 %v5424_v27  ;;  %v4091_v8 = vcombine.low %v8142_v26, %v4076_v9  ;;  %v5418_v52 = vld [vmem:[%s9053_s3 + $0x208] sm:$0xff]  ;;  %v5420_v26 = vld [vmem:[%s9053_s3 + $0x218] sm:$0xff] }
 0x1fd   : > { %v4132_v30 = vrot.slane %v4110_v7, %v6613_v6  ;;  %v5094_v44 = vrot.slane %v5087_v54, %v6613_v6  ;;  %v5096_v42 = vcombine.low %v8293_v45, %v8407_v34  ;;  %v4111_v10 = vcombine.low %v8348_v23, %v8421_v48  ;;  %5522 = vmatpush2.msra.mxu1 %v5421_v2 }
 0x1fe   : > { %v4966_v58 = vrot.slane %v4959_v24, %v6613_v6  ;;  %v8437_v61 = vcombine.high %v8256_v20, %v8256_v20  ;;  %v4140_v24 = vcombine.low %v8407_v34, %v4125_v22  ;;  %5629 = vmatpush2.msra.mxu0 %v5423_v53  ;;  %v4099_v9 = vrot.slane %v4091_v8, %v6613_v6  ;;  %v5417_v53 = vld [vmem:[%s9053_s3 + $0x200] sm:$0xff] }
 0x1ff   : > { %v4526_v7 = vcombine.low %v4125_v22, %v4132_v30  ;;  %v5095_v54 = vcombine.low %v8192_v51, %v5094_v44  ;;  %v5103_v27 = vrot.slane %v5096_v42, %v6613_v6  ;;  %4183 = vrot.lane.b32.xlu1 %v4170_v29, %s6483_s9  ;;  %v8452_v2 = vrot.slane %v4111_v10, %v6613_v6  ;;  %v2959_v10 = vld [vmem:[#allocation3 + $0x70] sm:$0xff] }
 0x200   : > { %v4967_v20 = vcombine.low %v8385_v18, %v4966_v58  ;;  %v3796_v51 = vcombine.low %v8354_v5, %v8348_v23  ;;  %v4148_v44 = vrot.slane %v4140_v24, %v6613_v6  ;;  %v4309_v29 = vcombine.low %v7580_v46, %v8178_v56  ;;  %5523 = vmatprep.subr.mxu1 %v5418_v52  ;;  %v5419_v46 = vld [vmem:[%s9053_s3 + $0x210] sm:$0xff] }
 0x201   : > { %v8460_v22 = vrot.slane %v4526_v7, %v6613_v6  ;;  %v4341_v8 = vcombine.low %v8437_v61, %v7593_v1  ;;  %v9085_v58 = vcombine.low %v8173_v47, %v8341_v50  ;;  %v4107_v55 = vcombine.low %v4099_v9, %v8326_v3  ;;  %5630 = vmatprep.subr.mxu0 %v5420_v26 }
 0x202   : > { %v4141_v39 = vcombine.low %v4132_v30, %v8452_v2  ;;  %v8473_v7 = vrot.slane %v3796_v51, %v6613_v6  ;;  %v8480_v52 = vrot.slane %v4309_v29, %v6613_v6  ;;  %v6099_v47 = vcombine.high %v8354_v5, %v8348_v23  ;;  %5524 = vmatpush2.msra.mxu1 %v5417_v53 }
 0x203   : > { %v6349_v42 = vpack.i.bf16 %v4967_v20, %v9085_v58  ;;  %v5104_v56 = vcombine.low %v5103_v27, %v8460_v22  ;;  %v8485_v3 = vrot.slane %v4341_v8, %v6613_v6  ;;  %v3419_v30 = vcombine.high %v2959_v10, %v2959_v10  ;;  %5631 = vmatpush2.msra.mxu0 %v5419_v46 }
 0x204   : > { %v8489_v50 = vrot.slane %v4141_v39, %v6613_v6  ;;  %v3426_v24 = vrot.slane %v2959_v10, %v6613_v6  ;;  %v3826_v27 = vcombine.low %v8398_v60, %v8473_v7  ;;  %v4324_v20 = vcombine.low %v8217_v37, %v8480_v52 }
 0x205   : > { %6350 = vrot.lane.b32.xlu0 %v6349_v42, %s6488_s16  ;;  %v6354_v26 = vpack.i.bf16 %v5104_v56, %v5095_v54  ;;  %v8497_v23 = vrot.slane %v6099_v47, %v6613_v6  ;;  %v4357_v5 = vcombine.low %v8485_v3, %v8398_v60  ;;  %v3433_v9 = vrot.slane %v3419_v30, %v6613_v6 }
 0x206   : > { %v4156_v39 = vcombine.low %v4148_v44, %v8489_v50  ;;  %v3434_v51 = vcombine.high %v3426_v24, %v3426_v24  ;;  %v3442_v53 = vrot.slane %v3426_v24, %v6613_v6  ;;  %v4332_v54 = vrot.slane %v4324_v20, %v6613_v6 }
 0x207   : > { %6355 = vrot.lane.b32.xlu1 %v6354_v26, %s6487_s8  ;;  %v4358_v37 = vcombine.low %v8473_v7, %v8497_v23  ;;  %v4365_v29 = vrot.slane %v4357_v5, %v6613_v6  ;;  %v8510_v8 = vrot.slane %v3826_v27, %v6613_v6  ;;  %v3435_v10 = vcombine.high %v3433_v9, %v3433_v9 }
 0x208   : > { %v6359_v60 = vpack.i.bf16 %v4156_v39, %v4107_v55  ;;  %v3449_v44 = vrot.slane %v3433_v9, %v6613_v6  ;;  %v8514_v58 = vrot.slane %v3434_v51, %v6613_v6  ;;  %v4340_v42 = vcombine.low %v4332_v54, %v8385_v18 }
 0x209   : > { %v4372_v46 = vrot.slane %v4358_v37, %v6613_v6  ;;  %v8518_v56 = vcombine.high %v3442_v53, %v3442_v53  ;;  %v4670_v47 = vcombine.low %v8437_v61, %v8351_v31  ;;  %v8524_v30 = vrot.slane %v3435_v10, %v6613_v6 }
 0x20a   : > { %6360 = vrot.lane.b32.xlu0 %v6359_v60, %s6483_s9  ;;  %v8526_v55 = vcombine.high %v3449_v44, %v3449_v44  ;;  %v3466_v24 = vcombine.high %v8514_v58, %v8514_v58  ;;  %v4517_v18 = vcombine.low %v8297_v15, %v8335_v40  ;;  %v4542_v61 = vcombine.low %v3442_v53, %v8514_v58  ;;  %s6489_s9 = smov [#allocation4]  }
 0x20b   : > { %v4373_v27 = vcombine.low %v4365_v29, %v4372_v46  ;;  %v4677_v26 = vrot.slane %v4670_v47, %v6613_v6  ;;  %v4687_v20 = vcombine.low %v8514_v58, %v8518_v56  ;;  %v6100_v9 = vcombine.high %v3442_v53, %v8514_v58  ;;  %s6413_s28 = sshll.u32 %s6489_s9, 4  ;;  %s6414_s28 = int_to_ptr.vmem [resolvable:$false] %s6413_s28 }
 0x20c   : > { %v4688_v31 = vcombine.low %v3466_v24, %v3449_v44  ;;  %v4689_v5 = vcombine.low %v8524_v30, %v8526_v55  ;;  %v4524_v39 = vrot.slane %v4517_v18, %v6613_v6  ;;  %v4544_v40 = vcombine.low %v3449_v44, %v8524_v30 }
 0x20d   : > { %v6364_v51 = vpack.i.bf16 %v4373_v27, %v4340_v42  ;;  %v4678_v54 = vcombine.low %v8338_v36, %v4677_v26  ;;  %v4696_v15 = vrot.slane %v4687_v20, %v6613_v6  ;;  %v4551_v10 = vrot.slane %v4542_v61, %v6613_v6 }
 0x20e   : > { %v4703_v37 = vrot.slane %v4688_v31, %v6613_v6  ;;  %v4710_v29 = vrot.slane %v4689_v5, %v6613_v6  ;;  %v4525_v60 = vcombine.low %v8293_v45, %v4524_v39  ;;  %v4558_v47 = vrot.slane %v6100_v9, %v6613_v6 }
 0x20f   : > { %6365 = vrot.lane.b32.xlu1 %v6364_v51, %s6482_s18  ;;  %v4685_v46 = vrot.slane %v4678_v54, %v6613_v6  ;;  %v4711_v42 = vcombine.low %v8497_v23, %v4696_v15  ;;  %v4565_v24 = vrot.slane %v4544_v40, %v6613_v6  ;;  %v9086_v18 = vcombine.low %v7507_v16, %v7570_v43 }
 0x210   : > { %v4712_v26 = vcombine.low %v4703_v37, %v4710_v29  ;;  %v4566_v45 = vcombine.low %v8452_v2, %v4551_v10  ;;  %v4968_v20 = vcombine.low %v8421_v48, %v3442_v53  ;;  %v4533_v31 = vrot.slane %v4525_v60, %v6613_v6 }
 0x211   : > { %v3579_v27 = vrot.slane %v9086_v18, %v6613_v6  ;;  %v4686_v61 = vcombine.low %v4685_v46, %v8510_v8  ;;  %v4567_v5 = vcombine.low %v4558_v47, %v4565_v24  ;;  %v4977_v39 = vcombine.low %v4696_v15, %v4703_v37 }
 0x212   : > { %v4719_v9 = vrot.slane %v4711_v42, %v6613_v6  ;;  %v8562_v51 = vrot.slane %v4712_v26, %v6613_v6  ;;  %v4574_v54 = vrot.slane %v4566_v45, %v6613_v6  ;;  %v4975_v16 = vrot.slane %v4968_v20, %v6613_v6 }
 0x213   : > { %v4581_v43 = vrot.slane %v4567_v5, %v6613_v6  ;;  %v4991_v40 = vrot.slane %v4977_v39, %v6613_v6  ;;  %v5017_v53 = vcombine.low %v4710_v29, %v7596_v32  ;;  %v4831_v60 = vcombine.low %v7593_v1, %v8365_v28 }
 0x214   : > { %v4727_v15 = vcombine.low %v4719_v9, %v8562_v51  ;;  %v4976_v37 = vcombine.low %v8473_v7, %v4975_v16  ;;  %v4848_v10 = vcombine.low %v8375_v35, %v7481_v33  ;;  %v6101_v46 = vcombine.high %v3449_v44, %v8524_v30 }
 0x215   : > { %v4541_v42 = vcombine.low %v4533_v31, %v8460_v22  ;;  %v4582_v18 = vcombine.low %v4574_v54, %v4581_v43  ;;  %v5025_v26 = vrot.slane %v5017_v53, %v6613_v6  ;;  %v4838_v45 = vrot.slane %v4831_v60, %v6613_v6 }
 0x216   : > { %v6374_v32 = vpack.i.bf16 %v4727_v15, %v4686_v61  ;;  %v4984_v29 = vrot.slane %v4976_v37, %v6613_v6  ;;  %v4856_v1 = vrot.slane %v4848_v10, %v6613_v6  ;;  %v4863_v28 = vrot.slane %v6101_v46, %v6613_v6 }
 0x217   : > { %v6369_v7 = vpack.i.bf16 %v4582_v18, %v4541_v42  ;;  %v5033_v20 = vcombine.low %v5025_v26, %v7615_v12  ;;  %v4839_v5 = vcombine.low %v8407_v34, %v4838_v45  ;;  %v5161_v22 = vrot.slane %v7607_v62, %v6613_v6 }
 0x218   : > { %6375 = vrot.lane.b32.xlu1 %v6374_v32, %s6485_s17  ;;  %v4992_v44 = vcombine.low %v4984_v29, %v4991_v40  ;;  %v4864_v31 = vcombine.low %v4856_v1, %v4558_v47  ;;  %v4865_v39 = vcombine.low %v4565_v24, %v4863_v28  ;;  %v5105_v61 = vcombine.low %v8375_v35, %v8514_v58 }
 0x219   : > { %v3581_v9 = vcombine.low %v7527_v19, %v3579_v27  ;;  %6370 = vrot.lane.b32.xlu0 %v6369_v7, %s6484_s29  ;;  %v4846_v54 = vrot.slane %v4839_v5, %v6613_v6  ;;  %v4589_v12 = vrot.slane %v8526_v55, %v6613_v6  ;;  %v9087_v62 = vrot.slane %v7565_v25, %v6613_v6 }
 0x21a   : > { %v6384_v16 = vpack.i.bf16 %v5033_v20, %v4992_v44  ;;  %v4872_v47 = vrot.slane %v4864_v31, %v6613_v6  ;;  %v4879_v24 = vrot.slane %v4865_v39, %v6613_v6  ;;  %v5112_v35 = vrot.slane %v5105_v61, %v6613_v6 }
 0x21b   : > { %v5146_v34 = vcombine.low %v4863_v28, %v9087_v62  ;;  %v3728_v19 = vcombine.low %v8000_v14, %v8020_v11  ;;  %v4887_v27 = vrot.slane %v7601_v38, %v6613_v6  ;;  %v9088_v25 = vcombine.low %v7473_v0, %v7476_v13 }
 0x21c   : > { %6385 = vrot.lane.b32.xlu1 %v6384_v16, %s6488_s16  ;;  %v4847_v40 = vcombine.low %v4846_v54, %v8489_v50  ;;  %v4880_v53 = vcombine.low %v4872_v47, %v4879_v24  ;;  %v5113_v60 = vcombine.low %v8452_v2, %v5112_v35  ;;  %v3532_v14 = vcombine.high %v7512_v63, %v7512_v63 }
 0x21d   : > { %v5154_v58 = vrot.slane %v5146_v34, %v6613_v6  ;;  %v3588_v55 = vrot.slane %v9088_v25, %v6613_v6  ;;  %v8616_v15 = vcombine.high %v8524_v30, %v8524_v30  ;;  %v3595_v37 = vrot.slane %v3581_v9, %v6613_v6 }
 0x21e   : > { %v6379_v10 = vpack.i.bf16 %v4880_v53, %v4847_v40  ;;  %v4596_v0 = vrot.slane %v4589_v12, %v6613_v6  ;;  %v5120_v13 = vrot.slane %v5113_v60, %v6613_v6  ;;  %v5169_v50 = vrot.slane %v3532_v14, %v6613_v6 }
 0x21f   : > { %v5162_v46 = vcombine.low %v5154_v58, %v5161_v22  ;;  %v3596_v42 = vcombine.low %v3588_v55, %v3595_v37  ;;  %v8623_v2 = vrot.slane %v3728_v19, %v6613_v6  ;;  %v4894_v18 = vrot.slane %v4887_v27, %v6613_v6 }
 0x220   : > { %6380 = vrot.lane.b32.xlu0 %v6379_v10, %s6486_s20  ;;  %4609 = vrot.lane.b32.xlu1 %v4596_v0, %s6484_s29  ;;  %v5121_v30 = vcombine.low %v5120_v13, %v4581_v43  ;;  %v4734_v26 = vrot.slane %v8616_v15, %v6613_v6  ;;  %v5207_v32 = vcombine.low %v8113_v4, %v8020_v11  ;;  %s6415_s29 = scalar_lea.vmem %s6414_s28, 32 }
 0x221   : > { %v3743_v45 = vcombine.low %v8135_v21, %v8623_v2  ;;  %v5216_v29 = vcombine.low %v8480_v52, %v8236_v41  ;;  %v9089_v28 = vcombine.low %v8338_v36, %v8395_v17  ;;  %v5225_v7 = vcombine.low %v8338_v36, %v8485_v3 }
 0x222   : > { %v6389_v1 = vpack.i.bf16 %v5162_v46, %v5121_v30  ;;  %v5234_v20 = vcombine.low %v7481_v33, %v8518_v56  ;;  %v5040_v5 = vrot.slane %v7521_v59, %v6613_v6  ;;  %v5176_v11 = vrot.slane %v5169_v50, %v6613_v6 }
 0x223   : > { %v8640_v43 = vrot.slane %v9089_v28, %v6613_v6  ;;  %v5214_v4 = vrot.slane %v5207_v32, %v6613_v6  ;;  %v5223_v41 = vrot.slane %v5216_v29, %v6613_v6  ;;  %v5232_v36 = vrot.slane %v5225_v7, %v6613_v6 }
 0x224   : > { %6390 = vrot.lane.b32.xlu0 %v6389_v1, %s6487_s8  ;;  %4907 = vrot.lane.b32.xlu1 %v4894_v18, %s6486_s20  ;;  %v5241_v33 = vrot.slane %v5234_v20, %v6613_v6  ;;  %v4741_v3 = vrot.slane %v4734_v26, %v6613_v6  ;;  %v5047_v44 = vrot.slane %v5040_v5, %v6613_v6  ;;  %s269_s20 = sand.u32 1, %s6461_s25  }
 0x225   : > { %v3841_v17 = vcombine.low %v8640_v43, %v8510_v8  ;;  %v5215_v52 = vcombine.low %v8135_v21, %v5214_v4  ;;  %v5224_v59 = vcombine.low %v8265_v49, %v5223_v41  ;;  %v8661_v56 = vcombine.low %v5232_v36, %v8510_v8  ;;  %v8672_v49 = vpop.permute.xlu0 %4400  ;;  %s270_s13 = scalar_lea.vmem [#allocation4], %s269_s20  ;;  %s5969_s14 = scalar_lea.sflag [#allocation5], %s269_s20 }
 0x226   : > { %v5242_v22 = vcombine.low %v8497_v23, %v5241_v33  ;;  %v9092_v33 = vld [vmem:[#allocation11_spill] sm:$0xff]  ;;  %s5981_s19 = sshll.u32 %s270_s13, 4  ;;  %s5982_s19 = int_to_ptr.vmem [resolvable:$true] %s5981_s19 }
 0x227   : > { %s6409_s18 = scalar_lea.vmem %s5982_s19, 16  ;;  %p6416_p0 = scmp.lt.s32.totalorder %s5982_s19, %s6414_s28 }
 0x228   : > { %4754 = vrot.lane.b32.xlu0 %v4741_v3, %s6485_s17  ;;  %5189 = vrot.lane.b32.xlu1 %v5176_v11, %s6487_s8  ;;  %v5249_v31 = vrot.slane %v5242_v22, %v6613_v6  ;;  %v9093_v3 = vld [vmem:[#allocation13_spill] sm:$0xff]  ;;  %p6410_p11 = scmp.ne.s32.totalorder %s5982_s19, %s6409_s18  ;;  %p6417_p1 = scmp.lt.s32.totalorder %s6415_s29, %s6409_s18 }
 0x229   : > { %v9094_v22 = vcombine.low %v9092_v33, %v9093_v3  ;;  %v6085_v3 = vld.sshfl [vmem:[#allocation3 + $0x88] sm:$0x1 pattern:$0x75316420] }
 0x22a   : > { %v8669_v39 = vcombine.low %v5249_v31, %v8562_v51  ;;  %v9090_v51 = vld [vmem:[#allocation12_spill] sm:$0xff]  ;;  %p6411_p12 = pnand %p6410_p11, %p6568_p5  ;;  %p6418_p2 = por %p6417_p1, %p6416_p0 }
 0x22b   : > { %v9091_v19 = vcombine.low %v7857_v57, %v9090_v51 }
 0x22c   : > { %5060 = vrot.lane.b32.xlu0 %v5047_v44, %s6488_s16  ;;  %p6412_p13 = pneg %p6411_p12 }
 0x22e   : > { %v6291_v61 = vpop.permute.xlu0 %6290  ;;  %p6419_p3 = pnand %p6418_p2, %p6412_p13 }
 0x22f   : > { %v6296_v54 = vpop.permute.xlu1 %6295  ;;  %v6292_v12 = vunpack.i.l.bf16 %v6291_v61  ;;  %v6293_v23 = vunpack.i.h.bf16 %v6291_v61 }
 0x230   : > { %v6297_v62 = vunpack.i.l.bf16 %v6296_v54  ;;  %v6298_v24 = vunpack.i.h.bf16 %v6296_v54 }
 0x231   : > { %v5298_v34 = vsel %vm2893_vm13, %v3596_v42, %v6292_v12  ;;  %v5299_v58 = vsel %vm2893_vm13, %v9091_v19, %v6293_v23 }
 0x232   : > { %v5306_v55 = vsel %vm5305_vm11, %v5298_v34, %v6297_v62  ;;  %v5307_v14 = vsel %vm5305_vm11, %v5299_v58, %v6298_v24 }
 0x23f   : > { %v6301_v9 = vpop.permute.xlu0 %6300 }
 0x240   : > { %v6302_v47 = vunpack.i.l.bf16 %v6301_v9  ;;  %v6303_v27 = vunpack.i.h.bf16 %v6301_v9 }
 0x241   : > { %v6306_v16 = vpop.permute.xlu1 %6305 }
 0x242   : > { %v6307_v25 = vunpack.i.l.bf16 %v6306_v16  ;;  %v5314_v40 = vsel %vm5313_vm12, %v5306_v55, %v6302_v47  ;;  %v6308_v60 = vunpack.i.h.bf16 %v6306_v16  ;;  %v5315_v10 = vsel %vm5313_vm12, %v5307_v14, %v6303_v27 }
 0x244   : > { %v5322_v42 = vsel %vm5321_vm14, %v5314_v40, %v6307_v25  ;;  %v5323_v26 = vsel %vm5321_vm14, %v5315_v10, %v6308_v60 }
 0x248   : > { %v6311_v35 = vpop.permute.xlu0 %6310 }
 0x249   : > { %v6312_v53 = vunpack.i.l.bf16 %v6311_v35  ;;  %v6313_v0 = vunpack.i.h.bf16 %v6311_v35 }
 0x24b   : > { %v5330_v30 = vsel %vm5329_vm15, %v5322_v42, %v6312_v53  ;;  %v5331_v1 = vsel %vm5329_vm15, %v5323_v26, %v6313_v0 }
 0x24f   : > { %v6321_v37 = vpop.permute.xlu0 %6320 }
 0x250   : > { %v6316_v13 = vpop.permute.xlu1 %6315  ;;  %v6322_v57 = vunpack.i.l.bf16 %v6321_v37  ;;  %v6323_v32 = vunpack.i.h.bf16 %v6321_v37 }
 0x251   : > { %v6318_v46 = vunpack.i.h.bf16 %v6316_v13  ;;  %v6317_v50 = vunpack.i.l.bf16 %v6316_v13 }
 0x253   : > { %v5338_v18 = vsel %vm5337_vm0, %v5330_v30, %v6317_v50  ;;  %v5339_v28 = vsel %vm5337_vm0, %v5331_v1, %v6318_v46  ;;  %v9095_v46 = vld [vmem:[#allocation8_spill] sm:$0xff]  ;;  %v9096_v1 = vld [vmem:[#allocation14_spill] sm:$0xff] }
 0x254   : > { %v5346_v29 = vsel %vm5345_vm1, %v5338_v18, %v6322_v57  ;;  %v5347_v7 = vsel %vm5345_vm1, %v5339_v28, %v6323_v32  ;;  %v5251_v57 = vcombine.low %v8616_v15, %v7601_v38  ;;  %v6103_v50 = vcombine.high %v9095_v46, %v7512_v63  ;;  %v9097_v28 = vld [vmem:[#allocation15_spill] sm:$0xff]  ;;  %v9099_v63 = vld [vmem:[#allocation9_spill] sm:$0xff] }
 0x255   : > { %5526 = vmatmul.mubr.f32.vlgmr.msra.gmra.mxu1 %v5346_v29  ;;  %5633 = vmatmul.mubr.f32.vlgmr.msra.gmra.mxu0 %v5346_v29  ;;  %v3848_v38 = vrot.slane %v8421_v48, %v6613_v6 }
 0x256   : > { %6105 = vmatprep.mubr.msk.f32.mxu1 %vm2893_vm13, %v5215_v52  ;;  %6112 = vmatprep.mubr.msk.f32.mxu0 %vm2893_vm13, %v5215_v52  ;;  %v5259_v30 = vrot.slane %v5251_v57, %v6613_v6  ;;  %v5266_v26 = vrot.slane %v6103_v50, %v6613_v6 }
 0x257   : > { %v3855_v48 = vrot.slane %v3848_v38, %v6613_v6  ;;  %v5821_v38 = vld [vmem:[%s9055_s5 + $0x1e0] sm:$0xff] }
 0x259   : > { %5532 = vmatmul.mubr.f32.gmra.mxu1 %v5347_v7  ;;  %5639 = vmatmul.mubr.f32.gmra.mxu0 %v5347_v7 }
 0x25a   : > { %6106 = vmatprep.mubr.msk.f32.mxu1 %vm2893_vm13, %v5224_v59  ;;  %6113 = vmatprep.mubr.msk.f32.mxu0 %vm2893_vm13, %v5224_v59 }
 0x25b   : > { %v6326_v20 = vpop.permute.xlu1 %6325 }
 0x25c   : > { %v6327_v5 = vunpack.i.l.bf16 %v6326_v20  ;;  %v6328_v36 = vunpack.i.h.bf16 %v6326_v20 }
 0x25e   : > { %v6331_v11 = vpop.permute.xlu0 %6330  ;;  %v5300_v44 = vsel %vm2893_vm13, %v9094_v22, %v6327_v5  ;;  %v5301_v59 = vsel %vm2893_vm13, %v3743_v45, %v6328_v36  ;;  %v5267_v5 = vcombine.low %v5259_v30, %v9099_v63  ;;  %v5808_v30 = vld [vmem:[%s9055_s5 + $0x178] sm:$0xff]  ;;  %v5805_v63 = vld [vmem:[%s9055_s5 + $0x160] sm:$0xff] }
 0x25f   : > { %v6332_v41 = vunpack.i.l.bf16 %v6331_v11  ;;  %v6333_v61 = vunpack.i.h.bf16 %v6331_v11  ;;  %v9100_v11 = vld [vmem:[#allocation10_spill] sm:$0xff] }
 0x261   : > { %v5308_v9 = vsel %vm5305_vm11, %v5300_v44, %v6332_v41  ;;  %v5309_v16 = vsel %vm5305_vm11, %v5301_v59, %v6333_v61  ;;  %v3547_v59 = vrot.slane %v6085_v3, %v6613_v6  ;;  %v5771_v3 = vld [vmem:[%s9055_s5 + $0x50] sm:$0xff] }
 0x265   : > { %v6336_v4 = vpop.permute.xlu1 %6335 }
 0x266   : > { %v6337_v52 = vunpack.i.l.bf16 %v6336_v4  ;;  %v6338_v23 = vunpack.i.h.bf16 %v6336_v4  ;;  %v5268_v4 = vcombine.low %v9100_v11, %v5266_v26  ;;  %v5823_v26 = vld [vmem:[%s9055_s5 + $0x1f0] sm:$0xff]  ;;  %v5820_v11 = vld [vmem:[%s9055_s5 + $0x1d8] sm:$0xff] }
 0x267   : > { %v6341_v31 = vpop.permute.xlu0 %6340 }
 0x268   : > { %v6342_v54 = vunpack.i.l.bf16 %v6341_v31  ;;  %v5316_v62 = vsel %vm5313_vm12, %v5308_v9, %v6337_v52  ;;  %v6343_v47 = vunpack.i.h.bf16 %v6341_v31  ;;  %v5317_v51 = vsel %vm5313_vm12, %v5309_v16, %v6338_v23 }
 0x26a   : > { %v5324_v24 = vsel %vm5321_vm14, %v5316_v62, %v6342_v54  ;;  %v5325_v2 = vsel %vm5321_vm14, %v5317_v51, %v6343_v47  ;;  %v5275_v54 = vrot.slane %v5267_v5, %v6613_v6  ;;  %v5788_v5 = vld [vmem:[%s9055_s5 + $0xd8] sm:$0xff] }
 0x26d   : > { %v6346_v12 = vpop.permute.xlu1 %6345 }
 0x26e   : > { %v6347_v34 = vunpack.i.l.bf16 %v6346_v12  ;;  %v6348_v27 = vunpack.i.h.bf16 %v6346_v12  ;;  %v5282_v12 = vrot.slane %v5268_v4, %v6613_v6  ;;  %v5772_v4 = vld [vmem:[%s9055_s5 + $0x58] sm:$0xff] }
 0x270   : > { %v5332_v21 = vsel %vm5329_vm15, %v5324_v24, %v6347_v34  ;;  %v5333_v14 = vsel %vm5329_vm15, %v5325_v2, %v6348_v27  ;;  %v5283_v2 = vcombine.low %v5275_v54, %v5282_v12  ;;  %v5769_v54 = vld [vmem:[%s9055_s5 + $0x40] sm:$0xff] }
 0x271   : > { %v8707_v35 = vpop.permute.xlu1 %4183  ;;  %v5801_v12 = vld [vmem:[%s9055_s5 + $0x140] sm:$0xff] }
 0x272   : > { %v5304_v47 = vsel %vm2893_vm13, %v3855_v48, %v8707_v35  ;;  %v5770_v48 = vld [vmem:[%s9055_s5 + $0x48] sm:$0xff] }
 0x277   : > { %v6351_v19 = vpop.permute.xlu0 %6350 }
 0x278   : > { %v6352_v58 = vunpack.i.l.bf16 %v6351_v19  ;;  %v6353_v45 = vunpack.i.h.bf16 %v6351_v19 }
 0x279   : > { %v6356_v25 = vpop.permute.xlu1 %6355 }
 0x27a   : > { %v5340_v55 = vsel %vm5337_vm0, %v5332_v21, %v6352_v58  ;;  %v6357_v40 = vunpack.i.l.bf16 %v6356_v25  ;;  %v6358_v53 = vunpack.i.h.bf16 %v6356_v25  ;;  %v5341_v37 = vsel %vm5337_vm0, %v5333_v14, %v6353_v45 }
 0x27b   : > { %v5290_v58 = vrot.slane %v3547_v59, %v6613_v6  ;;  %v5312_v25 = vsel %vm5305_vm11, %v5304_v47, %v8672_v49  ;;  %v5784_v59 = vld [vmem:[%s9055_s5 + $0xb8] sm:$0xff]  ;;  %v5782_v47 = vld [vmem:[%s9055_s5 + $0xa8] sm:$0xff] }
 0x27c   : > { %v5348_v60 = vsel %vm5345_vm1, %v5340_v55, %v6357_v40  ;;  %v5349_v10 = vsel %vm5345_vm1, %v5341_v37, %v6358_v53  ;;  %v6361_v13 = vpop.permute.xlu0 %6360 }
 0x27d   : > { %5538 = vmatmul.mubr.f32.gmra.mxu1 %v5348_v60  ;;  %5645 = vmatmul.mubr.f32.gmra.mxu0 %v5348_v60  ;;  %v6362_v42 = vunpack.i.l.bf16 %v6361_v13  ;;  %v6363_v29 = vunpack.i.h.bf16 %v6361_v13  ;;  %v5297_v37 = vrot.slane %v5290_v58, %v6613_v6  ;;  %v5792_v6 = vld [vmem:[%s9055_s5 + $0xf8] sm:$0xff]  ;;  %v5781_v58 = vld [vmem:[%s9055_s5 + $0xa0] sm:$0xff] }
 0x27e   : > { %6107 = vmatprep.mubr.msk.f32.mxu1 %vm2893_vm13, %v8661_v56  ;;  %6114 = vmatprep.mubr.msk.f32.mxu0 %vm2893_vm13, %v8661_v56 }
 0x27f   : > { %v5303_v22 = vsel %vm2893_vm13, %v3841_v17, %v6363_v29  ;;  %6132 = vmatprep.subr.mxu1 %v5792_v6  ;;  %v5807_v29 = vld [vmem:[%s9055_s5 + $0x170] sm:$0xff] }
 0x281   : > { %5544 = vmatmul.mubr.f32.gmra.mxu1 %v5349_v10  ;;  %5651 = vmatmul.mubr.f32.gmra.mxu0 %v5349_v10  ;;  %v6366_v0 = vpop.permute.xlu1 %6365 }
 0x282   : > { %6108 = vmatprep.mubr.msk.f32.mxu1 %vm2893_vm13, %v8669_v39  ;;  %6115 = vmatprep.mubr.msk.f32.mxu0 %vm2893_vm13, %v8669_v39  ;;  %v6367_v32 = vunpack.i.l.bf16 %v6366_v0  ;;  %v9098_v39 = vcombine.low %v9096_v1, %v9097_v28  ;;  %v6368_v41 = vunpack.i.h.bf16 %v6366_v0  ;;  %v5790_v1 = vld [vmem:[%s9055_s5 + $0xe8] sm:$0xff] }
 0x283   : > { %v5822_v28 = vld [vmem:[%s9055_s5 + $0x1e8] sm:$0xff] }
 0x284   : > { %v5302_v7 = vsel %vm2893_vm13, %v9098_v39, %v6362_v42  ;;  %v5311_v23 = vsel %vm5305_vm11, %v5303_v22, %v6368_v41  ;;  %v5824_v42 = vld [vmem:[%s9055_s5 + $0x1f8] sm:$0xff]  ;;  %v5774_v39 = vld [vmem:[%s9055_s5 + $0x68] sm:$0xff]  ;;  %v5803_v22 = vld [vmem:[%s9055_s5 + $0x150] sm:$0xff] }
 0x285   : > { %v5310_v36 = vsel %vm5305_vm11, %v5302_v7, %v6367_v32  ;;  %6167 = vmatprep.subr.mxu0 %v5824_v42  ;;  %v5775_v32 = vld [vmem:[%s9055_s5 + $0x70] sm:$0xff]  ;;  %v5806_v7 = vld [vmem:[%s9055_s5 + $0x168] sm:$0xff]  ;;  %v5804_v41 = vld [vmem:[%s9055_s5 + $0x158] sm:$0xff] }
 0x286   : > { %6168 = vmatpush3.msra.mxu0 %v5808_v30 }
 0x287   : > { %6169 = vmatprep.subr.mxu0 %v5823_v26 }
 0x288   : > { %6170 = vmatpush3.msra.mxu0 %v5807_v29 }
 0x289   : > { %6171 = vmatprep.subr.mxu0 %v5822_v28 }
 0x28a   : > { %v6376_v56 = vpop.permute.xlu1 %6375  ;;  %6172 = vmatpush3.msra.mxu0 %v5806_v7 }
 0x28b   : > { %v6371_v18 = vpop.permute.xlu0 %6370  ;;  %v6377_v33 = vunpack.i.l.bf16 %v6376_v56  ;;  %v6378_v62 = vunpack.i.h.bf16 %v6376_v56  ;;  %v5776_v56 = vld [vmem:[%s9055_s5 + $0x78] sm:$0xff]  ;;  %6173 = vmatprep.subr.mxu0 %v5821_v38  ;;  %v5425_v38 = vld [vmem:[%s9054_s4] sm:$0xf] }
 0x28c   : > { %v6372_v20 = vunpack.i.l.bf16 %v6371_v18  ;;  %v6373_v44 = vunpack.i.h.bf16 %v6371_v18  ;;  %v5791_v18 = vld [vmem:[%s9055_s5 + $0xf0] sm:$0xff]  ;;  %6133 = vmatpush3.msra.mxu1 %v5776_v56  ;;  %6174 = vmatpush3.msra.mxu0 %v5805_v63 }
 0x28d   : > { %6134 = vmatprep.subr.mxu1 %v5791_v18  ;;  %6175 = vmatprep.subr.mxu0 %v5820_v11 }
 0x28e   : > { %v6386_v15 = vpop.permute.xlu1 %6385  ;;  %v5318_v52 = vsel %vm5313_vm12, %v5310_v36, %v6372_v20  ;;  %v5319_v17 = vsel %vm5313_vm12, %v5311_v23, %v6373_v44  ;;  %6135 = vmatpush3.msra.mxu1 %v5775_v32  ;;  %v5789_v20 = vld [vmem:[%s9055_s5 + $0xe0] sm:$0xff]  ;;  %v5787_v36 = vld [vmem:[%s9055_s5 + $0xd0] sm:$0xff]  ;;  %6176 = vmatpush3.msra.mxu0 %v5804_v41  ;;  %v5786_v44 = vld [vmem:[%s9055_s5 + $0xc8] sm:$0xff] }
 0x28f   : > { %v6387_v8 = vunpack.i.l.bf16 %v6386_v15  ;;  %v5326_v43 = vsel %vm5321_vm14, %v5318_v52, %v6377_v33  ;;  %v6388_v27 = vunpack.i.h.bf16 %v6386_v15  ;;  %v5327_v45 = vsel %vm5321_vm14, %v5319_v17, %v6378_v62  ;;  %6136 = vmatprep.subr.mxu1 %v5790_v1  ;;  %v5773_v15 = vld [vmem:[%s9055_s5 + $0x60] sm:$0xff]  ;;  %v5819_v33 = vld [vmem:[%s9055_s5 + $0x1d0] sm:$0xff]  ;;  %v5818_v52 = vld [vmem:[%s9055_s5 + $0x1c8] sm:$0xff] }
 0x290   : > { %6137 = vmatpush3.msra.mxu1 %v5774_v39  ;;  %6177 = vmatprep.subr.mxu0 %v5819_v33  ;;  %v5816_v23 = vld [vmem:[%s9055_s5 + $0x1b8] sm:$0xff]  ;;  %v5815_v17 = vld [vmem:[%s9055_s5 + $0x1b0] sm:$0xff]  ;;  %v9101_v1 = vld [vmem:[#allocation7_spill] sm:$0xff] }
 0x291   : > { %6138 = vmatprep.subr.mxu1 %v5789_v20  ;;  %6178 = vmatpush3.msra.mxu0 %v5803_v22  ;;  %v5768_v62 = vld [vmem:[%s9055_s5 + $0x38] sm:$0xff]  ;;  %v5429_v28 = vsub.s32 0, %v9101_v1  ;;  %v5437_v39 = vsub.s32 2, %v9101_v1  ;;  %v5441_v63 = vsub.s32 3, %v9101_v1 }
 0x292   : > { %v6381_v31 = vpop.permute.xlu0 %6380  ;;  %v4610_v61 = vpop.permute.xlu1 %4609  ;;  %6139 = vmatpush3.msra.mxu1 %v5773_v15  ;;  %6179 = vmatprep.subr.mxu0 %v5818_v52  ;;  %v5433_v15 = vsub.s32 1, %v9101_v1 }
 0x293   : > { %v6382_v9 = vunpack.i.l.bf16 %v6381_v31  ;;  %v6383_v34 = vunpack.i.h.bf16 %v6381_v31  ;;  %v5320_v35 = vsel %vm5313_vm12, %v5312_v25, %v4610_v61  ;;  %6140 = vmatprep.subr.mxu1 %v5788_v5  ;;  %v5802_v31 = vld [vmem:[%s9055_s5 + $0x148] sm:$0xff]  ;;  %v5785_v61 = vld [vmem:[%s9055_s5 + $0xc0] sm:$0xff]  ;;  %v5812_v25 = vld [vmem:[%s9055_s5 + $0x198] sm:$0xff]  ;;  %v8973_v5 = vrot.slane %v5425_v38, %v5429_v28 }
 0x294   : > { %6141 = vmatpush3.msra.mxu1 %v5772_v4  ;;  %6180 = vmatpush3.msra.mxu0 %v5802_v31  ;;  %v8975_v11 = vrot.slane %v5425_v38, %v5437_v39  ;;  %v8979_v33 = vrot.slane %v5425_v38, %v5441_v63 }
 0x295   : > { %v5334_v16 = vsel %vm5329_vm15, %v5326_v43, %v6382_v9  ;;  %v5335_v53 = vsel %vm5329_vm15, %v5327_v45, %v6383_v34  ;;  %6142 = vmatprep.subr.mxu1 %v5787_v36  ;;  %v5817_v9 = vld [vmem:[%s9055_s5 + $0x1c0] sm:$0xff]  ;;  %v5783_v43 = vld [vmem:[%s9055_s5 + $0xb0] sm:$0xff]  ;;  %v5780_v45 = vld [vmem:[%s9055_s5 + $0x98] sm:$0xff]  ;;  %v8977_v36 = vrot.slane %v5425_v38, %v5433_v15 }
 0x296   : > { %v6391_v24 = vpop.permute.xlu0 %6390  ;;  %v4908_v19 = vpop.permute.xlu1 %4907  ;;  %v5342_v21 = vsel %vm5337_vm0, %v5334_v16, %v6387_v8  ;;  %v5343_v49 = vsel %vm5337_vm0, %v5335_v53, %v6388_v27  ;;  %6143 = vmatpush3.msra.mxu1 %v5771_v3  ;;  %6181 = vmatprep.subr.mxu0 %v5817_v9  ;;  %v5800_v8 = vld [vmem:[%s9055_s5 + $0x138] sm:$0xff]  ;;  %v5767_v34 = vld [vmem:[%s9055_s5 + $0x30] sm:$0xff]  ;;  %v5813_v27 = vld [vmem:[%s9055_s5 + $0x1a0] sm:$0xff] }
 0x297   : > { %v6392_v51 = vunpack.i.l.bf16 %v6391_v24  ;;  %v6393_v55 = vunpack.i.h.bf16 %v6391_v24  ;;  %6144 = vmatprep.subr.mxu1 %v5786_v44  ;;  %6182 = vmatpush3.msra.mxu0 %v5801_v12  ;;  %v5799_v16 = vld [vmem:[%s9055_s5 + $0x130] sm:$0xff]  ;;  %v5814_v24 = vld [vmem:[%s9055_s5 + $0x1a8] sm:$0xff] }
 0x298   : > { %6145 = vmatpush3.msra.mxu1 %v5770_v48  ;;  %6183 = vmatprep.subr.mxu0 %v5816_v23  ;;  %v5779_v53 = vld [vmem:[%s9055_s5 + $0x90] sm:$0xff] }
 0x299   : > { %v5350_v40 = vsel %vm5345_vm1, %v5342_v21, %v6392_v51  ;;  %v5351_v10 = vsel %vm5345_vm1, %v5343_v49, %v6393_v55  ;;  %6146 = vmatprep.subr.mxu1 %v5785_v61  ;;  %6184 = vmatpush3.msra.mxu0 %v5800_v8  ;;  %v5766_v51 = vld [vmem:[%s9055_s5 + $0x28] sm:$0xff]  ;;  %v5765_v21 = vld [vmem:[%s9055_s5 + $0x20] sm:$0xff]  ;;  %v5764_v55 = vld [vmem:[%s9055_s5 + $0x18] sm:$0xff] }
 0x29a   : > { %v4755_v60 = vpop.permute.xlu0 %4754  ;;  %5550 = vmatmul.mubr.f32.gmra.mxu1 %v5350_v40  ;;  %5657 = vmatmul.mubr.f32.gmra.mxu0 %v5350_v40  ;;  %v5190_v0 = vpop.permute.xlu1 %5189  ;;  %v5796_v40 = vld [vmem:[%s9055_s5 + $0x118] sm:$0xff]  ;;  %v5810_v49 = vld [vmem:[%s9055_s5 + $0x188] sm:$0xff] }
 0x29b   : > { %v5328_v14 = vsel %vm5321_vm14, %v5320_v35, %v4755_v60  ;;  %6109 = vmatprep.mubr.msk.f32.mxu1 %vm2893_vm13, %v5283_v2  ;;  %6116 = vmatprep.mubr.msk.f32.mxu0 %vm2893_vm13, %v5283_v2  ;;  %v5797_v2 = vld [vmem:[%s9055_s5 + $0x120] sm:$0xff]  ;;  %v5811_v35 = vld [vmem:[%s9055_s5 + $0x190] sm:$0xff] }
 0x29c   : > { %v5336_v13 = vsel %vm5329_vm15, %v5328_v14, %v4908_v19  ;;  %6147 = vmatpush3.msra.mxu1 %v5769_v54  ;;  %6185 = vmatprep.subr.mxu0 %v5815_v17  ;;  %v5798_v19 = vld [vmem:[%s9055_s5 + $0x128] sm:$0xff]  ;;  %v5763_v60 = vld [vmem:[%s9055_s5 + $0x10] sm:$0xff] }
 0x29d   : > { %6148 = vmatprep.subr.mxu1 %v5784_v59  ;;  %6186 = vmatpush3.msra.mxu0 %v5799_v16  ;;  %v5795_v14 = vld [vmem:[%s9055_s5 + $0x110] sm:$0xff] }
 0x29e   : > { %v5061_v57 = vpop.permute.xlu0 %5060  ;;  %5556 = vmatmul.mubr.f32.gmra.mxu1 %v5351_v10  ;;  %5663 = vmatmul.mubr.f32.gmra.mxu0 %v5351_v10  ;;  %v5762_v10 = vld [vmem:[%s9055_s5 + $0x8] sm:$0xff] }
 0x29f   : > { %v5344_v46 = vsel %vm5337_vm0, %v5336_v13, %v5061_v57  ;;  %6110 = vmatprep.mubr.msk.f32.mxu1 %vm2893_vm13, %v5297_v37  ;;  %6117 = vmatprep.mubr.msk.f32.mxu0 %vm2893_vm13, %v5297_v37  ;;  %v5778_v37 = vld [vmem:[%s9055_s5 + $0x88] sm:$0xff]  ;;  %v5777_v13 = vld [vmem:[%s9055_s5 + $0x80] sm:$0xff]  ;;  %vm5708_vm13 = vcmask 1040384  }
 0x2a0   : > { %v5352_v50 = vsel %vm5345_vm1, %v5344_v46, %v5190_v0  ;;  %6149 = vmatpush3.msra.mxu1 %v5768_v62  ;;  %6187 = vmatprep.subr.mxu0 %v5814_v24  ;;  %v5794_v0 = vld [vmem:[%s9055_s5 + $0x108] sm:$0xff]  ;;  %v5809_v57 = vld [vmem:[%s9055_s5 + $0x180] sm:$0xff] }
 0x2a1   : > { %6150 = vmatprep.subr.mxu1 %v5783_v43  ;;  %6188 = vmatpush3.msra.mxu0 %v5798_v19  ;;  %v5761_v46 = vld [vmem:[%s9055_s5] sm:$0xff] }
 0x2a2   : > { %5562 = vmatmul.mubr.f32.gmra.mxu1 %v5352_v50  ;;  %5669 = vmatmul.mubr.f32.gmra.mxu0 %v5352_v50  ;;  %v5793_v50 = vld [vmem:[%s9055_s5 + $0x100] sm:$0xff] }
 0x2a3   : > { %6151 = vmatpush3.msra.mxu1 %v5767_v34  ;;  %6189 = vmatprep.subr.mxu0 %v5813_v27 }
 0x2a4   : > { %6152 = vmatprep.subr.mxu1 %v5782_v47  ;;  %6190 = vmatpush3.msra.mxu0 %v5797_v2 }
 0x2a5   : > { %6153 = vmatpush3.msra.mxu1 %v5766_v51  ;;  %6191 = vmatprep.subr.mxu0 %v5812_v25 }
 0x2a6   : > { %6154 = vmatprep.subr.mxu1 %v5781_v58  ;;  %6192 = vmatpush3.msra.mxu0 %v5796_v40 }
 0x2a7   : > { %6155 = vmatpush3.msra.mxu1 %v5765_v21  ;;  %6193 = vmatprep.subr.mxu0 %v5811_v35 }
 0x2a8   : > { %6156 = vmatprep.subr.mxu1 %v5780_v45  ;;  %6194 = vmatpush3.msra.mxu0 %v5795_v14 }
 0x2a9   : > { %6157 = vmatpush3.msra.mxu1 %v5764_v55  ;;  %6195 = vmatprep.subr.mxu0 %v5810_v49 }
 0x2aa   : > { %6158 = vmatprep.subr.mxu1 %v5779_v53  ;;  %6196 = vmatpush3.msra.mxu0 %v5794_v0 }
 0x2ab   : > { %6159 = vmatpush3.msra.mxu1 %v5763_v60  ;;  %6197 = vmatprep.subr.mxu0 %v5809_v57 }
 0x2ac   : > { %6160 = vmatprep.subr.mxu1 %v5778_v37  ;;  %6198 = vmatpush3.msra.mxu0 %v5793_v50 }
 0x2ad   : > { %6161 = vmatpush3.msra.mxu1 %v5762_v10 }
 0x2ae   : > { %6162 = vmatprep.subr.mxu1 %v5777_v13 }
 0x2af   : > { %6163 = vmatpush3.msra.mxu1 %v5761_v46 }
 0x315   : > { %v5527_v6 = vpop.f32.mrf.mxu1  ;;  %v5634_v42 = vpop.f32.mrf.mxu0 }
 0x316   : > { %v5528_v3 = vadd.f32 %v5527_v6, %v8973_v5  ;;  %v5635_v22 = vadd.f32 %v5634_v42, %v8975_v11 }
 0x317   : > { %v5529_v56 = vpop.f32.mrf.mxu1  ;;  %v5636_v30 = vpop.f32.mrf.mxu0 }
 0x318   : > { %v5530_v59 = vadd.f32 %v5529_v56, %v8977_v36  ;;  %v5637_v23 = vadd.f32 %v5636_v30, %v8979_v33  ;;  %v5675_v62 = vmax.f32 %v5528_v3, 0.0  ;;  %v5677_v8 = vmax.f32 %v5635_v22, 0.0 }
 0x319   : > { %v5533_v18 = vpop.f32.mrf.mxu1  ;;  %v5640_v26 = vpop.f32.mrf.mxu0 }
 0x31a   : > { %v5534_v44 = vadd.f32 %v5533_v18, %v8973_v5  ;;  %v5641_v52 = vadd.f32 %v5640_v26, %v8975_v11  ;;  %v5676_v55 = vmax.f32 %v5530_v59, 0.0  ;;  %v5678_v40 = vmax.f32 %v5637_v23, 0.0 }
 0x31b   : > { %v5535_v32 = vpop.f32.mrf.mxu1  ;;  %v5642_v29 = vpop.f32.mrf.mxu0 }
 0x31c   : > { %v5536_v61 = vadd.f32 %v5535_v32, %v8977_v36  ;;  %v5643_v9 = vadd.f32 %v5642_v29, %v8979_v33  ;;  %v5679_v43 = vmax.f32 %v5534_v44, 0.0  ;;  %v5681_v17 = vmax.f32 %v5641_v52, 0.0 }
 0x31e   : > { %v5680_v47 = vmax.f32 %v5536_v61, 0.0  ;;  %v5682_v24 = vmax.f32 %v5643_v9, 0.0  ;;  %v5703_v60 = vadd.f32 %v5679_v43, %v5675_v62  ;;  %v5730_v14 = vadd.f32 %v5681_v17, %v5677_v8 }
 0x320   : > { %v5717_v13 = vadd.f32 %v5680_v47, %v5676_v55  ;;  %v5743_v57 = vadd.f32 %v5682_v24, %v5678_v40 }
 0x33d   : > { %v5539_v7 = vpop.f32.mrf.mxu1  ;;  %v5646_v20 = vpop.f32.mrf.mxu0 }
 0x33e   : > { %v5540_v54 = vadd.f32 %v5539_v7, %v8973_v5  ;;  %v5647_v12 = vadd.f32 %v5646_v20, %v8975_v11 }
 0x33f   : > { %v5541_v4 = vpop.f32.mrf.mxu1  ;;  %v5648_v41 = vpop.f32.mrf.mxu0 }
 0x340   : > { %v5542_v51 = vadd.f32 %v5541_v4, %v8977_v36  ;;  %v5649_v19 = vadd.f32 %v5648_v41, %v8979_v33  ;;  %v5683_v58 = vmax.f32 %v5540_v54, 0.0  ;;  %v5685_v27 = vmax.f32 %v5647_v12, 0.0 }
 0x341   : > { %v5545_v48 = vpop.f32.mrf.mxu1  ;;  %v5652_v31 = vpop.f32.mrf.mxu0 }
 0x342   : > { %v5546_v21 = vadd.f32 %v5545_v48, %v8973_v5  ;;  %v5653_v2 = vadd.f32 %v5652_v31, %v8975_v11  ;;  %v5684_v46 = vmax.f32 %v5542_v51, 0.0  ;;  %v5686_v50 = vmax.f32 %v5649_v19, 0.0 }
 0x343   : > { %v5547_v34 = vpop.f32.mrf.mxu1  ;;  %v5654_v16 = vpop.f32.mrf.mxu0  ;;  %v5704_v6 = vadd.f32 %v5703_v60, %v5683_v58  ;;  %v5731_v42 = vadd.f32 %v5730_v14, %v5685_v27 }
 0x344   : > { %v5548_v53 = vadd.f32 %v5547_v34, %v8977_v36  ;;  %v5655_v35 = vadd.f32 %v5654_v16, %v8979_v33  ;;  %v5687_v56 = vmax.f32 %v5546_v21, 0.0  ;;  %v5689_v30 = vmax.f32 %v5653_v2, 0.0 }
 0x345   : > { %v5718_v4 = vadd.f32 %v5717_v13, %v5684_v46  ;;  %v5744_v41 = vadd.f32 %v5743_v57, %v5686_v50 }
 0x346   : > { %v5688_v32 = vmax.f32 %v5548_v53, 0.0  ;;  %v5690_v29 = vmax.f32 %v5655_v35, 0.0  ;;  %v5705_v44 = vadd.f32 %v5704_v6, %v5687_v56  ;;  %v5732_v52 = vadd.f32 %v5731_v42, %v5689_v30 }
 0x348   : > { %v5719_v62 = vadd.f32 %v5718_v4, %v5688_v32  ;;  %v5745_v8 = vadd.f32 %v5744_v41, %v5690_v29 }
 0x35a   : > { %v5551_v45 = vpop.f32.mrf.mxu1  ;;  %v5658_v25 = vpop.f32.mrf.mxu0 }
 0x35b   : > { %v5552_v37 = vadd.f32 %v5551_v45, %v8973_v5  ;;  %v5659_v49 = vadd.f32 %v5658_v25, %v8975_v11 }
 0x35c   : > { %v5553_v10 = vpop.f32.mrf.mxu1  ;;  %v5660_v0 = vpop.f32.mrf.mxu0 }
 0x35d   : > { %v5554_v1 = vadd.f32 %v5553_v10, %v8977_v36  ;;  %v5661_v28 = vadd.f32 %v5660_v0, %v8979_v33  ;;  %v5691_v39 = vmax.f32 %v5552_v37, 0.0  ;;  %v5693_v7 = vmax.f32 %v5659_v49, 0.0 }
 0x35e   : > { %v5557_v18 = vpop.f32.mrf.mxu1  ;;  %v5664_v26 = vpop.f32.mrf.mxu0 }
 0x35f   : > { %v5558_v20 = vadd.f32 %v5557_v18, %v8973_v5  ;;  %v5665_v38 = vadd.f32 %v5664_v26, %v8975_v11  ;;  %v5692_v54 = vmax.f32 %v5554_v1, 0.0  ;;  %v5694_v12 = vmax.f32 %v5661_v28, 0.0 }
 0x360   : > { %v5559_v15 = vpop.f32.mrf.mxu1  ;;  %v5666_v63 = vpop.f32.mrf.mxu0  ;;  %v5706_v43 = vadd.f32 %v5705_v44, %v5691_v39  ;;  %v5733_v17 = vadd.f32 %v5732_v52, %v5693_v7 }
 0x361   : > { %v5560_v3 = vadd.f32 %v5559_v15, %v8977_v36  ;;  %v5667_v22 = vadd.f32 %v5666_v63, %v8979_v33  ;;  %v5695_v48 = vmax.f32 %v5558_v20, 0.0  ;;  %v5697_v31 = vmax.f32 %v5665_v38, 0.0 }
 0x362   : > { %v5563_v61 = vpop.f32.mrf.mxu1  ;;  %v5670_v9 = vpop.f32.mrf.mxu0  ;;  %v5720_v45 = vadd.f32 %v5719_v62, %v5692_v54 }
 0x363   : > { %v5564_v59 = vadd.f32 %v5563_v61, %v8973_v5  ;;  %v5671_v23 = vadd.f32 %v5670_v9, %v8975_v11  ;;  %v5696_v47 = vmax.f32 %v5560_v3, 0.0  ;;  %v5698_v24 = vmax.f32 %v5667_v22, 0.0  ;;  %v5825_v61 = vld [vmem:[%s9056_s6] sm:$0x1] }
 0x364   : > { %v5565_v34 = vpop.f32.mrf.mxu1  ;;  %v5672_v16 = vpop.f32.mrf.mxu0  ;;  %v5707_v58 = vadd.f32 %v5706_v43, %v5695_v48  ;;  %v5734_v27 = vadd.f32 %v5733_v17, %v5697_v31  ;;  %v5746_v5 = vadd.f32 %v5745_v8, %v5694_v12 }
 0x365   : > { %v5699_v51 = vmax.f32 %v5564_v59, 0.0  ;;  %v5701_v19 = vmax.f32 %v5671_v23, 0.0  ;;  %v5566_v21 = vadd.f32 %v5565_v34, %v8977_v36  ;;  %v5673_v2 = vadd.f32 %v5672_v16, %v8979_v33 }
 0x366   : > { %v5721_v60 = vadd.f32 %v5720_v45, %v5696_v47  ;;  %v5747_v14 = vadd.f32 %v5746_v5, %v5698_v24 }
 0x367   : > { %v5709_v11 = vsel %vm5708_vm13, %v5699_v51, 0.0  ;;  %v5735_v25 = vsel %vm5708_vm13, %v5701_v19, 0.0  ;;  %v5700_v53 = vmax.f32 %v5566_v21, 0.0  ;;  %v5702_v35 = vmax.f32 %v5673_v2, 0.0 }
 0x368   : > { %v5710_v55 = vadd.f32 %v5709_v11, %v5707_v58  ;;  %v5736_v40 = vadd.f32 %v5735_v25, %v5734_v27 }
 0x369   : > { %v5722_v10 = vsel %vm5708_vm13, %v5700_v53, 0.0  ;;  %v5748_v36 = vsel %vm5708_vm13, %v5702_v35, 0.0 }
 0x36a   : > { %v5711_v37 = vrot.slane %v5710_v55, 4  ;;  %v5737_v49 = vrot.slane %v5736_v40, 4  ;;  %v5723_v0 = vadd.f32 %v5722_v10, %v5721_v60  ;;  %v5749_v33 = vadd.f32 %v5748_v36, %v5747_v14 }
 0x36c   : > { %v5712_v13 = vadd.f32 %v5711_v37, %v5710_v55  ;;  %v5738_v57 = vadd.f32 %v5737_v49, %v5736_v40  ;;  %v5724_v46 = vrot.slane %v5723_v0, 4  ;;  %v5750_v50 = vrot.slane %v5749_v33, 4 }
 0x36e   : > { %v5713_v6 = vrot.slane %v5712_v13, 2  ;;  %v5739_v42 = vrot.slane %v5738_v57, 2  ;;  %v5725_v56 = vadd.f32 %v5724_v46, %v5723_v0  ;;  %v5751_v30 = vadd.f32 %v5750_v50, %v5749_v33 }
 0x370   : > { %v5714_v18 = vadd.f32 %v5713_v6, %v5712_v13  ;;  %v5740_v26 = vadd.f32 %v5739_v42, %v5738_v57  ;;  %v5726_v32 = vrot.slane %v5725_v56, 2  ;;  %v5752_v29 = vrot.slane %v5751_v30, 2 }
 0x372   : > { %v5715_v1 = vrot.slane %v5714_v18, 1  ;;  %v5741_v28 = vrot.slane %v5740_v26, 1  ;;  %v5727_v39 = vadd.f32 %v5726_v32, %v5725_v56  ;;  %v5753_v7 = vadd.f32 %v5752_v29, %v5751_v30 }
 0x374   : > { %v5728_v20 = vrot.slane %v5727_v39, 1  ;;  %v5754_v38 = vrot.slane %v5753_v7, 1  ;;  %v5716_v15 = vadd.f32 %v5715_v1, %v5714_v18  ;;  %v5742_v63 = vadd.f32 %v5741_v28, %v5740_v26 }
 0x376   : > { %v5729_v4 = vadd.f32 %v5728_v20, %v5727_v39  ;;  %v5755_v41 = vadd.f32 %v5754_v38, %v5753_v7  ;;  %v5757_v44 = vmul.f32 0.020408163, %v5716_v15  ;;  %v5759_v52 = vmul.f32 0.020408163, %v5742_v63 }
 0x378   : > { %v5758_v3 = vmul.f32 0.020408163, %v5729_v4  ;;  %v5760_v22 = vmul.f32 0.020408163, %v5755_v41 }
 0x37a   : > { %5890 = vmatprep.mubr.f32.mxu1 %v5758_v3  ;;  %5960 = vmatprep.mubr.f32.mxu0 %v5760_v22 }
 0x37b   : > { %5891 = vmatmul.mubr.f32.vlgmr.msra.gmra.mxu1 %v5757_v44  ;;  %5961 = vmatmul.mubr.f32.vlgmr.msra.gmra.mxu0 %v5759_v52 }
 0x43b   : > { %v6164_v48 = vpop.f32.mrf.mxu1  ;;  %v6199_v31 = vpop.f32.mrf.mxu0 }
 0x43d   : > { %v6165_v9 = vpop.f32.mrf.mxu1  ;;  %v6200_v54 = vpop.f32.mrf.mxu0 }
 0x43e   : > { %v6166_v12 = vadd.f32 %v6165_v9, %v6164_v48  ;;  %v6201_v23 = vadd.f32 %v6200_v54, %v6199_v31 }
 0x440   : > { %v5893_v59 = vadd.f32 %v6166_v12, %v5825_v61 }
 0x442   : > { %v5963_v62 = vadd.f32 %v6201_v23, %v5893_v59 }
 0x444   : > { %5967 = vst.msk [vmem:[%s270_s13] sm:$0x1] %vm5966_vm2, %v5963_v62 }
 0x445   : > { %6422 = shalt.err (!%p6419_p3)
}
 0x446   : > { %s6423_s17 = scalar_lea.hbm %s5979_s23, 16  ;;  %s6427_s16 = scalar_lea.hbm %s9057_s7, 32 }
 0x447   : > { %p6424_p4 = scmp.ne.s32.totalorder %s5979_s23, %s6423_s17  ;;  %p6428_p9 = scmp.lt.s32.totalorder %s5979_s23, %s9057_s7 }
 0x448   : > { %p6429_p10 = scmp.lt.s32.totalorder %s6427_s16, %s6423_s17 }
 0x449   : > { %p6425_p7 = pnand %p6424_p4, %p6568_p5 }
 0x44a   : > { %p6430_p11 = por %p6429_p10, %p6428_p9 }
 0x44b   : > { %p6426_p8 = pneg %p6425_p7 }
 0x44d   : > { %p6431_p12 = pnand %p6430_p11, %p6426_p8 }
 0x44f   : > { %6434 = shalt.err (!%p6431_p12)
}
 0x450   : > { %6232 = dma.vmem_to_hbm [thread:$0]  (%p6568_p5), %s5982_s19, 16, %s5979_s23, %s5969_s14  }
 0x451 PF: > { %p6238_p13 = scmp.ge.s32.totalorder %s6469_s27, 2  ;;  %s5993_s21 = sand.u32 1, %s6457_s24  }
 0x452   : > { %s5994_s22 = scalar_lea.sflag [#allocation5], %s5993_s21 }
 0x453   : > { %p6235_p0 = pnand %p6238_p13, %p6572_p6 }
 0x455   : > { %p6236_p1 = pneg %p6235_p0 }
 0x457   : > { %6452 = dma.done.wait (%p6236_p1), %s5994_s22, 16  }
 0x458   : > { %6454 = vsyncadd (%p6236_p1), %s5994_s22, 4294967280  ;;  %p17_p2 = scmp.ge.s32.totalorder %s6555_s30, 4   ;;  %s9102_s24 = smov %s6461_s25 }
 0x459   : > { %s9103_s25 = smov %s6465_s26  ;;  %s9104_s26 = smov %s6566_s10 }
 0x45a   : > { %s9105_s27 = smov %s6555_s30  ;;  %19 = sbr.rel (!%p17_p2) target bundleno = 3 (0x3), region = 91 }
 0x45f   :  { %5998 = vsyncpa [#allocation5], 1 }
 0x460   :  { %6000 = vsyncpa [#allocation5 + $0x1], 1 }

</bundles_post_ra>
